<compile_context>
chip_gen: v7x
topology: tpu7x:2x2x1
jax: 0.10.0
libtpu: 0.0.40
codegen_flags: <defaults>
</compile_context>

<pallas_src>
import functools

import jax
import jax.numpy as jnp
from jax import lax
from jax.experimental import pallas as pl
from jax.experimental.pallas import tpu as pltpu

NEG_SLOPE = 0.2
_CIN_PAD = 8                 # channel dim padded 6 -> 8 (one sublane tile)
_ROWS_PER_TILE_CAP = 4096    # max (TILE_N * K) rows processed per grid step


def _leaky(v):
    # leaky_relu(v, 0.2) == max(v, 0.2*v) for 0 < slope < 1: saves a cmp+select.
    return jnp.maximum(v, NEG_SLOPE * v)


def _pick_tile_n(n_points, k_neighbors):
    """Largest point tile such that the per-tile row count stays modest and the
    x BlockSpec's lane dim is either the full array or a multiple of 128."""
    if n_points * k_neighbors <= _ROWS_PER_TILE_CAP:
        return n_points
    best = None
    for t in range(1, n_points + 1):
        rows = t * k_neighbors
        if n_points % t == 0 and rows % 128 == 0 and rows <= _ROWS_PER_TILE_CAP:
            best = t
    # TODO(synk): fallback processes the full point axis in one step (may need a
    # larger vmem_limit_bytes for very large, non-factorable N*K).
    return best if best is not None else n_points


# ----------------------------------------------------------------------------
# Stage A: conv1 / conv2 / neighbor-max / conv3 / global-max  -> pooled (B,1024)
# ----------------------------------------------------------------------------
def transform_net_stage_a_kernel(x_ref,
                                 w1_ref, c1_ref,
                                 w2_ref, c2_ref,
                                 w3_ref, c3_ref,
                                 g_ref,
                                 *, tile_n, k_neighbors):
    """Grid = (batch, point_tile).  g_ref block is resident across point tiles
    and holds the running global max of the 1024-wide conv3 activations."""
    j = pl.program_id(1)

    x = x_ref[0]                                            # (8, TILE_N*K), rows on lanes

    # conv1: contract the (padded) channel axis; result is channels-last.
    h = lax.dot_general(x, w1_ref[...],
                        dimension_numbers=(((0,), (0,)), ((), ())),
                        preferred_element_type=jnp.float32)  # (TILE_N*K, 64)
    h = _leaky(h + c1_ref[...])                              # BN scale folded into w1

    # conv2 (bf16 matmul, f32 accumulation).
    h = jnp.dot(h.astype(w2_ref.dtype), w2_ref[...],
                preferred_element_type=jnp.float32)          # (TILE_N*K, 128)
    h = _leaky(h + c2_ref[...])

    # max over the K neighbors of each point (rows are ordered n*K + k).
    # TODO(synk): for K % 8 != 0 this reshape forces a sublane relayout; a
    # strided running-max formulation would avoid it.
    p = jnp.max(h.reshape(tile_n, k_neighbors, 128), axis=1)  # (TILE_N, 128)

    # conv3 (bf16 matmul, f32 accumulation).
    q = jnp.dot(p.astype(w3_ref.dtype), w3_ref[...],
                preferred_element_type=jnp.float32)          # (TILE_N, 1024)
    q = _leaky(q + c3_ref[...])

    tile_max = jnp.max(q, axis=0, keepdims=True)             # (1, 1024)

    @pl.when(j == 0)
    def _():
        g_ref[0] = tile_max

    @pl.when(j > 0)
    def _():
        g_ref[0] = jnp.maximum(g_ref[0], tile_max)


# ----------------------------------------------------------------------------
# Stage B: MLP head, batched over B  (1024 -> 512 -> 256 -> 9)
# ----------------------------------------------------------------------------
def transform_net_head_kernel(g_ref,
                              w4_ref, c4_ref,
                              w5_ref, c5_ref,
                              w6_ref, b6_ref,
                              feat_ref, out_ref):
    g = g_ref[...]                                           # (B, 1024)

    h = jnp.dot(g, w4_ref[...], preferred_element_type=jnp.float32)
    h = _leaky(h + c4_ref[...])                              # (B, 512)

    h = jnp.dot(h, w5_ref[...], preferred_element_type=jnp.float32)
    h = _leaky(h + c5_ref[...])                              # (B, 256)
    feat_ref[...] = h.astype(feat_ref.dtype)

    # transform head: lane-dense 128-wide store (real output lives in cols 0..8).
    out = jnp.dot(h, w6_ref[...], preferred_element_type=jnp.float32) + b6_ref[...]
    out_ref[...] = out.astype(out_ref.dtype)                 # (B, 128)


# ----------------------------------------------------------------------------
# Wrapper
# ----------------------------------------------------------------------------
def transform_net_forward(x_nchw, kp):
    """x_nchw: (B, 6, N, K) float32 (PyTorch layout). Returns ((B,3,3), (B,256))."""
    B, C, N, K = x_nchw.shape
    assert C == 6
    tile_n = _pick_tile_n(N, K)
    nt = N // tile_n
    rows_per_tile = tile_n * K

    # Lane-dense input: (B, 8, N*K) — channels on sublanes (zero-padded 6->8),
    # (point, neighbor) rows on lanes, row order n*K + k (matches NCHW memory).
    x_flat = x_nchw.reshape(B, C, N * K)
    x_pad = jnp.pad(x_flat, ((0, 0), (0, _CIN_PAD - C), (0, 0)))

    stage_a = functools.partial(transform_net_stage_a_kernel,
                                tile_n=tile_n, k_neighbors=K)

    pooled = pl.pallas_call(
        stage_a,
        out_shape=jax.ShapeDtypeStruct((B, 1, 1024), jnp.float32),
        grid_spec=pltpu.PrefetchScalarGridSpec(
            num_scalar_prefetch=0,
            grid=(B, nt),
            in_specs=[
                pl.BlockSpec((1, _CIN_PAD, rows_per_tile), lambda b, j: (b, 0, j)),
                pl.BlockSpec((_CIN_PAD, 64), lambda b, j: (0, 0)),
                pl.BlockSpec((1, 64), lambda b, j: (0, 0)),
                pl.BlockSpec((64, 128), lambda b, j: (0, 0)),
                pl.BlockSpec((1, 128), lambda b, j: (0, 0)),
                pl.BlockSpec((128, 1024), lambda b, j: (0, 0)),
                pl.BlockSpec((1, 1024), lambda b, j: (0, 0)),
            ],
            out_specs=pl.BlockSpec((1, 1, 1024), lambda b, j: (b, 0, 0)),
        ),
        compiler_params=pltpu.CompilerParams(
            dimension_semantics=("parallel", "arbitrary"),
            vmem_limit_bytes=64 * 1024 * 1024,
        ),
    )(x_pad, kp["w1"], kp["c1"], kp["w2"], kp["c2"], kp["w3"], kp["c3"])

    g = pooled.reshape(B, 1024)

    feat, out_pad = pl.pallas_call(
        transform_net_head_kernel,
        out_shape=(jax.ShapeDtypeStruct((B, 256), jnp.float32),
                   jax.ShapeDtypeStruct((B, 128), jnp.float32)),
    )(g, kp["w4"], kp["c4"], kp["w5"], kp["c5"], kp["w6"], kp["b6"])

    out = out_pad[:, :9].reshape(B, 3, 3)
    return out, feat


# ----------------------------------------------------------------------------
# Parameters
# ----------------------------------------------------------------------------
def init_params(key):
    ks = jax.random.split(key, 32)

    def conv_w(k, cin, cout, scale=0.1):
        return scale * jax.random.normal(k, (cin, cout), jnp.float32)

    def bn_fold(k4, ch, eps=1e-5):
        kg, kb, km, kv = jax.random.split(k4, 4)
        gamma = 1.0 + 0.1 * jax.random.normal(kg, (ch,), jnp.float32)
        beta = 0.1 * jax.random.normal(kb, (ch,), jnp.float32)
        mean = 0.1 * jax.random.normal(km, (ch,), jnp.float32)
        var = jnp.abs(jax.random.normal(kv, (ch,), jnp.float32)) + 0.5
        scale = gamma / jnp.sqrt(var + eps)
        shift = beta - mean * scale
        return scale.reshape(1, ch), shift.reshape(1, ch)

    p = {}
    p["w1"] = conv_w(ks[0], 6, 64)            # conv1 (1x1 conv as matmul)
    p["s1"], p["c1"] = bn_fold(ks[1], 64)     # bn1
    p["w2"] = conv_w(ks[2], 64, 128)          # conv2
    p["s2"], p["c2"] = bn_fold(ks[3], 128)    # bn2
    p["w3"] = conv_w(ks[4], 128, 1024)        # conv3
    p["s3"], p["c3"] = bn_fold(ks[5], 1024)   # BN1d(1024) inside conv3
    p["w4"] = conv_w(ks[6], 1024, 512)        # linear1 (no bias)
    p["s4"], p["c4"] = bn_fold(ks[7], 512)    # bn3 (reassigned BN1d(512))
    p["w5"] = conv_w(ks[8], 512, 256)         # linear2 (no bias)
    p["s5"], p["c5"] = bn_fold(ks[9], 256)    # bn4
    # transform head: weight = 0, bias = identity (per module __init__)
    p["w6"] = jnp.zeros((256, 9), jnp.float32)
    p["b6"] = jnp.eye(3, dtype=jnp.float32).reshape(1, 9)
    return p


def prepare_kernel_params(p, matmul_dtype=jnp.bfloat16):
    """Fold BN scales into the weight matrices, pad for lane/sublane density,
    cast the FLOP-dominant weights to bf16 (f32 accumulation in-kernel)."""
    kp = {}
    kp["w1"] = jnp.pad(p["w1"] * p["s1"], ((0, _CIN_PAD - p["w1"].shape[0]), (0, 0)))
    kp["c1"] = p["c1"]
    kp["w2"] = (p["w2"] * p["s2"]).astype(matmul_dtype)
    kp["c2"] = p["c2"]
    kp["w3"] = (p["w3"] * p["s3"]).astype(matmul_dtype)
    kp["c3"] = p["c3"]
    kp["w4"] = p["w4"] * p["s4"]
    kp["c4"] = p["c4"]
    kp["w5"] = p["w5"] * p["s5"]
    kp["c5"] = p["c5"]
    kp["w6"] = jnp.pad(p["w6"], ((0, 0), (0, 128 - p["w6"].shape[1])))
    kp["b6"] = jnp.pad(p["b6"], ((0, 0), (0, 128 - p["b6"].shape[1])))
    return kp


# ----------------------------------------------------------------------------
# Pure-JAX reference (folded eval-mode BN, full f32)
# ----------------------------------------------------------------------------
def reference_forward(x_nchw, p):
    B, C, N, K = x_nchw.shape
    xr = jnp.transpose(x_nchw, (0, 2, 3, 1)).reshape(B, N * K, C)
    h = jax.nn.leaky_relu((xr @ p["w1"]) * p["s1"] + p["c1"], NEG_SLOPE)
    h = jax.nn.leaky_relu((h @ p["w2"]) * p["s2"] + p["c2"], NEG_SLOPE)
    h = jnp.max(h.reshape(B, N, K, 128), axis=2)
    h = jax.nn.leaky_relu((h @ p["w3"]) * p["s3"] + p["c3"], NEG_SLOPE)
    g = jnp.max(h, axis=1)
    g = jax.nn.leaky_relu((g @ p["w4"]) * p["s4"] + p["c4"], NEG_SLOPE)
    g = jax.nn.leaky_relu((g @ p["w5"]) * p["s5"] + p["c5"], NEG_SLOPE)
    out = g @ p["w6"] + p["b6"]
    return out.reshape(B, 3, 3), g


if __name__ == "__main__":
    key = jax.random.PRNGKey(0)
    kx, kparam = jax.random.split(key)

    B, N, K = 2, 16, 8                      # batch, points, neighbors
    x = jax.random.normal(kx, (B, 6, N, K), jnp.float32)   # PyTorch NCHW input
    params = init_params(kparam)
    kparams = prepare_kernel_params(params)

    fwd = jax.jit(transform_net_forward)
    out, feat = fwd(x, kparams)
    jax.block_until_ready(out)

    ref_out, ref_feat = reference_forward(x, params)
    assert out.shape == (B, 3, 3)
    assert feat.shape == (B, 256)
    # transform head is exact (zero weight, identity bias); feat tolerance
    # loosened for the bf16 conv2/conv3 matmuls (f32 accumulation).
    assert jnp.allclose(out, ref_out, atol=1e-4, rtol=1e-4)
    assert jnp.allclose(feat, ref_feat, atol=3e-2, rtol=3e-2)

    print("KERNEL_OK")
</pallas_src>

<mosaic_0001>
module attributes {stable_mosaic.version = 11 : i64} {
  func.func @transform_net_stage_a_kernel(%arg0: i32, %arg1: i32, %arg2: memref<1x8x128xf32, #tpu.memory_space<vmem>>, %arg3: memref<8x64xf32, #tpu.memory_space<vmem>>, %arg4: memref<1x64xf32, #tpu.memory_space<vmem>>, %arg5: memref<64x128xbf16, #tpu.memory_space<vmem>>, %arg6: memref<1x128xf32, #tpu.memory_space<vmem>>, %arg7: memref<128x1024xbf16, #tpu.memory_space<vmem>>, %arg8: memref<1x1024xf32, #tpu.memory_space<vmem>>, %arg9: memref<1x1x1024xf32, #tpu.memory_space<vmem>>) attributes {dimension_semantics = [#tpu.dimension_semantics<parallel>, #tpu.dimension_semantics<arbitrary>], iteration_bounds = array<i64: 2, 1>, scalar_prefetch = 0 : i64, scratch_operands = 0 : i64, tpu.core_type = #tpu.core_type<tc>, window_params = [{transform_indices = @transform_0, window_bounds = array<i64: 1, 8, 128>}, {pipeline_mode = #tpu.pipeline_mode<synchronous>, transform_indices = @transform_1, window_bounds = array<i64: 8, 64>}, {pipeline_mode = #tpu.pipeline_mode<synchronous>, transform_indices = @transform_2, window_bounds = array<i64: 1, 64>}, {pipeline_mode = #tpu.pipeline_mode<synchronous>, transform_indices = @transform_3, window_bounds = array<i64: 64, 128>}, {pipeline_mode = #tpu.pipeline_mode<synchronous>, transform_indices = @transform_4, window_bounds = array<i64: 1, 128>}, {pipeline_mode = #tpu.pipeline_mode<synchronous>, transform_indices = @transform_5, window_bounds = array<i64: 128, 1024>}, {pipeline_mode = #tpu.pipeline_mode<synchronous>, transform_indices = @transform_6, window_bounds = array<i64: 1, 1024>}, {transform_indices = @transform_7, window_bounds = array<i64: 1, 1, 1024>}]} {
    %c0 = arith.constant 0 : index
    %c0_0 = arith.constant 0 : index
    %c0_1 = arith.constant 0 : index
    %0 = vector.load %arg2[%c0, %c0_0, %c0_1] : memref<1x8x128xf32, #tpu.memory_space<vmem>>, vector<1x8x128xf32>
    %1 = vector.shape_cast %0 : vector<1x8x128xf32> to vector<8x128xf32>
    %c0_2 = arith.constant 0 : index
    %c0_3 = arith.constant 0 : index
    %2 = vector.load %arg3[%c0_2, %c0_3] : memref<8x64xf32, #tpu.memory_space<vmem>>, vector<8x64xf32>
    %cst = arith.constant dense<0.000000e+00> : vector<128x64xf32>
    %3 = tpu.matmul %1, %2, %cst {dimension_numbers = #tpu.dot_dimension_numbers<[0], [0], [1], [1], [0, 1, 1, 1], [], []>} : vector<8x128xf32>, vector<8x64xf32>, vector<128x64xf32> -> vector<128x64xf32>
    %c0_4 = arith.constant 0 : index
    %c0_5 = arith.constant 0 : index
    %4 = vector.load %arg4[%c0_4, %c0_5] : memref<1x64xf32, #tpu.memory_space<vmem>>, vector<1x64xf32>
    %5 = vector.broadcast %4 : vector<1x64xf32> to vector<128x64xf32>
    %6 = arith.addf %3, %5 : vector<128x64xf32>
    %cst_6 = arith.constant 2.000000e-01 : f32
    %7 = vector.broadcast %cst_6 : f32 to vector<128x64xf32>
    %8 = arith.mulf %7, %6 : vector<128x64xf32>
    %9 = arith.maximumf %6, %8 : vector<128x64xf32>
    %10 = arith.truncf %9 : vector<128x64xf32> to vector<128x64xbf16>
    %c0_7 = arith.constant 0 : index
    %c0_8 = arith.constant 0 : index
    %11 = vector.load %arg5[%c0_7, %c0_8] : memref<64x128xbf16, #tpu.memory_space<vmem>>, vector<64x128xbf16>
    %cst_9 = arith.constant dense<0.000000e+00> : vector<128x128xf32>
    %12 = tpu.matmul %10, %11, %cst_9 {dimension_numbers = #tpu.dot_dimension_numbers<[1], [0], [0], [1], [0, 0, 1, 1], [], []>} : vector<128x64xbf16>, vector<64x128xbf16>, vector<128x128xf32> -> vector<128x128xf32>
    %c0_10 = arith.constant 0 : index
    %c0_11 = arith.constant 0 : index
    %13 = vector.load %arg6[%c0_10, %c0_11] : memref<1x128xf32, #tpu.memory_space<vmem>>, vector<1x128xf32>
    %14 = vector.broadcast %13 : vector<1x128xf32> to vector<128x128xf32>
    %15 = arith.addf %12, %14 : vector<128x128xf32>
    %cst_12 = arith.constant 2.000000e-01 : f32
    %16 = vector.broadcast %cst_12 : f32 to vector<128x128xf32>
    %17 = arith.mulf %16, %15 : vector<128x128xf32>
    %18 = arith.maximumf %15, %17 : vector<128x128xf32>
    %19 = vector.shape_cast %18 : vector<128x128xf32> to vector<16x8x128xf32>
    %cst_13 = arith.constant dense<0xFF800000> : vector<16x128xf32>
    %20 = vector.multi_reduction <maximumf>, %19, %cst_13 [1] : vector<16x8x128xf32> to vector<16x128xf32>
    %21 = arith.truncf %20 : vector<16x128xf32> to vector<16x128xbf16>
    %c0_14 = arith.constant 0 : index
    %c0_15 = arith.constant 0 : index
    %22 = vector.load %arg7[%c0_14, %c0_15] : memref<128x1024xbf16, #tpu.memory_space<vmem>>, vector<128x1024xbf16>
    %cst_16 = arith.constant dense<0.000000e+00> : vector<16x1024xf32>
    %23 = tpu.matmul %21, %22, %cst_16 {dimension_numbers = #tpu.dot_dimension_numbers<[1], [0], [0], [1], [0, 0, 1, 1], [], []>} : vector<16x128xbf16>, vector<128x1024xbf16>, vector<16x1024xf32> -> vector<16x1024xf32>
    %c0_17 = arith.constant 0 : index
    %c0_18 = arith.constant 0 : index
    %24 = vector.load %arg8[%c0_17, %c0_18] : memref<1x1024xf32, #tpu.memory_space<vmem>>, vector<1x1024xf32>
    %25 = vector.broadcast %24 : vector<1x1024xf32> to vector<16x1024xf32>
    %26 = arith.addf %23, %25 : vector<16x1024xf32>
    %cst_19 = arith.constant 2.000000e-01 : f32
    %27 = vector.broadcast %cst_19 : f32 to vector<16x1024xf32>
    %28 = arith.mulf %27, %26 : vector<16x1024xf32>
    %29 = arith.maximumf %26, %28 : vector<16x1024xf32>
    %cst_20 = arith.constant dense<0xFF800000> : vector<1024xf32>
    %30 = vector.multi_reduction <maximumf>, %29, %cst_20 [0] : vector<16x1024xf32> to vector<1024xf32>
    %31 = vector.shape_cast %30 : vector<1024xf32> to vector<1x1024xf32>
    %c0_i32 = arith.constant 0 : i32
    %32 = arith.cmpi eq, %arg1, %c0_i32 : i32
    %33 = arith.extui %32 : i1 to i32
    %c0_i32_21 = arith.constant 0 : i32
    %34 = arith.cmpi ne, %33, %c0_i32_21 : i32
    scf.if %34 {
      %c0_24 = arith.constant 0 : index
      %c0_25 = arith.constant 0 : index
      %c0_26 = arith.constant 0 : index
      %38 = vector.load %arg9[%c0_24, %c0_25, %c0_26] : memref<1x1x1024xf32, #tpu.memory_space<vmem>>, vector<1x1x1024xf32>
      %39 = vector.shape_cast %38 : vector<1x1x1024xf32> to vector<1x1024xf32>
      %40 = vector.shape_cast %31 : vector<1x1024xf32> to vector<1x1x1024xf32>
      tpu.vector_store %arg9[%c0_24, %c0_25, %c0_26], %40 {strides = array<i32>} : memref<1x1x1024xf32, #tpu.memory_space<vmem>>, vector<1x1x1024xf32>,
    } else {
    }
    %c0_i32_22 = arith.constant 0 : i32
    %35 = arith.cmpi sgt, %arg1, %c0_i32_22 : i32
    %36 = arith.extui %35 : i1 to i32
    %c0_i32_23 = arith.constant 0 : i32
    %37 = arith.cmpi ne, %36, %c0_i32_23 : i32
    scf.if %37 {
      %c0_24 = arith.constant 0 : index
      %c0_25 = arith.constant 0 : index
      %c0_26 = arith.constant 0 : index
      %38 = vector.load %arg9[%c0_24, %c0_25, %c0_26] : memref<1x1x1024xf32, #tpu.memory_space<vmem>>, vector<1x1x1024xf32>
      %39 = vector.shape_cast %38 : vector<1x1x1024xf32> to vector<1x1024xf32>
      %40 = arith.maximumf %39, %31 : vector<1x1024xf32>
      %c0_27 = arith.constant 0 : index
      %c0_28 = arith.constant 0 : index
      %c0_29 = arith.constant 0 : index
      %41 = vector.load %arg9[%c0_27, %c0_28, %c0_29] : memref<1x1x1024xf32, #tpu.memory_space<vmem>>, vector<1x1x1024xf32>
      %42 = vector.shape_cast %41 : vector<1x1x1024xf32> to vector<1x1024xf32>
      %43 = vector.shape_cast %40 : vector<1x1024xf32> to vector<1x1x1024xf32>
      tpu.vector_store %arg9[%c0_27, %c0_28, %c0_29], %43 {strides = array<i32>} : memref<1x1x1024xf32, #tpu.memory_space<vmem>>, vector<1x1x1024xf32>,
    } else {
    }
    return
  }
  func.func @transform_0(%arg0: i32, %arg1: i32) -> (i32, i32, i32) {
    %c0_i32 = arith.constant 0 : i32
    %c0_i32_0 = arith.constant 0 : i32
    return %arg0, %c0_i32, %arg1 : i32, i32, i32
  }
  func.func @transform_1(%arg0: i32, %arg1: i32) -> (i32, i32) {
    %c0_i32 = arith.constant 0 : i32
    %c0_i32_0 = arith.constant 0 : i32
    %c0_i32_1 = arith.constant 0 : i32
    return %c0_i32, %c0_i32_0 : i32, i32
  }
  func.func @transform_2(%arg0: i32, %arg1: i32) -> (i32, i32) {
    %c0_i32 = arith.constant 0 : i32
    %c0_i32_0 = arith.constant 0 : i32
    %c0_i32_1 = arith.constant 0 : i32
    return %c0_i32, %c0_i32_0 : i32, i32
  }
  func.func @transform_3(%arg0: i32, %arg1: i32) -> (i32, i32) {
    %c0_i32 = arith.constant 0 : i32
    %c0_i32_0 = arith.constant 0 : i32
    %c0_i32_1 = arith.constant 0 : i32
    return %c0_i32, %c0_i32_0 : i32, i32
  }
  func.func @transform_4(%arg0: i32, %arg1: i32) -> (i32, i32) {
    %c0_i32 = arith.constant 0 : i32
    %c0_i32_0 = arith.constant 0 : i32
    %c0_i32_1 = arith.constant 0 : i32
    return %c0_i32, %c0_i32_0 : i32, i32
  }
  func.func @transform_5(%arg0: i32, %arg1: i32) -> (i32, i32) {
    %c0_i32 = arith.constant 0 : i32
    %c0_i32_0 = arith.constant 0 : i32
    %c0_i32_1 = arith.constant 0 : i32
    return %c0_i32, %c0_i32_0 : i32, i32
  }
  func.func @transform_6(%arg0: i32, %arg1: i32) -> (i32, i32) {
    %c0_i32 = arith.constant 0 : i32
    %c0_i32_0 = arith.constant 0 : i32
    %c0_i32_1 = arith.constant 0 : i32
    return %c0_i32, %c0_i32_0 : i32, i32
  }
  func.func @transform_7(%arg0: i32, %arg1: i32) -> (i32, i32, i32) {
    %c0_i32 = arith.constant 0 : i32
    %c0_i32_0 = arith.constant 0 : i32
    %c0_i32_1 = arith.constant 0 : i32
    return %arg0, %c0_i32, %c0_i32_0 : i32, i32, i32
  }
}

module attributes {stable_mosaic.version = 11 : i64} {
  func.func @transform_net_head_kernel(%arg0: memref<2x1024xf32, #tpu.memory_space<vmem>>, %arg1: memref<1024x512xf32, #tpu.memory_space<vmem>>, %arg2: memref<1x512xf32, #tpu.memory_space<vmem>>, %arg3: memref<512x256xf32, #tpu.memory_space<vmem>>, %arg4: memref<1x256xf32, #tpu.memory_space<vmem>>, %arg5: memref<256x128xf32, #tpu.memory_space<vmem>>, %arg6: memref<1x128xf32, #tpu.memory_space<vmem>>, %arg7: memref<2x256xf32, #tpu.memory_space<vmem>>, %arg8: memref<2x128xf32, #tpu.memory_space<vmem>>) attributes {dimension_semantics = [], scalar_prefetch = 0 : i64, scratch_operands = 0 : i64, tpu.core_type = #tpu.core_type<tc>} {
    %c0 = arith.constant 0 : index
    %c0_0 = arith.constant 0 : index
    %0 = vector.load %arg0[%c0, %c0_0] : memref<2x1024xf32, #tpu.memory_space<vmem>>, vector<2x1024xf32>
    %c0_1 = arith.constant 0 : index
    %c0_2 = arith.constant 0 : index
    %1 = vector.load %arg1[%c0_1, %c0_2] : memref<1024x512xf32, #tpu.memory_space<vmem>>, vector<1024x512xf32>
    %cst = arith.constant dense<0.000000e+00> : vector<2x512xf32>
    %2 = tpu.matmul %0, %1, %cst {dimension_numbers = #tpu.dot_dimension_numbers<[1], [0], [0], [1], [0, 0, 1, 1], [], []>} : vector<2x1024xf32>, vector<1024x512xf32>, vector<2x512xf32> -> vector<2x512xf32>
    %c0_3 = arith.constant 0 : index
    %c0_4 = arith.constant 0 : index
    %3 = vector.load %arg2[%c0_3, %c0_4] : memref<1x512xf32, #tpu.memory_space<vmem>>, vector<1x512xf32>
    %4 = vector.broadcast %3 : vector<1x512xf32> to vector<2x512xf32>
    %5 = arith.addf %2, %4 : vector<2x512xf32>
    %cst_5 = arith.constant 2.000000e-01 : f32
    %6 = vector.broadcast %cst_5 : f32 to vector<2x512xf32>
    %7 = arith.mulf %6, %5 : vector<2x512xf32>
    %8 = arith.maximumf %5, %7 : vector<2x512xf32>
    %c0_6 = arith.constant 0 : index
    %c0_7 = arith.constant 0 : index
    %9 = vector.load %arg3[%c0_6, %c0_7] : memref<512x256xf32, #tpu.memory_space<vmem>>, vector<512x256xf32>
    %cst_8 = arith.constant dense<0.000000e+00> : vector<2x256xf32>
    %10 = tpu.matmul %8, %9, %cst_8 {dimension_numbers = #tpu.dot_dimension_numbers<[1], [0], [0], [1], [0, 0, 1, 1], [], []>} : vector<2x512xf32>, vector<512x256xf32>, vector<2x256xf32> -> vector<2x256xf32>
    %c0_9 = arith.constant 0 : index
    %c0_10 = arith.constant 0 : index
    %11 = vector.load %arg4[%c0_9, %c0_10] : memref<1x256xf32, #tpu.memory_space<vmem>>, vector<1x256xf32>
    %12 = vector.broadcast %11 : vector<1x256xf32> to vector<2x256xf32>
    %13 = arith.addf %10, %12 : vector<2x256xf32>
    %cst_11 = arith.constant 2.000000e-01 : f32
    %14 = vector.broadcast %cst_11 : f32 to vector<2x256xf32>
    %15 = arith.mulf %14, %13 : vector<2x256xf32>
    %16 = arith.maximumf %13, %15 : vector<2x256xf32>
    %c0_12 = arith.constant 0 : index
    %c0_13 = arith.constant 0 : index
    %17 = vector.load %arg7[%c0_12, %c0_13] : memref<2x256xf32, #tpu.memory_space<vmem>>, vector<2x256xf32>
    tpu.vector_store %arg7[%c0_12, %c0_13], %16 {strides = array<i32>} : memref<2x256xf32, #tpu.memory_space<vmem>>, vector<2x256xf32>,
    %c0_14 = arith.constant 0 : index
    %c0_15 = arith.constant 0 : index
    %18 = vector.load %arg5[%c0_14, %c0_15] : memref<256x128xf32, #tpu.memory_space<vmem>>, vector<256x128xf32>
    %cst_16 = arith.constant dense<0.000000e+00> : vector<2x128xf32>
    %19 = tpu.matmul %16, %18, %cst_16 {dimension_numbers = #tpu.dot_dimension_numbers<[1], [0], [0], [1], [0, 0, 1, 1], [], []>} : vector<2x256xf32>, vector<256x128xf32>, vector<2x128xf32> -> vector<2x128xf32>
    %c0_17 = arith.constant 0 : index
    %c0_18 = arith.constant 0 : index
    %20 = vector.load %arg6[%c0_17, %c0_18] : memref<1x128xf32, #tpu.memory_space<vmem>>, vector<1x128xf32>
    %21 = vector.broadcast %20 : vector<1x128xf32> to vector<2x128xf32>
    %22 = arith.addf %19, %21 : vector<2x128xf32>
    %c0_19 = arith.constant 0 : index
    %c0_20 = arith.constant 0 : index
    %23 = vector.load %arg8[%c0_19, %c0_20] : memref<2x128xf32, #tpu.memory_space<vmem>>, vector<2x128xf32>
    tpu.vector_store %arg8[%c0_19, %c0_20], %22 {strides = array<i32>} : memref<2x128xf32, #tpu.memory_space<vmem>>, vector<2x128xf32>,
    return
  }
}

</mosaic_0001>

<bundles_post_ra>
// kernel: transform_net_forward.2
= control target key start
LH: loop header
LB: loop body
LE: loop exit
PB: predicated region body
PF: predicated region fallthrough
CT: control target
= control target key end

     0   :  { %s3150_s0 = inlined_call_operand.hbm [shape: f32[2,8,128], index: 0, kind: input, shape index: {}]   ;;  %s3151_s1 = inlined_call_operand.hbm [shape: f32[8,64], index: 1, kind: input, shape index: {}]   ;;  %s3152_s2 = inlined_call_operand.hbm [shape: f32[1,64], index: 2, kind: input, shape index: {}]   ;;  %s3153_s3 = inlined_call_operand.hbm [shape: bf16[64,128], index: 3, kind: input, shape index: {}]   ;;  %s3154_s4 = inlined_call_operand.hbm [shape: f32[1,128], index: 4, kind: input, shape index: {}]   ;;  %s3155_s5 = inlined_call_operand.hbm [shape: bf16[128,1024], index: 5, kind: input, shape index: {}]   ;;  %s3156_s6 = inlined_call_operand.hbm [shape: f32[1,1024], index: 6, kind: input, shape index: {}]   ;;  %s3157_s7 = inlined_call_operand.hbm [shape: f32[2,1,1024], index: 7, kind: output, shape index: {}]  }
   0x1   :  { %3164 = sst [smem:[#allocation20_spill]] %s3151_s1 }
   0x2   :  { %3165 = sst [smem:[#allocation21_spill]] %s3153_s3 }
   0x3   :  { %3166 = sst [smem:[#allocation22_spill]] %s3157_s7 }
   0x4   :  { %12 = vsyncpa [#allocation3], 0 }
   0x5   :  { %14 = vsyncpa [#allocation3 + $0x1], 0 }
   0x6   :  { %15 = vsyncpa [#allocation6], 0 }
   0x7   :  { %16 = vsyncpa [#allocation9], 0 }
   0x8   :  { %17 = vsyncpa [#allocation12], 0 }
   0x9   :  { %18 = vsyncpa [#allocation4], 0 }
   0xa   :  { %20 = vsyncpa [#allocation4 + $0x1], 0  ;;  %s2671_s24 = smov 0   ;;  %s2673_s25 = smov 0  }
   0xb   :  { %s2675_s26 = smov 0   ;;  %s2677_s27 = smov 0  }
   0xc   :  { %s2679_s28 = smov 0   ;;  %s2681_s29 = smov 0  }
   0xd LB: > { %s3161_s30 = sadd.s32 4294967295, %s2615_s29   ;;  %p1991_p0 = scmp.ge.s32.totalorder %s2615_s29, 1  ;;  %s2615_s29 = sphi %s2681_s29, %s26_s29   ;;  %s2611_s28 = sphi %s2679_s28, %s3190_s28   ;;  %s2607_s27 = sphi %s2677_s27, %s3189_s27   ;;  %s2603_s26 = sphi %s2675_s26, %s3188_s26   ;;  %s2599_s25 = sphi %s2673_s25, %s3187_s25   ;;  %s2595_s24 = sphi %s2671_s24, %s3186_s24  }
   0xe   : > { %p2705_p1 = scmp.eq.s32.totalorder %s3161_s30, 0  ;;  %p223_p2 = scmp.lt.s32.totalorder %s2615_s29, 3 }
   0xf   : > { %s2617_s10 = smov [#allocation5]   ;;  %s2618_s12 = smov [#allocation8]  }
  0x10   : > { %s3167_s8 = scalar_select %p2705_p1, 1, 0 }
  0x11   : > { %p2710_p3 = pnand %p1991_p0, %p223_p2  ;;  %s236_s11 = sshll.u32 %s2617_s10, 4  ;;  %s237_s11 = int_to_ptr.vmem [resolvable:$true] %s236_s11 }
  0x12   : > { %s257_s13 = sshll.u32 %s2618_s12, 4  ;;  %s2619_s15 = smov [#allocation11]   ;;  %s2723_s13 = int_to_ptr.vmem [resolvable:$true] %s257_s13 }
  0x13   : > { %s3168_s9 = scalar_select %p2710_p3, 1, 0 }
  0x14   : > { %p2217_p5 = pneg %p2710_p3  ;;  %s2725_s16 = sshll.u32 %s2619_s15, 4  ;;  %s282_s16 = int_to_ptr.vmem [resolvable:$true] %s2725_s16 }
  0x15   : > { %s3170_s1 = sld [smem:[#allocation20_spill]] }
  0x16   : > { %p2719_p6 = pnand %p2217_p5, %p2705_p1 }
  0x18   : > { %p2735_p8 = pneg %p2719_p6 }
  0x1b   : > { %s2323_s19 = scalar_lea.hbm %s3170_s1, 128 }
  0x1c   : > { %p2324_p7 = scmp.ne.s32.totalorder %s3170_s1, %s2323_s19  ;;  %p2330_p11 = scmp.lt.u32.totalorder %s2323_s19, %s3170_s1 }
  0x1e   : > { %p2326_p9 = pnand %p2735_p8, %p2324_p7 }
  0x20   : > { %p2327_p10 = pneg %p2326_p9 }
  0x22   : > { %p2332_p12 = pnand %p2330_p11, %p2327_p10 }
  0x24   : > { %2335 = shalt.err (!%p2332_p12)
}
  0x25   : > { %s2336_s12 = scalar_lea.vmem %s237_s11, 128  ;;  %p2344_p5 = scmp.lt.s32.totalorder %s237_s11, %s237_s11 }
  0x26   : > { %p2337_p13 = scmp.ne.s32.totalorder %s237_s11, %s2336_s12  ;;  %p2345_p4 = scmp.lt.s32.totalorder %s2336_s12, %s2336_s12 }
  0x28   : > { %p2339_p0 = pnand %p2337_p13, %p2735_p8  ;;  %p2346_p3 = por %p2345_p4, %p2344_p5 }
  0x2a   : > { %p2340_p2 = pneg %p2339_p0 }
  0x2c   : > { %p2347_p1 = pnand %p2346_p3, %p2340_p2 }
  0x2e   : > { %2350 = shalt.err (!%p2347_p1)
}
  0x2f   : > { %2220 = dma.hbm_to_vmem [thread:$0]  (!%p2719_p6), %s3170_s1, 128, %s237_s11, [#allocation6]  }
  0x30   : > { %s3172_s3 = sld [smem:[#allocation21_spill]] }
  0x36   : > { %s2351_s20 = scalar_lea.hbm %s3172_s3, 512 }
  0x37   : > { %p2352_p7 = scmp.ne.s32.totalorder %s3172_s3, %s2351_s20  ;;  %p2358_p1 = scmp.lt.u32.totalorder %s2351_s20, %s3172_s3 }
  0x39   : > { %p2354_p9 = pnand %p2352_p7, %p2735_p8 }
  0x3b   : > { %p2355_p4 = pneg %p2354_p9 }
  0x3d   : > { %p2360_p3 = pnand %p2358_p1, %p2355_p4 }
  0x3f   : > { %2363 = shalt.err (!%p2360_p3)
}
  0x40   : > { %s2364_s11 = scalar_lea.vmem %s2723_s13, 512  ;;  %p2372_p13 = scmp.lt.s32.totalorder %s2723_s13, %s2723_s13 }
  0x41   : > { %p2365_p10 = scmp.ne.s32.totalorder %s2723_s13, %s2364_s11  ;;  %p2373_p0 = scmp.lt.s32.totalorder %s2364_s11, %s2364_s11 }
  0x43   : > { %p2367_p11 = pnand %p2365_p10, %p2735_p8  ;;  %p2374_p2 = por %p2373_p0, %p2372_p13 }
  0x45   : > { %p2368_p12 = pneg %p2367_p11 }
  0x47   : > { %p2375_p5 = pnand %p2374_p2, %p2368_p12 }
  0x49   : > { %2378 = shalt.err (!%p2375_p5)
}
  0x4a   : > { %s2620_s15 = smov 64   ;;  %s2621_s17 = smov 4  }
  0x4b   : > { %2226 = dma.hbm_to_vmem [thread:$0]  (!%p2719_p6), %s3172_s3, 512, %s2723_s13, [#allocation9], %s2620_s15, %s2620_s15, %s2621_s17  }
  0x4c   : > { %s2379_s23 = scalar_lea.hbm %s3155_s5, 8192 }
  0x4d   : > { %p2380_p7 = scmp.ne.s32.totalorder %s3155_s5, %s2379_s23  ;;  %p2386_p1 = scmp.lt.u32.totalorder %s2379_s23, %s3155_s5 }
  0x4f   : > { %p2382_p9 = pnand %p2380_p7, %p2735_p8 }
  0x51   : > { %p2383_p4 = pneg %p2382_p9 }
  0x53   : > { %p2388_p3 = pnand %p2386_p1, %p2383_p4 }
  0x55   : > { %2391 = shalt.err (!%p2388_p3)
}
  0x56   : > { %s2392_s18 = scalar_lea.vmem %s282_s16, 8192  ;;  %p2400_p13 = scmp.lt.s32.totalorder %s282_s16, %s282_s16 }
  0x57   : > { %p2393_p10 = scmp.ne.s32.totalorder %s282_s16, %s2392_s18  ;;  %p2401_p0 = scmp.lt.s32.totalorder %s2392_s18, %s2392_s18 }
  0x59   : > { %p2395_p11 = pnand %p2393_p10, %p2735_p8  ;;  %p2402_p2 = por %p2401_p0, %p2400_p13 }
  0x5b   : > { %p2396_p12 = pneg %p2395_p11 }
  0x5d   : > { %p2403_p5 = pnand %p2402_p2, %p2396_p12 }
  0x5f   : > { %2406 = shalt.err (!%p2403_p5)
}
  0x60   : > { %s2622_s13 = smov 512   ;;  %s2623_s15 = smov 32  }
  0x61   : > { %2232 = dma.hbm_to_vmem [thread:$0]  (!%p2719_p6), %s3155_s5, 8192, %s282_s16, [#allocation12], %s2622_s13, %s2622_s13, %s2623_s15  }
  0x62   : > { %s2624_s19 = smov [#allocation7]   ;;  %s2625_s21 = smov [#allocation10]  }
  0x63   : > { %s247_s20 = sshll.u32 %s2624_s19, 4  ;;  %s271_s23 = sshll.u32 %s2625_s21, 4  ;;  %s248_s20 = int_to_ptr.vmem [resolvable:$true] %s247_s20  ;;  %s272_s23 = int_to_ptr.vmem [resolvable:$true] %s271_s23 }
  0x64   : > { %s2407_s11 = scalar_lea.hbm %s3152_s2, 16 }
  0x65   : > { %p2408_p7 = scmp.ne.s32.totalorder %s3152_s2, %s2407_s11  ;;  %p2414_p1 = scmp.lt.u32.totalorder %s2407_s11, %s3152_s2 }
  0x67   : > { %p2410_p9 = pnand %p2408_p7, %p2735_p8 }
  0x69   : > { %p2411_p4 = pneg %p2410_p9 }
  0x6b   : > { %p2416_p3 = pnand %p2414_p1, %p2411_p4 }
  0x6d   : > { %2419 = shalt.err (!%p2416_p3)
}
  0x6e   : > { %s2420_s16 = scalar_lea.vmem %s248_s20, 16  ;;  %s2427_s13 = scalar_lea.vmem %s248_s20, 32 }
  0x6f   : > { %p2421_p10 = scmp.ne.s32.totalorder %s248_s20, %s2420_s16  ;;  %p2428_p13 = scmp.lt.s32.totalorder %s248_s20, %s248_s20 }
  0x70   : > { %p2429_p0 = scmp.lt.s32.totalorder %s2427_s13, %s2420_s16 }
  0x71   : > { %p2423_p11 = pnand %p2421_p10, %p2735_p8 }
  0x72   : > { %p2430_p2 = por %p2429_p0, %p2428_p13 }
  0x73   : > { %p2424_p12 = pneg %p2423_p11 }
  0x75   : > { %p2431_p5 = pnand %p2430_p2, %p2424_p12 }
  0x77   : > { %2434 = shalt.err (!%p2431_p5)
}
  0x78   : > { %2223 = dma.hbm_to_vmem [thread:$0]  (!%p2719_p6), %s3152_s2, 16, %s248_s20, [#allocation6]  }
  0x79   : > { %s2435_s30 = scalar_lea.hbm %s3154_s4, 16 }
  0x7a   : > { %p2436_p7 = scmp.ne.s32.totalorder %s3154_s4, %s2435_s30  ;;  %p2442_p1 = scmp.lt.u32.totalorder %s2435_s30, %s3154_s4 }
  0x7c   : > { %p2438_p9 = pnand %p2436_p7, %p2735_p8 }
  0x7e   : > { %p2439_p4 = pneg %p2438_p9 }
  0x80   : > { %p2444_p3 = pnand %p2442_p1, %p2439_p4 }
  0x82   : > { %2447 = shalt.err (!%p2444_p3)
}
  0x83   : > { %s2448_s12 = scalar_lea.vmem %s272_s23, 16  ;;  %s2455_s20 = scalar_lea.vmem %s272_s23, 32 }
  0x84   : > { %p2449_p10 = scmp.ne.s32.totalorder %s272_s23, %s2448_s12  ;;  %p2456_p13 = scmp.lt.s32.totalorder %s272_s23, %s272_s23 }
  0x85   : > { %p2457_p0 = scmp.lt.s32.totalorder %s2455_s20, %s2448_s12 }
  0x86   : > { %p2451_p11 = pnand %p2449_p10, %p2735_p8 }
  0x87   : > { %p2458_p2 = por %p2457_p0, %p2456_p13 }
  0x88   : > { %p2452_p12 = pneg %p2451_p11 }
  0x8a   : > { %p2459_p5 = pnand %p2458_p2, %p2452_p12 }
  0x8c   : > { %2462 = shalt.err (!%p2459_p5)
}
  0x8d   : > { %2229 = dma.hbm_to_vmem [thread:$0]  (!%p2719_p6), %s3154_s4, 16, %s272_s23, [#allocation9]  }
  0x8e   : > { %s2626_s16 = smov [#allocation13]   ;;  %s2463_s3 = scalar_lea.hbm %s3156_s6, 128 }
  0x8f   : > { %s295_s13 = sshll.u32 %s2626_s16, 4  ;;  %p2464_p7 = scmp.ne.s32.totalorder %s3156_s6, %s2463_s3  ;;  %s296_s13 = int_to_ptr.vmem [resolvable:$true] %s295_s13 }
  0x90   : > { %p2470_p1 = scmp.lt.u32.totalorder %s2463_s3, %s3156_s6 }
  0x91   : > { %p2466_p9 = pnand %p2464_p7, %p2735_p8 }
  0x93   : > { %p2467_p4 = pneg %p2466_p9 }
  0x95   : > { %p2472_p3 = pnand %p2470_p1, %p2467_p4 }
  0x97   : > { %2475 = shalt.err (!%p2472_p3)
}
  0x98   : > { %s2476_s23 = scalar_lea.vmem %s296_s13, 128  ;;  %p2484_p13 = scmp.lt.s32.totalorder %s296_s13, %s296_s13 }
  0x99   : > { %p2477_p10 = scmp.ne.s32.totalorder %s296_s13, %s2476_s23  ;;  %p2485_p0 = scmp.lt.s32.totalorder %s2476_s23, %s2476_s23 }
  0x9b   : > { %p2479_p11 = pnand %p2477_p10, %p2735_p8  ;;  %p2486_p2 = por %p2485_p0, %p2484_p13 }
  0x9d   : > { %p2480_p12 = pneg %p2479_p11 }
  0x9f   : > { %p2487_p5 = pnand %p2486_p2, %p2480_p12 }
  0xa1   : > { %2490 = shalt.err (!%p2487_p5)
}
  0xa2   : > { %2235 = dma.hbm_to_vmem [thread:$0]  (!%p2719_p6), %s3156_s6, 128, %s296_s13, [#allocation12]  }
  0xa3   : > { %s1990_s22 = sadd.s32 4294967294, %s2615_s29   ;;  %s38_s12 = sadd.s32 1, %s2611_s28 }
  0xa4   : > { %p40_p8 = scmp.ge.s32.totalorder %s38_s12, 2  ;;  %s47_s14 = sadd.s32 1, %s2603_s26 }
  0xa5   : > { %p54_p7 = scmp.ne.s32.totalorder %s2603_s26, %s2599_s25  ;;  %p55_p9 = scmp.eq.s32.totalorder %s2615_s29, 0 }
  0xa6   : > { %s3192_s12 = smov (%p40_p8, %s38_s12), 0  ;;  %p60_p1 = scmp.ne.s32.totalorder %s2599_s25, %s2595_s24 }
  0xa7   : > { %p2855_p4 = por %p55_p9, %p54_p7  ;;  %s42_s11 = ssub.s32 %s2611_s28, %s3192_s12 }
  0xa8   : > { %s3174_s18 = sadd.s32 4294967295, %s2615_s29   ;;  %p45_p3 = scmp.eq.s32.totalorder %s42_s11, 0 }
  0xa9   : > { %p210_p6 = scmp.eq.s32.totalorder %s3174_s18, 1  ;;  %p3175_p10 = scmp.ne.s32.totalorder %s3167_s8, 0 }
  0xaa   : > { %p216_p13 = scmp.eq.s32.totalorder %s1990_s22, 1  ;;  %p2250_p2 = scmp.lt.s32.totalorder %s2615_s29, 2 }
  0xab   : > { %p2867_p11 = por %p3175_p10, %p60_p1  ;;  %p2871_p12 = por %p210_p6, %p54_p7 }
  0xac   : > { %s2876_s1 = scalar_select %p45_p3, %s2603_s26, %s47_s14  }
  0xad   : > { %s3177_s13 = scalar_select %p2871_p12, 1, 0 }
  0xae   : > { %p2878_p0 = por %p216_p13, %p60_p1  ;;  %s306_s3 = sand.u32 1, %s2603_s26  }
  0xaf   : > { %s2000_s7 = sshll.u32 %s2611_s28, 7  ;;  %s1999_s30 = sshll.u32 %s306_s3, 3 }
  0xb0   : > { %s3178_s15 = scalar_select %p2878_p0, 1, 0 }
  0xb1   : > { %s2888_s23 = scalar_lea.hbm %s3150_s0, %s2000_s7  ;;  %s310_s21 = scalar_lea.vmem [#allocation2], %s1999_s30 }
  0xb2   : > { %s318_s10 = sshll.u32 %s310_s21, 4  ;;  %p2892_p5 = pnand %p2250_p2, %p2855_p4  ;;  %s2896_s10 = int_to_ptr.vmem [resolvable:$true] %s318_s10 }
  0xb3   : > { %s307_s14 = scalar_lea.sflag [#allocation3], %s306_s3  ;;  %s2491_s11 = scalar_lea.hbm %s2888_s23, 128 }
  0xb4   : > { %p2492_p8 = scmp.ne.s32.totalorder %s2888_s23, %s2491_s11  ;;  %p2493_p7 = pneg %p2892_p5 }
  0xb5   : > { %s2496_s20 = scalar_lea.hbm %s3150_s0, 256  ;;  %p2497_p4 = scmp.lt.u32.totalorder %s2888_s23, %s3150_s0 }
  0xb6   : > { %p2494_p9 = pnand %p2493_p7, %p2492_p8  ;;  %p2498_p6 = scmp.lt.u32.totalorder %s2496_s20, %s2491_s11 }
  0xb7   : > { %p2500_p10 = scmp.lt.u32.totalorder %s2491_s11, %s2888_s23 }
  0xb8   : > { %p2495_p1 = pneg %p2494_p9  ;;  %p2499_p3 = por %p2498_p6, %p2497_p4 }
  0xba   : > { %p2501_p13 = por %p2500_p10, %p2499_p3 }
  0xbc   : > { %p2502_p2 = pnand %p2501_p13, %p2495_p1 }
  0xbe   : > { %2505 = shalt.err (!%p2502_p2)
}
  0xbf   : > { %s2506_s3 = scalar_lea.vmem %s2896_s10, 128  ;;  %s2627_s19 = smov [#allocation2]  }
  0xc0   : > { %p2507_p8 = scmp.ne.s32.totalorder %s2896_s10, %s2506_s3  ;;  %s2511_s21 = sshll.u32 %s2627_s19, 4  ;;  %s2512_s21 = int_to_ptr.vmem [resolvable:$false] %s2511_s21 }
  0xc1   : > { %s2513_s18 = scalar_lea.vmem %s2512_s21, 256  ;;  %p2514_p12 = scmp.lt.s32.totalorder %s2896_s10, %s2512_s21 }
  0xc2   : > { %p2509_p9 = pnand %p2507_p8, %p2493_p7  ;;  %p2515_p4 = scmp.lt.s32.totalorder %s2513_s18, %s2506_s3 }
  0xc4   : > { %p2510_p0 = pneg %p2509_p9  ;;  %p2516_p6 = por %p2515_p4, %p2514_p12 }
  0xc6   : > { %p2517_p3 = pnand %p2516_p6, %p2510_p0 }
  0xc8   : > { %2520 = shalt.err (!%p2517_p3)
}
  0xc9   : > { %2239 = dma.hbm_to_vmem [thread:$0]  (!%p2892_p5), %s2888_s23, 128, %s2896_s10, %s307_s14  }
  0xca   : > { %p3180_p1 = scmp.ne.s32.totalorder %s3168_s9, 0 }
  0xcb   : > { %s2926_s11 = sand.u32 (!%p3180_p1), 1, %s2599_s25  }
  0xcc   : > { %327 = sbr.rel (%p3180_p1) target bundleno = 1163 (0x48b), region = 48  ;;  %s2002_s7 = sshll.u32 (!%p3180_p1), %s2926_s11, 3 }
  0xcd   : > { %s330_s20 = scalar_lea.sflag (!%p3180_p1), [#allocation3], %s2926_s11  ;;  %s333_s30 = scalar_lea.vmem (!%p3180_p1), [#allocation2], %s2002_s7 }
  0xd3   : > { %2574 = dma.done.wait (%p2867_p11), %s330_s20, 128  }
  0xd4   : > { %2576 = vsyncadd (%p2867_p11), %s330_s20, 4294967168  ;;  %p3181_p12 = scmp.ne.s32.totalorder %s3167_s8, 0 }
  0xd6   : > { %2578 = dma.done.wait (%p3181_p12), [#allocation6], 144  }
  0xd7   : > { %2580 = vsyncadd (%p3181_p12), [#allocation6], 4294967152 }
  0xd8   : > { %2582 = dma.done.wait (%p3181_p12), [#allocation9], 528  }
  0xd9   : > { %2584 = vsyncadd (%p3181_p12), [#allocation9], 4294966768 }
  0xda   : > { %2586 = dma.done.wait (%p3181_p12), [#allocation12], 8320  }
  0xdb   : > { %2588 = vsyncadd (%p3181_p12), [#allocation12], 4294958976  ;;  %v389_v0 = vld [vmem:[%s333_s30] sm:$0xff]  ;;  %v390_v1 = vld [vmem:[#allocation5] sm:$0xff]  ;;  %vm430_vm0 = vcmask 64512   ;;  %vm703_vm1 = vcmask 523264  }
  0xdc   : > { %398 = vxpose.xlu0.b32.start.end [1/1] (short) %v389_v0, 128  ;;  %2139 = vmatprep.subr.mxu0 %v390_v1  ;;  %v2319_v18 = vld [vmem:[#allocation8] sm:$0xff]   ;;  %v2320_v19 = vld [vmem:[#allocation8 + $0x8] sm:$0xff]   ;;  %v2321_v20 = vld [vmem:[#allocation8 + $0x10] sm:$0xff]   ;;  %vm1107_vm2 = vcmask 1041409   ;;  %vm1109_vm3 = vcmask 1042434   ;;  %vm1111_vm4 = vcmask 1043459  }
  0xdd   : > { %2140 = vmatpush3.msra.mxu0 %v390_v1  ;;  %2165 = vmatprep.subr.bf16.mxu1 %v2319_v18  ;;  %v2322_v21 = vld [vmem:[#allocation8 + $0x18] sm:$0xff]   ;;  %vm1113_vm5 = vcmask 1044484   ;;  %vm1115_vm6 = vcmask 1045509   ;;  %vm1117_vm7 = vcmask 1046534   ;;  %vm1119_vm8 = vcmask 1047559   ;;  %s2109_s8 = sshll.u32 %s2607_s27, 7 }
  0xde   : > { %2166 = vmatpush3.bf16.msra.mxu1 %v2319_v18  ;;  %v2964_v22 = vld [vmem:[#allocation7] ss:$0 sm:$0xff]  ;;  %s387_s9 = scalar_lea.vmem [#allocation14], %s2002_s7  ;;  %s3182_s22 = sld [smem:[#allocation22_spill]] }
  0xdf   : > { %2167 = vmatprep.subr.bf16.mxu1 %v2320_v19  ;;  %s1853_s16 = sshll.u32 %s387_s9, 4  ;;  %s1839_s27 = scalar_lea.sflag [#allocation4], %s2926_s11  ;;  %s3103_s16 = int_to_ptr.vmem [resolvable:$true] %s1853_s16 }
  0xe0   : > { %s2521_s17 = scalar_lea.vmem %s3103_s16, 128  ;;  %p3183_p0 = scmp.ne.s32.totalorder %s3177_s13, 0 }
  0xe1   : > { %p2522_p11 = scmp.ne.s32.totalorder %s3103_s16, %s2521_s17  ;;  %s2630_s3 = smov [#allocation14]  }
  0xe2   : > { %2168 = vmatpush3.bf16.msra.mxu1 %v2320_v19  ;;  %s2525_s19 = sshll.u32 %s2630_s3, 4  ;;  %s2526_s19 = int_to_ptr.vmem [resolvable:$false] %s2525_s19 }
  0xe3   : > { %2169 = vmatprep.subr.bf16.mxu1 %v2321_v20  ;;  %p2523_p5 = pnand %p2522_p11, %p3183_p0  ;;  %s2527_s21 = scalar_lea.vmem %s2526_s19, 256 }
  0xe4   : > { %s3101_s14 = scalar_lea.hbm %s3182_s22, %s2109_s8  ;;  %p2528_p10 = scmp.lt.s32.totalorder %s3103_s16, %s2526_s19 }
  0xe5   : > { %p2524_p7 = pneg %p2523_p5  ;;  %p2529_p13 = scmp.lt.s32.totalorder %s2527_s21, %s2521_s17 }
  0xe6   : > { %2170 = vmatpush3.bf16.msra.mxu1 %v2321_v20 }
  0xe7   : > { %2171 = vmatprep.subr.bf16.mxu1 %v2322_v21  ;;  %p2530_p2 = por %p2529_p13, %p2528_p10 }
  0xe9   : > { %p2531_p8 = pnand %p2530_p2, %p2524_p7 }
  0xea   : > { %2172 = vmatpush3.bf16.msra.mxu1 %v2322_v21 }
 0x15c   : > { %v414_v2 = vpop.trf.xlu0 }
 0x15d   : > { %2141 = vmatprep.mubr.msk.f32.mxu0 %vm430_vm0, %v414_v2 }
 0x160   : > { %v415_v3 = vpop.trf.xlu0 }
 0x161   : > { %2142 = vmatmul.mubr.msk.f32.vlgmr.msra.gmra.mrb[0].mxu0 %vm430_vm0, %v415_v3 }
 0x164   : > { %v416_v4 = vpop.trf.xlu0 }
 0x165   : > { %2144 = vmatprep.mubr.msk.f32.mxu0 %vm430_vm0, %v416_v4 }
 0x168   : > { %v417_v5 = vpop.trf.xlu0 }
 0x169   : > { %2145 = vmatmul.mubr.msk.f32.gmra.mrb[2].mxu0 %vm430_vm0, %v417_v5 }
 0x16c   : > { %v418_v6 = vpop.trf.xlu0 }
 0x16d   : > { %2147 = vmatprep.mubr.msk.f32.mxu0 %vm430_vm0, %v418_v6 }
 0x170   : > { %v419_v7 = vpop.trf.xlu0 }
 0x171   : > { %2148 = vmatmul.mubr.msk.f32.gmra.mrb[4].mxu0 %vm430_vm0, %v419_v7 }
 0x174   : > { %v420_v8 = vpop.trf.xlu0 }
 0x175   : > { %2150 = vmatprep.mubr.msk.f32.mxu0 %vm430_vm0, %v420_v8 }
 0x178   : > { %v421_v9 = vpop.trf.xlu0 }
 0x179   : > { %2151 = vmatmul.mubr.msk.f32.gmra.mrb[6].mxu0 %vm430_vm0, %v421_v9 }
 0x17c   : > { %v422_v10 = vpop.trf.xlu0 }
 0x17d   : > { %2153 = vmatprep.mubr.msk.f32.mxu0 %vm430_vm0, %v422_v10 }
 0x180   : > { %v423_v11 = vpop.trf.xlu0 }
 0x181   : > { %2154 = vmatmul.mubr.msk.f32.gmra.mrb[8].mxu0 %vm430_vm0, %v423_v11 }
 0x184   : > { %v424_v12 = vpop.trf.xlu0 }
 0x185   : > { %2156 = vmatprep.mubr.msk.f32.mxu0 %vm430_vm0, %v424_v12 }
 0x188   : > { %v425_v13 = vpop.trf.xlu0 }
 0x189   : > { %2157 = vmatmul.mubr.msk.f32.gmra.mrb[10].mxu0 %vm430_vm0, %v425_v13 }
 0x18c   : > { %v426_v14 = vpop.trf.xlu0 }
 0x18d   : > { %2159 = vmatprep.mubr.msk.f32.mxu0 %vm430_vm0, %v426_v14 }
 0x190   : > { %v427_v15 = vpop.trf.xlu0 }
 0x191   : > { %2160 = vmatmul.mubr.msk.f32.gmra.mrb[12].mxu0 %vm430_vm0, %v427_v15 }
 0x194   : > { %v428_v16 = vpop.trf.xlu0 }
 0x195   : > { %2162 = vmatprep.mubr.msk.f32.mxu0 %vm430_vm0, %v428_v16 }
 0x198   : > { %v429_v17 = vpop.trf.xlu0 }
 0x199   : > { %2163 = vmatmul.mubr.msk.f32.gmra.mrb[14].mxu0 %vm430_vm0, %v429_v17 }
 0x234   : > { %v2143_v23 = vpop.f32.mrb[0].mxu0 }
 0x235   : > { %v551_v24 = vadd.f32 %v2143_v23, %v2964_v22  ;;  %v545_v25 = vpop.f32.mrb[1].mxu0 }
 0x236   : > { %v546_v26 = vadd.f32 %v2964_v22, %v545_v25 }
 0x237   : > { %v625_v27 = vmul.f32 0.2, %v551_v24 }
 0x238   : > { %v624_v28 = vmul.f32 0.2, %v546_v26 }
 0x239   : > { %v641_v29 = vmax.f32 %v551_v24, %v625_v27 }
 0x23a   : > { %v640_v30 = vmax.f32 %v546_v26, %v624_v28 }
 0x23c   : > { %v2146_v31 = vpop.f32.mrb[2].mxu0  ;;  %v656_v32 = vpack.c.bf16 %v641_v29, %v640_v30 }
 0x23d   : > { %v561_v33 = vadd.f32 %v2146_v31, %v2964_v22  ;;  %v555_v34 = vpop.f32.mrb[3].mxu0 }
 0x23e   : > { %v556_v35 = vadd.f32 %v2964_v22, %v555_v34  ;;  %2173 = vmatprep.mubr.msk.bf16.mxu1 %vm703_vm1, %v656_v32  ;;  %v969_v32 = vld [vmem:[#allocation11] sm:$0xff]  ;;  %v970_v34 = vld [vmem:[#allocation11 + $0x8] sm:$0xff] }
 0x23f   : > { %v627_v36 = vmul.f32 0.2, %v561_v33 }
 0x240   : > { %v626_v37 = vmul.f32 0.2, %v556_v35 }
 0x241   : > { %v643_v38 = vmax.f32 %v561_v33, %v627_v36  ;;  %v973_v33 = vld [vmem:[#allocation11 + $0x20] sm:$0xff]  ;;  %v974_v36 = vld [vmem:[#allocation11 + $0x28] sm:$0xff] }
 0x242   : > { %v642_v39 = vmax.f32 %v556_v35, %v626_v37  ;;  %v2041_v35 = vcombine.high %v969_v32, %v973_v33  ;;  %v2040_v37 = vcombine.low %v969_v32, %v973_v33  ;;  %v2990_v32 = vld [vmem:[#allocation11 + $0x10] sm:$0xff] }
 0x243   : > { %v2992_v33 = vld [vmem:[#allocation11 + $0x30] sm:$0xff] }
 0x244   : > { %v657_v40 = vpack.c.bf16 %v643_v38, %v642_v39  ;;  %v2149_v41 = vpop.f32.mrb[4].mxu0  ;;  %v2042_v38 = vcombine.low %v970_v34, %v974_v36  ;;  %v2043_v39 = vcombine.high %v970_v34, %v974_v36  ;;  %1450 = vmatprep.subr.bf16.mxu0 %v2041_v35  ;;  %v2994_v34 = vld [vmem:[#allocation11 + $0x18] sm:$0xff]  ;;  %v2044_v35 = vcombine.low %v2990_v32, %v2992_v33 }
 0x245   : > { %v571_v42 = vadd.f32 %v2149_v41, %v2964_v22  ;;  %v565_v43 = vpop.f32.mrb[5].mxu0  ;;  %1451 = vmatpush1.bf16.msra.mxu0 %v2040_v37  ;;  %v978_v41 = vld [vmem:[#allocation11 + $0x48] sm:$0xff]  ;;  %v2045_v36 = vcombine.high %v2990_v32, %v2992_v33  ;;  %v3000_v37 = vld [vmem:[#allocation11 + $0x38] sm:$0xff] }
 0x246   : > { %v566_v44 = vadd.f32 %v2964_v22, %v565_v43  ;;  %2174 = vmatmul.mubr.msk.bf16.vlgmr.msra.gmra.mrb[0].mxu1 %vm703_vm1, %v657_v40  ;;  %1493 = vmatprep.subr.bf16.mxu1 %v2043_v39  ;;  %v981_v40 = vld [vmem:[#allocation11 + $0x60] sm:$0xff]  ;;  %v982_v43 = vld [vmem:[#allocation11 + $0x68] sm:$0xff]  ;;  %v2046_v39 = vcombine.low %v2994_v34, %v3000_v37 }
 0x247   : > { %v629_v45 = vmul.f32 0.2, %v571_v42  ;;  %1494 = vmatpush1.bf16.msra.mxu1 %v2042_v38  ;;  %v2628_v38 = vmov 0  }
 0x248   : > { %v628_v46 = vmul.f32 0.2, %v566_v44  ;;  %1482 = vmatprep.mubr.bf16.mxu0 %v2628_v38 }
 0x249   : > { %v645_v47 = vmax.f32 %v571_v42, %v629_v45  ;;  %v2050_v45 = vcombine.low %v978_v41, %v982_v43 }
 0x24a   : > { %v644_v48 = vmax.f32 %v566_v44, %v628_v46  ;;  %v2051_v46 = vcombine.high %v978_v41, %v982_v43 }
 0x24c   : > { %v658_v49 = vpack.c.bf16 %v645_v47, %v644_v48  ;;  %v2152_v50 = vpop.f32.mrb[6].mxu0  ;;  %1495 = vmatprep.subr.bf16.mxu1 %v2051_v46  ;;  %v985_v47 = vld [vmem:[#allocation11 + $0x80] sm:$0xff] }
 0x24d   : > { %v581_v51 = vadd.f32 %v2152_v50, %v2964_v22  ;;  %v575_v52 = vpop.f32.mrb[7].mxu0  ;;  %v989_v48 = vld [vmem:[#allocation11 + $0xa0] sm:$0xff]  ;;  %1496 = vmatpush1.bf16.msra.mxu1 %v2050_v45 }
 0x24e   : > { %v576_v53 = vadd.f32 %v2964_v22, %v575_v52  ;;  %2177 = vmatprep.mubr.msk.bf16.mxu1 %vm703_vm1, %v658_v49  ;;  %v986_v49 = vld [vmem:[#allocation11 + $0x88] sm:$0xff]  ;;  %v2057_v50 = vcombine.high %v985_v47, %v989_v48  ;;  %v2056_v52 = vcombine.low %v985_v47, %v989_v48 }
 0x24f   : > { %v631_v54 = vmul.f32 0.2, %v581_v51 }
 0x250   : > { %v630_v55 = vmul.f32 0.2, %v576_v53 }
 0x251   : > { %v647_v56 = vmax.f32 %v581_v51, %v631_v54  ;;  %v990_v51 = vld [vmem:[#allocation11 + $0xa8] sm:$0xff] }
 0x252   : > { %v646_v57 = vmax.f32 %v576_v53, %v630_v55  ;;  %v2058_v53 = vcombine.low %v986_v49, %v990_v51  ;;  %v2059_v54 = vcombine.high %v986_v49, %v990_v51  ;;  %v993_v55 = vld [vmem:[#allocation11 + $0xc0] sm:$0xff] }
 0x254   : > { %v659_v58 = vpack.c.bf16 %v647_v56, %v646_v57  ;;  %v2155_v59 = vpop.f32.mrb[8].mxu0  ;;  %1497 = vmatprep.subr.bf16.mxu1 %v2059_v54  ;;  %v997_v56 = vld [vmem:[#allocation11 + $0xe0] sm:$0xff]  ;;  %v994_v57 = vld [vmem:[#allocation11 + $0xc8] sm:$0xff] }
 0x255   : > { %v591_v60 = vadd.f32 %v2155_v59, %v2964_v22  ;;  %v585_v61 = vpop.f32.mrb[9].mxu0  ;;  %1498 = vmatpush1.bf16.msra.mxu1 %v2058_v53  ;;  %v998_v59 = vld [vmem:[#allocation11 + $0xe8] sm:$0xff] }
 0x256   : > { %v586_v62 = vadd.f32 %v2964_v22, %v585_v61  ;;  %2178 = vmatmul.mubr.msk.bf16.gmra.mrb[4].mxu1 %vm703_vm1, %v659_v58  ;;  %v2065_v58 = vcombine.high %v993_v55, %v997_v56  ;;  %v2066_v61 = vcombine.low %v994_v57, %v998_v59 }
 0x257   : > { %v633_v63 = vmul.f32 0.2, %v591_v60 }
 0x258   : > { %v632_v0 = vmul.f32 0.2, %v586_v62 }
 0x259   : > { %v649_v1 = vmax.f32 %v591_v60, %v633_v63  ;;  %v2064_v60 = vcombine.low %v993_v55, %v997_v56  ;;  %v1001_v63 = vld [vmem:[#allocation11 + $0x100] sm:$0xff] }
 0x25a   : > { %v648_v2 = vmax.f32 %v586_v62, %v632_v0  ;;  %v2067_v62 = vcombine.high %v994_v57, %v998_v59  ;;  %v1005_v0 = vld [vmem:[#allocation11 + $0x120] sm:$0xff] }
 0x25c   : > { %v660_v3 = vpack.c.bf16 %v649_v1, %v648_v2  ;;  %v2158_v4 = vpop.f32.mrb[10].mxu0  ;;  %1499 = vmatprep.subr.bf16.mxu1 %v2067_v62  ;;  %v1002_v1 = vld [vmem:[#allocation11 + $0x108] sm:$0xff]  ;;  %v2073_v2 = vcombine.high %v1001_v63, %v1005_v0 }
 0x25d   : > { %v601_v5 = vadd.f32 %v2158_v4, %v2964_v22  ;;  %v595_v6 = vpop.f32.mrb[11].mxu0  ;;  %1500 = vmatpush1.bf16.msra.mxu1 %v2066_v61  ;;  %v2072_v4 = vcombine.low %v1001_v63, %v1005_v0 }
 0x25e   : > { %v596_v7 = vadd.f32 %v2964_v22, %v595_v6  ;;  %2181 = vmatprep.mubr.msk.bf16.mxu1 %vm703_vm1, %v660_v3  ;;  %v1006_v3 = vld [vmem:[#allocation11 + $0x128] sm:$0xff] }
 0x25f   : > { %v635_v8 = vmul.f32 0.2, %v601_v5  ;;  %v2075_v6 = vcombine.high %v1002_v1, %v1006_v3 }
 0x260   : > { %v634_v9 = vmul.f32 0.2, %v596_v7 }
 0x261   : > { %v651_v10 = vmax.f32 %v601_v5, %v635_v8  ;;  %v2074_v5 = vcombine.low %v1002_v1, %v1006_v3  ;;  %1501 = vmatprep.subr.bf16.mxu1 %v2075_v6  ;;  %v1013_v8 = vld [vmem:[#allocation11 + $0x160] sm:$0xff] }
 0x262   : > { %v650_v11 = vmax.f32 %v596_v7, %v634_v9  ;;  %v1009_v7 = vld [vmem:[#allocation11 + $0x140] sm:$0xff]  ;;  %v1010_v9 = vld [vmem:[#allocation11 + $0x148] sm:$0xff] }
 0x263   : > { %1502 = vmatpush1.bf16.msra.mxu1 %v2074_v5 }
 0x264   : > { %v661_v12 = vpack.c.bf16 %v651_v10, %v650_v11  ;;  %v2161_v13 = vpop.f32.mrb[12].mxu0  ;;  %v2081_v10 = vcombine.high %v1009_v7, %v1013_v8  ;;  %v1014_v11 = vld [vmem:[#allocation11 + $0x168] sm:$0xff] }
 0x265   : > { %v611_v14 = vadd.f32 %v2161_v13, %v2964_v22  ;;  %v605_v15 = vpop.f32.mrb[13].mxu0  ;;  %v2082_v13 = vcombine.low %v1010_v9, %v1014_v11 }
 0x266   : > { %v606_v16 = vadd.f32 %v2964_v22, %v605_v15  ;;  %2182 = vmatmul.mubr.msk.bf16.gmra.mrb[8].mxu1 %vm703_vm1, %v661_v12  ;;  %v2080_v12 = vcombine.low %v1009_v7, %v1013_v8  ;;  %v1017_v15 = vld [vmem:[#allocation11 + $0x180] sm:$0xff] }
 0x267   : > { %v637_v17 = vmul.f32 0.2, %v611_v14 }
 0x268   : > { %v636_v18 = vmul.f32 0.2, %v606_v16 }
 0x269   : > { %v653_v19 = vmax.f32 %v611_v14, %v637_v17  ;;  %v2083_v14 = vcombine.high %v1010_v9, %v1014_v11  ;;  %v1018_v17 = vld [vmem:[#allocation11 + $0x188] sm:$0xff] }
 0x26a   : > { %v652_v20 = vmax.f32 %v606_v16, %v636_v18  ;;  %v1021_v16 = vld [vmem:[#allocation11 + $0x1a0] sm:$0xff] }
 0x26b   : > { %1503 = vmatprep.subr.bf16.mxu1 %v2083_v14  ;;  %v2089_v18 = vcombine.high %v1017_v15, %v1021_v16 }
 0x26c   : > { %v662_v21 = vpack.c.bf16 %v653_v19, %v652_v20  ;;  %v2164_v23 = vpop.f32.mrb[14].mxu0  ;;  %1504 = vmatpush1.bf16.msra.mxu1 %v2082_v13  ;;  %v1022_v19 = vld [vmem:[#allocation11 + $0x1a8] sm:$0xff]  ;;  %v2088_v20 = vcombine.low %v1017_v15, %v1021_v16 }
 0x26d   : > { %v621_v24 = vadd.f32 %v2164_v23, %v2964_v22  ;;  %v615_v25 = vpop.f32.mrb[15].mxu0  ;;  %v2091_v23 = vcombine.high %v1018_v17, %v1022_v19 }
 0x26e   : > { %v616_v26 = vadd.f32 %v2964_v22, %v615_v25  ;;  %2185 = vmatprep.mubr.msk.bf16.mxu1 %vm703_vm1, %v662_v21  ;;  %v977_v22 = vld [vmem:[#allocation11 + $0x40] sm:$0xff]  ;;  %v2090_v21 = vcombine.low %v1018_v17, %v1022_v19 }
 0x26f   : > { %v639_v27 = vmul.f32 0.2, %v621_v24  ;;  %v2049_v42 = vcombine.high %v977_v22, %v981_v40  ;;  %v2048_v44 = vcombine.low %v977_v22, %v981_v40  ;;  %1505 = vmatprep.subr.bf16.mxu1 %v2091_v23  ;;  %v1029_v25 = vld [vmem:[#allocation11 + $0x1e0] sm:$0xff]  ;;  %v2047_v22 = vcombine.high %v2994_v34, %v3000_v37  ;;  %v3008_v40 = vld [vmem:[#allocation10] ss:$0 sm:$0xff]  ;;  %v1003_v37 = vld [vmem:[#allocation11 + $0x110] sm:$0xff] }
 0x270   : > { %v638_v28 = vmul.f32 0.2, %v616_v26  ;;  %1506 = vmatpush1.bf16.msra.mxu1 %v2090_v21 }
 0x271   : > { %v655_v29 = vmax.f32 %v621_v24, %v639_v27  ;;  %1452 = vmatprep.subr.bf16.mxu0 %v2049_v42  ;;  %v1025_v24 = vld [vmem:[#allocation11 + $0x1c0] sm:$0xff] }
 0x272   : > { %v654_v30 = vmax.f32 %v616_v26, %v638_v28  ;;  %1453 = vmatpush1.bf16.msra.mxu0 %v2048_v44  ;;  %v1026_v26 = vld [vmem:[#allocation11 + $0x1c8] sm:$0xff]  ;;  %v2097_v27 = vcombine.high %v1025_v24, %v1029_v25 }
 0x273   : > { %1454 = vmatprep.subr.bf16.mxu0 %v2057_v50  ;;  %v1030_v28 = vld [vmem:[#allocation11 + $0x1e8] sm:$0xff] }
 0x274   : > { %v663_v31 = vpack.c.bf16 %v655_v29, %v654_v30  ;;  %v2096_v29 = vcombine.low %v1025_v24, %v1029_v25  ;;  %v2098_v30 = vcombine.low %v1026_v26, %v1030_v28 }
 0x276   : > { %2186 = vmatmul.mubr.msk.bf16.gmra.mrb[12].mxu1 %vm703_vm1, %v663_v31  ;;  %1455 = vmatpush1.bf16.msra.mxu0 %v2056_v52  ;;  %v2099_v31 = vcombine.high %v1026_v26, %v1030_v28 }
 0x277   : > { %1456 = vmatprep.subr.bf16.mxu0 %v2065_v58  ;;  %1525 = vmatprep.mubr.bf16.mxu1 %v2628_v38 }
 0x278   : > { %1507 = vmatprep.subr.bf16.mxu1 %v2099_v31 }
 0x279   : > { %1508 = vmatpush1.bf16.msra.mxu1 %v2098_v30 }
 0x27a   : > { %1457 = vmatpush1.bf16.msra.mxu0 %v2064_v60  ;;  %1579 = vmatprep.subr.bf16.mxu1 %v2047_v22 }
 0x27b   : > { %1458 = vmatprep.subr.bf16.mxu0 %v2073_v2 }
 0x27e   : > { %1459 = vmatpush1.bf16.msra.mxu0 %v2072_v4 }
 0x27f   : > { %1460 = vmatprep.subr.bf16.mxu0 %v2081_v10 }
 0x282   : > { %1461 = vmatpush1.bf16.msra.mxu0 %v2080_v12 }
 0x283   : > { %1462 = vmatprep.subr.bf16.mxu0 %v2089_v18 }
 0x286   : > { %1463 = vmatpush1.bf16.msra.mxu0 %v2088_v20 }
 0x287   : > { %1464 = vmatprep.subr.bf16.mxu0 %v2097_v27 }
 0x28a   : > { %1465 = vmatpush1.bf16.msra.mxu0 %v2096_v29 }
 0x28b   : > { %1536 = vmatprep.subr.bf16.mxu0 %v2045_v36 }
 0x319   : > { %v2175_v41 = vpop.f32.mrb[0].mxu1 }
 0x31a   : > { %v771_v42 = vadd.f32 %v2175_v41, %v3008_v40  ;;  %v762_v43 = vpop.f32.mrb[1].mxu1 }
 0x31b   : > { %v763_v44 = vadd.f32 %v3008_v40, %v762_v43  ;;  %v2176_v45 = vpop.f32.mrb[2].mxu1 }
 0x31c   : > { %v827_v46 = vmul.f32 0.2, %v771_v42  ;;  %v774_v47 = vadd.f32 %v2176_v45, %v3008_v40  ;;  %v765_v48 = vpop.f32.mrb[3].mxu1 }
 0x31d   : > { %v825_v49 = vmul.f32 0.2, %v763_v44  ;;  %v766_v50 = vadd.f32 %v3008_v40, %v765_v48 }
 0x31e   : > { %v843_v51 = vmax.f32 %v771_v42, %v827_v46  ;;  %v828_v52 = vmul.f32 0.2, %v774_v47 }
 0x31f   : > { %v841_v53 = vmax.f32 %v763_v44, %v825_v49  ;;  %v826_v54 = vmul.f32 0.2, %v766_v50 }
 0x320   : > { %v869_v55 = vrot.slane %v843_v51, 4  ;;  %v844_v56 = vmax.f32 %v774_v47, %v828_v52 }
 0x321   : > { %v857_v57 = vrot.slane %v841_v53, 4  ;;  %v842_v58 = vmax.f32 %v766_v50, %v826_v54 }
 0x322   : > { %v870_v59 = vmax.f32 %v843_v51, %v869_v55  ;;  %v875_v60 = vrot.slane %v844_v56, 4 }
 0x323   : > { %v858_v61 = vmax.f32 %v841_v53, %v857_v57  ;;  %v863_v62 = vrot.slane %v842_v58, 4 }
 0x324   : > { %v871_v63 = vrot.slane %v870_v59, 2  ;;  %v876_v0 = vmax.f32 %v844_v56, %v875_v60 }
 0x325   : > { %v859_v1 = vrot.slane %v858_v61, 2  ;;  %v864_v2 = vmax.f32 %v842_v58, %v863_v62 }
 0x326   : > { %v872_v3 = vmax.f32 %v870_v59, %v871_v63  ;;  %v877_v4 = vrot.slane %v876_v0, 2 }
 0x327   : > { %v860_v5 = vmax.f32 %v858_v61, %v859_v1  ;;  %v865_v6 = vrot.slane %v864_v2, 2 }
 0x328   : > { %v873_v7 = vrot.slane %v872_v3, 1  ;;  %v878_v8 = vmax.f32 %v876_v0, %v877_v4 }
 0x329   : > { %v861_v9 = vrot.slane %v860_v5, 1  ;;  %v866_v10 = vmax.f32 %v864_v2, %v865_v6  ;;  %v2179_v11 = vpop.f32.mrb[4].mxu1 }
 0x32a   : > { %v874_v12 = vmax.f32 %v872_v3, %v873_v7  ;;  %v879_v13 = vrot.slane %v878_v8, 1  ;;  %v787_v14 = vadd.f32 %v2179_v11, %v3008_v40  ;;  %v778_v15 = vpop.f32.mrb[5].mxu1 }
 0x32b   : > { %v862_v16 = vmax.f32 %v860_v5, %v861_v9  ;;  %v867_v17 = vrot.slane %v866_v10, 1  ;;  %v779_v18 = vadd.f32 %v3008_v40, %v778_v15  ;;  %v2180_v19 = vpop.f32.mrb[6].mxu1 }
 0x32c   : > { %v880_v20 = vmax.f32 %v878_v8, %v879_v13  ;;  %v831_v21 = vmul.f32 0.2, %v787_v14  ;;  %v790_v23 = vadd.f32 %v2180_v19, %v3008_v40  ;;  %v781_v24 = vpop.f32.mrb[7].mxu1  ;;  %v955_v29 = vpack.c.bf16 %v874_v12, %v874_v12 }
 0x32d   : > { %v953_v25 = vpack.c.bf16 %v862_v16, %v862_v16  ;;  %v868_v26 = vmax.f32 %v866_v10, %v867_v17  ;;  %v829_v27 = vmul.f32 0.2, %v779_v18  ;;  %v782_v28 = vadd.f32 %v3008_v40, %v781_v24 }
 0x32e   : > { %v847_v30 = vmax.f32 %v787_v14, %v831_v21  ;;  %v832_v31 = vmul.f32 0.2, %v790_v23  ;;  %v956_v36 = vpack.c.bf16 %v880_v20, %v880_v20  ;;  %v1093_v49 = vunpack.c.l.b16 %v955_v29 }
 0x32f   : > { %v954_v22 = vpack.c.bf16 %v868_v26, %v868_v26  ;;  %v845_v41 = vmax.f32 %v779_v18, %v829_v27  ;;  %v830_v42 = vmul.f32 0.2, %v782_v28  ;;  %v1091_v45 = vunpack.c.l.b16 %v953_v25 }
 0x330   : > { %v893_v43 = vrot.slane %v847_v30, 4  ;;  %v848_v44 = vmax.f32 %v790_v23, %v832_v31  ;;  %v1094_v52 = vunpack.c.l.b16 %v956_v36 }
 0x331   : > { %v1092_v46 = vunpack.c.l.b16 %v954_v22  ;;  %v881_v47 = vrot.slane %v845_v41, 4  ;;  %v846_v48 = vmax.f32 %v782_v28, %v830_v42 }
 0x332   : > { %v894_v50 = vmax.f32 %v847_v30, %v893_v43  ;;  %v899_v51 = vrot.slane %v848_v44, 4 }
 0x333   : > { %v1108_v53 = vsel %vm1107_vm2, %v1092_v46, %v1091_v45  ;;  %v882_v54 = vmax.f32 %v845_v41, %v881_v47  ;;  %v887_v55 = vrot.slane %v846_v48, 4 }
 0x334   : > { %v1110_v56 = vsel %vm1109_vm3, %v1093_v49, %v1108_v53  ;;  %v895_v57 = vrot.slane %v894_v50, 2  ;;  %v900_v58 = vmax.f32 %v848_v44, %v899_v51 }
 0x335   : > { %v883_v59 = vrot.slane %v882_v54, 2  ;;  %v1112_v60 = vsel %vm1111_vm4, %v1094_v52, %v1110_v56  ;;  %v888_v61 = vmax.f32 %v846_v48, %v887_v55 }
 0x336   : > { %v896_v62 = vmax.f32 %v894_v50, %v895_v57  ;;  %v901_v63 = vrot.slane %v900_v58, 2 }
 0x337   : > { %v884_v0 = vmax.f32 %v882_v54, %v883_v59  ;;  %v889_v1 = vrot.slane %v888_v61, 2 }
 0x338   : > { %v897_v2 = vrot.slane %v896_v62, 1  ;;  %v902_v3 = vmax.f32 %v900_v58, %v901_v63 }
 0x339   : > { %v885_v4 = vrot.slane %v884_v0, 1  ;;  %v890_v5 = vmax.f32 %v888_v61, %v889_v1  ;;  %v2183_v6 = vpop.f32.mrb[8].mxu1 }
 0x33a   : > { %v898_v7 = vmax.f32 %v896_v62, %v897_v2  ;;  %v903_v8 = vrot.slane %v902_v3, 1  ;;  %v803_v9 = vadd.f32 %v2183_v6, %v3008_v40  ;;  %v794_v10 = vpop.f32.mrb[9].mxu1 }
 0x33b   : > { %v886_v11 = vmax.f32 %v884_v0, %v885_v4  ;;  %v891_v12 = vrot.slane %v890_v5, 1  ;;  %v795_v13 = vadd.f32 %v3008_v40, %v794_v10  ;;  %v2184_v14 = vpop.f32.mrb[10].mxu1 }
 0x33c   : > { %v904_v15 = vmax.f32 %v902_v3, %v903_v8  ;;  %v835_v16 = vmul.f32 0.2, %v803_v9  ;;  %v806_v17 = vadd.f32 %v2184_v14, %v3008_v40  ;;  %v797_v18 = vpop.f32.mrb[11].mxu1  ;;  %v959_v24 = vpack.c.bf16 %v898_v7, %v898_v7 }
 0x33d   : > { %v957_v19 = vpack.c.bf16 %v886_v11, %v886_v11  ;;  %v892_v20 = vmax.f32 %v890_v5, %v891_v12  ;;  %v833_v21 = vmul.f32 0.2, %v795_v13  ;;  %v798_v23 = vadd.f32 %v3008_v40, %v797_v18 }
 0x33e   : > { %v960_v25 = vpack.c.bf16 %v904_v15, %v904_v15  ;;  %v851_v26 = vmax.f32 %v803_v9, %v835_v16  ;;  %v836_v27 = vmul.f32 0.2, %v806_v17  ;;  %v1097_v45 = vunpack.c.l.b16 %v959_v24 }
 0x33f   : > { %v1095_v28 = vunpack.c.l.b16 %v957_v19  ;;  %v958_v29 = vpack.c.bf16 %v892_v20, %v892_v20  ;;  %v849_v30 = vmax.f32 %v795_v13, %v833_v21  ;;  %v834_v31 = vmul.f32 0.2, %v798_v23 }
 0x340   : > { %v917_v36 = vrot.slane %v851_v26, 4  ;;  %v852_v22 = vmax.f32 %v806_v17, %v836_v27  ;;  %v1098_v48 = vunpack.c.l.b16 %v960_v25 }
 0x341   : > { %v1114_v41 = vsel %vm1113_vm5, %v1095_v28, %v1112_v60  ;;  %v1096_v42 = vunpack.c.l.b16 %v958_v29  ;;  %v905_v43 = vrot.slane %v849_v30, 4  ;;  %v850_v44 = vmax.f32 %v798_v23, %v834_v31 }
 0x342   : > { %v918_v46 = vmax.f32 %v851_v26, %v917_v36  ;;  %v923_v47 = vrot.slane %v852_v22, 4 }
 0x343   : > { %v1116_v49 = vsel %vm1115_vm6, %v1096_v42, %v1114_v41  ;;  %v906_v50 = vmax.f32 %v849_v30, %v905_v43  ;;  %v911_v51 = vrot.slane %v850_v44, 4 }
 0x344   : > { %v919_v52 = vrot.slane %v918_v46, 2  ;;  %v924_v53 = vmax.f32 %v852_v22, %v923_v47  ;;  %v1118_v54 = vsel %vm1117_vm7, %v1097_v45, %v1116_v49 }
 0x345   : > { %v907_v55 = vrot.slane %v906_v50, 2  ;;  %v912_v56 = vmax.f32 %v850_v44, %v911_v51  ;;  %v3029_v57 = vsel %vm1119_vm8, %v1098_v48, %v1118_v54 }
 0x346   : > { %v920_v58 = vmax.f32 %v918_v46, %v919_v52  ;;  %v925_v59 = vrot.slane %v924_v53, 2 }
 0x347   : > { %v908_v60 = vmax.f32 %v906_v50, %v907_v55  ;;  %v913_v61 = vrot.slane %v912_v56, 2 }
 0x348   : > { %v921_v62 = vrot.slane %v920_v58, 1  ;;  %v926_v63 = vmax.f32 %v924_v53, %v925_v59 }
 0x349   : > { %v909_v0 = vrot.slane %v908_v60, 1  ;;  %v914_v1 = vmax.f32 %v912_v56, %v913_v61  ;;  %v2187_v2 = vpop.f32.mrb[12].mxu1 }
 0x34a   : > { %v922_v3 = vmax.f32 %v920_v58, %v921_v62  ;;  %v927_v4 = vrot.slane %v926_v63, 1  ;;  %v819_v5 = vadd.f32 %v2187_v2, %v3008_v40  ;;  %v810_v6 = vpop.f32.mrb[13].mxu1 }
 0x34b   : > { %v910_v7 = vmax.f32 %v908_v60, %v909_v0  ;;  %v915_v8 = vrot.slane %v914_v1, 1  ;;  %v811_v9 = vadd.f32 %v3008_v40, %v810_v6  ;;  %v2188_v10 = vpop.f32.mrb[14].mxu1 }
 0x34c   : > { %v928_v11 = vmax.f32 %v926_v63, %v927_v4  ;;  %v839_v12 = vmul.f32 0.2, %v819_v5  ;;  %v822_v13 = vadd.f32 %v2188_v10, %v3008_v40  ;;  %v813_v14 = vpop.f32.mrb[15].mxu1  ;;  %v963_v19 = vpack.c.bf16 %v922_v3, %v922_v3 }
 0x34d   : > { %v961_v15 = vpack.c.bf16 %v910_v7, %v910_v7  ;;  %v916_v16 = vmax.f32 %v914_v1, %v915_v8  ;;  %v837_v17 = vmul.f32 0.2, %v811_v9  ;;  %v814_v18 = vadd.f32 %v3008_v40, %v813_v14  ;;  %v983_v14 = vld [vmem:[#allocation11 + $0x70] sm:$0xff] }
 0x34e   : > { %v855_v20 = vmax.f32 %v819_v5, %v839_v12  ;;  %v840_v21 = vmul.f32 0.2, %v822_v13  ;;  %v964_v23 = vpack.c.bf16 %v928_v11, %v928_v11  ;;  %v1101_v22 = vunpack.c.l.b16 %v963_v19  ;;  %v979_v11 = vld [vmem:[#allocation11 + $0x50] sm:$0xff] }
 0x34f   : > { %v962_v24 = vpack.c.bf16 %v916_v16, %v916_v16  ;;  %v853_v25 = vmax.f32 %v811_v9, %v837_v17  ;;  %v838_v26 = vmul.f32 0.2, %v814_v18  ;;  %v1099_v29 = vunpack.c.l.b16 %v961_v15  ;;  %v980_v15 = vld [vmem:[#allocation11 + $0x58] sm:$0xff] }
 0x350   : > { %v941_v27 = vrot.slane %v855_v20, 4  ;;  %v856_v28 = vmax.f32 %v822_v13, %v840_v21  ;;  %v1102_v43 = vunpack.c.l.b16 %v964_v23  ;;  %v984_v16 = vld [vmem:[#allocation11 + $0x78] sm:$0xff]  ;;  %v987_v23 = vld [vmem:[#allocation11 + $0x90] sm:$0xff] }
 0x351   : > { %v1100_v30 = vunpack.c.l.b16 %v962_v24  ;;  %v929_v31 = vrot.slane %v853_v25, 4  ;;  %v854_v36 = vmax.f32 %v814_v18, %v838_v26  ;;  %v2055_v21 = vcombine.high %v980_v15, %v984_v16  ;;  %v991_v24 = vld [vmem:[#allocation11 + $0xb0] sm:$0xff]  ;;  %v992_v26 = vld [vmem:[#allocation11 + $0xb8] sm:$0xff] }
 0x352   : > { %v942_v41 = vmax.f32 %v855_v20, %v941_v27  ;;  %v947_v42 = vrot.slane %v856_v28, 4  ;;  %v2053_v20 = vcombine.high %v979_v11, %v983_v14  ;;  %v2054_v27 = vcombine.low %v980_v15, %v984_v16 }
 0x353   : > { %v1121_v44 = vsel %vm1107_vm2, %v1100_v30, %v1099_v29  ;;  %v930_v40 = vmax.f32 %v853_v25, %v929_v31  ;;  %v935_v45 = vrot.slane %v854_v36, 4  ;;  %v988_v25 = vld [vmem:[#allocation11 + $0x98] sm:$0xff]  ;;  %v995_v30 = vld [vmem:[#allocation11 + $0xd0] sm:$0xff]  ;;  %v2060_v32 = vcombine.low %v987_v23, %v991_v24 }
 0x354   : > { %v1122_v46 = vsel %vm1109_vm3, %v1101_v22, %v1121_v44  ;;  %v943_v47 = vrot.slane %v942_v41, 2  ;;  %v948_v48 = vmax.f32 %v856_v28, %v947_v42  ;;  %v2061_v28 = vcombine.high %v987_v23, %v991_v24  ;;  %v999_v31 = vld [vmem:[#allocation11 + $0xf0] sm:$0xff]  ;;  %v1000_v22 = vld [vmem:[#allocation11 + $0xf8] sm:$0xff] }
 0x355   : > { %v931_v49 = vrot.slane %v930_v40, 2  ;;  %v1123_v50 = vsel %vm1111_vm4, %v1102_v43, %v1122_v46  ;;  %v936_v51 = vmax.f32 %v854_v36, %v935_v45  ;;  %v2063_v29 = vcombine.high %v988_v25, %v992_v26  ;;  %v996_v36 = vld [vmem:[#allocation11 + $0xd8] sm:$0xff]  ;;  %v1011_v45 = vld [vmem:[#allocation11 + $0x150] sm:$0xff] }
 0x356   : > { %v944_v52 = vmax.f32 %v942_v41, %v943_v47  ;;  %v949_v53 = vrot.slane %v948_v48, 2  ;;  %v2062_v33 = vcombine.low %v988_v25, %v992_v26  ;;  %v2069_v34 = vcombine.high %v995_v30, %v999_v31  ;;  %v1004_v41 = vld [vmem:[#allocation11 + $0x118] sm:$0xff]  ;;  %v1015_v46 = vld [vmem:[#allocation11 + $0x170] sm:$0xff] }
 0x357   : > { %v932_v54 = vmax.f32 %v930_v40, %v931_v49  ;;  %v937_v55 = vrot.slane %v936_v51, 2  ;;  %v1008_v42 = vld [vmem:[#allocation11 + $0x138] sm:$0xff]  ;;  %v2068_v43 = vcombine.low %v995_v30, %v999_v31  ;;  %v2070_v44 = vcombine.low %v996_v36, %v1000_v22 }
 0x358   : > { %v945_v56 = vrot.slane %v944_v52, 1  ;;  %v950_v58 = vmax.f32 %v948_v48, %v949_v53  ;;  %v1012_v47 = vld [vmem:[#allocation11 + $0x158] sm:$0xff]  ;;  %v1019_v53 = vld [vmem:[#allocation11 + $0x190] sm:$0xff] }
 0x359   : > { %v933_v59 = vrot.slane %v932_v54, 1  ;;  %v938_v60 = vmax.f32 %v936_v51, %v937_v55  ;;  %v1016_v48 = vld [vmem:[#allocation11 + $0x178] sm:$0xff]  ;;  %v2085_v51 = vcombine.high %v1011_v45, %v1015_v46 }
 0x35a   : > { %v946_v61 = vmax.f32 %v944_v52, %v945_v56  ;;  %v951_v62 = vrot.slane %v950_v58, 1  ;;  %v2087_v52 = vcombine.high %v1012_v47, %v1016_v48  ;;  %v1020_v55 = vld [vmem:[#allocation11 + $0x198] sm:$0xff] }
 0x35b   : > { %v934_v63 = vmax.f32 %v932_v54, %v933_v59  ;;  %v939_v0 = vrot.slane %v938_v60, 1  ;;  %v1023_v54 = vld [vmem:[#allocation11 + $0x1b0] sm:$0xff]  ;;  %v1024_v56 = vld [vmem:[#allocation11 + $0x1b8] sm:$0xff]  ;;  %v2086_v59 = vcombine.low %v1012_v47, %v1016_v48 }
 0x35c   : > { %v952_v1 = vmax.f32 %v950_v58, %v951_v62  ;;  %v967_v4 = vpack.c.bf16 %v946_v61, %v946_v61  ;;  %v2084_v58 = vcombine.low %v1011_v45, %v1015_v46  ;;  %v2095_v61 = vcombine.high %v1020_v55, %v1024_v56  ;;  %v1027_v62 = vld [vmem:[#allocation11 + $0x1d0] sm:$0xff] }
 0x35d   : > { %v965_v2 = vpack.c.bf16 %v934_v63, %v934_v63  ;;  %v940_v3 = vmax.f32 %v938_v60, %v939_v0  ;;  %v2093_v60 = vcombine.high %v1019_v53, %v1023_v54  ;;  %v1031_v63 = vld [vmem:[#allocation11 + $0x1f0] sm:$0xff]  ;;  %v1028_v0 = vld [vmem:[#allocation11 + $0x1d8] sm:$0xff] }
 0x35e   : > { %v968_v6 = vpack.c.bf16 %v952_v1, %v952_v1  ;;  %v1105_v10 = vunpack.c.l.b16 %v967_v4  ;;  %v1032_v1 = vld [vmem:[#allocation11 + $0x1f8] sm:$0xff]  ;;  %v2101_v4 = vcombine.high %v1027_v62, %v1031_v63 }
 0x35f   : > { %v1103_v5 = vunpack.c.l.b16 %v965_v2  ;;  %v966_v7 = vpack.c.bf16 %v940_v3, %v940_v3  ;;  %v2092_v2 = vcombine.low %v1019_v53, %v1023_v54  ;;  %v2094_v3 = vcombine.low %v1020_v55, %v1024_v56 }
 0x360   : > { %v1106_v12 = vunpack.c.l.b16 %v968_v6  ;;  %v2100_v6 = vcombine.low %v1027_v62, %v1031_v63  ;;  %v2629_v62 = vmov 1966171168  }
 0x361   : > { %v1124_v8 = vsel %vm1113_vm5, %v1103_v5, %v1123_v50  ;;  %v1104_v9 = vunpack.c.l.b16 %v966_v7  ;;  %v2078_v50 = vcombine.low %v1004_v41, %v1008_v42  ;;  %v2103_v5 = vcombine.high %v1028_v0, %v1032_v1 }
 0x362   : > { %v2102_v7 = vcombine.low %v1028_v0, %v1032_v1  ;;  %v1727_v63 = vunpack.c.l.s4 %v2629_v62 }
 0x363   : > { %v1125_v13 = vsel %vm1115_vm6, %v1104_v9, %v1124_v8  ;;  %v1035_v8 = vlaneseq }
 0x364   : > { %v1126_v17 = vsel %vm1117_vm7, %v1105_v10, %v1125_v13 }
 0x365   : > { %v1127_v18 = vsel %vm1119_vm8, %v1106_v12, %v1126_v17  ;;  %v3057_v9 = vshrl.u32 %v1035_v8, 7  ;;  %v3061_v12 = vld [vmem:[#allocation13] sm:$0xff]  ;;  %v1728_v8 = vunpack.c.0.s8 %v1727_v63 }
 0x366   : > { %v3043_v19 = vpack.c.b16 %v1127_v18, %v3029_v57  ;;  %v2052_v57 = vcombine.low %v979_v11, %v983_v14 }
 0x367   : > { %v1037_v10 = vsub.s32 0, %v3057_v9  ;;  %v1045_v11 = vsub.s32 2, %v3057_v9  ;;  %v1041_v13 = vsub.s32 1, %v3057_v9  ;;  %v1049_v14 = vsub.s32 3, %v3057_v9 }
 0x368   : > { %1483 = vmatmul.mubr.bf16.vlgmr.msra.gmra.mrb[16].mxu0 %v3043_v19  ;;  %1526 = vmatmul.mubr.bf16.vlgmr.msra.gmra.mrb[16].mxu1 %v3043_v19 }
 0x369   : > { %1537 = vmatpush1.bf16.msra.mxu0 %v2044_v35  ;;  %1580 = vmatpush1.bf16.msra.mxu1 %v2046_v39  ;;  %v2071_v35 = vcombine.high %v996_v36, %v1000_v22  ;;  %v1007_v39 = vld [vmem:[#allocation11 + $0x130] sm:$0xff]  ;;  %v1038_v15 = vrot.slane %v3061_v12, %v1037_v10  ;;  %v1046_v16 = vrot.slane %v3061_v12, %v1045_v11 }
 0x36a   : > { %1538 = vmatprep.subr.bf16.mxu0 %v2053_v20  ;;  %1581 = vmatprep.subr.bf16.mxu1 %v2055_v21  ;;  %v2077_v40 = vcombine.high %v1003_v37, %v1007_v39  ;;  %v2076_v49 = vcombine.low %v1003_v37, %v1007_v39  ;;  %v1042_v17 = vrot.slane %v3061_v12, %v1041_v13 }
 0x36b   : > { %1568 = vmatprep.mubr.bf16.mxu0 %v2628_v38  ;;  %1611 = vmatprep.mubr.bf16.mxu1 %v2628_v38  ;;  %v2079_v38 = vcombine.high %v1004_v41, %v1008_v42  ;;  %v1050_v18 = vrot.slane %v3061_v12, %v1049_v14 }
 0x36d   : > { %1539 = vmatpush1.bf16.msra.mxu0 %v2052_v57  ;;  %1582 = vmatpush1.bf16.msra.mxu1 %v2054_v27 }
 0x36e   : > { %1540 = vmatprep.subr.bf16.mxu0 %v2061_v28  ;;  %1583 = vmatprep.subr.bf16.mxu1 %v2063_v29 }
 0x371   : > { %1541 = vmatpush1.bf16.msra.mxu0 %v2060_v32  ;;  %1584 = vmatpush1.bf16.msra.mxu1 %v2062_v33 }
 0x372   : > { %1542 = vmatprep.subr.bf16.mxu0 %v2069_v34  ;;  %1585 = vmatprep.subr.bf16.mxu1 %v2071_v35 }
 0x375   : > { %1543 = vmatpush1.bf16.msra.mxu0 %v2068_v43  ;;  %1586 = vmatpush1.bf16.msra.mxu1 %v2070_v44 }
 0x376   : > { %1544 = vmatprep.subr.bf16.mxu0 %v2077_v40  ;;  %1587 = vmatprep.subr.bf16.mxu1 %v2079_v38 }
 0x379   : > { %1545 = vmatpush1.bf16.msra.mxu0 %v2076_v49  ;;  %1588 = vmatpush1.bf16.msra.mxu1 %v2078_v50 }
 0x37a   : > { %1546 = vmatprep.subr.bf16.mxu0 %v2085_v51  ;;  %1589 = vmatprep.subr.bf16.mxu1 %v2087_v52 }
 0x37d   : > { %1547 = vmatpush1.bf16.msra.mxu0 %v2084_v58  ;;  %1590 = vmatpush1.bf16.msra.mxu1 %v2086_v59 }
 0x37e   : > { %1548 = vmatprep.subr.bf16.mxu0 %v2093_v60  ;;  %1591 = vmatprep.subr.bf16.mxu1 %v2095_v61 }
 0x381   : > { %1549 = vmatpush1.bf16.msra.mxu0 %v2092_v2  ;;  %1592 = vmatpush1.bf16.msra.mxu1 %v2094_v3 }
 0x382   : > { %1550 = vmatprep.subr.bf16.mxu0 %v2101_v4  ;;  %1593 = vmatprep.subr.bf16.mxu1 %v2103_v5 }
 0x385   : > { %1551 = vmatpush1.bf16.msra.mxu0 %v2100_v6  ;;  %1594 = vmatpush1.bf16.msra.mxu1 %v2102_v7 }
 0x388   : > { %1569 = vmatmul.mubr.bf16.vlgmr.msra.gmra.mrb[20].mxu0 %v3043_v19  ;;  %1612 = vmatmul.mubr.bf16.vlgmr.msra.gmra.mrb[20].mxu1 %v3043_v19 }
 0x43b   : > { %v1484_v19 = vpop.f32.mrb[16].mxu0  ;;  %v1527_v20 = vpop.f32.mrb[16].mxu1 }
 0x43c   : > { %v1485_v21 = vadd.f32 %v1484_v19, %v1038_v15  ;;  %v1528_v23 = vadd.f32 %v1527_v20, %v1046_v16  ;;  %v1486_v24 = vpop.f32.mrb[17].mxu0  ;;  %v1529_v25 = vpop.f32.mrb[17].mxu1  ;;  %v3070_v19 = vsub.s32 %v1728_v8, %v3057_v9 }
 0x43d   : > { %v1487_v26 = vadd.f32 %v1486_v24, %v1042_v17  ;;  %v1530_v57 = vadd.f32 %v1529_v25, %v1050_v18  ;;  %v1488_v27 = vpop.f32.mrb[18].mxu0  ;;  %v1531_v28 = vpop.f32.mrb[18].mxu1  ;;  %v1053_v24 = vsub.s32 4, %v3057_v9  ;;  %v1061_v25 = vsub.s32 6, %v3057_v9 }
 0x43e   : > { %v1622_v29 = vmul.f32 0.2, %v1485_v21  ;;  %v1624_v30 = vmul.f32 0.2, %v1528_v23  ;;  %v1489_v31 = vadd.f32 %v1488_v27, %v1038_v15  ;;  %v1532_v36 = vadd.f32 %v1531_v28, %v1046_v16  ;;  %v1490_v22 = vpop.f32.mrb[19].mxu0  ;;  %v1533_v32 = vpop.f32.mrb[19].mxu1 }
 0x43f   : > { %v1623_v33 = vmul.f32 0.2, %v1487_v26  ;;  %v1625_v34 = vmul.f32 0.2, %v1530_v57  ;;  %v1491_v35 = vadd.f32 %v1490_v22, %v1042_v17  ;;  %v1534_v37 = vadd.f32 %v1533_v32, %v1050_v18 }
 0x440   : > { %v1630_v39 = vmul.f32 0.2, %v1489_v31  ;;  %v1632_v41 = vmul.f32 0.2, %v1532_v36  ;;  %v1638_v44 = vmax.f32 %v1485_v21, %v1622_v29  ;;  %v1640_v40 = vmax.f32 %v1528_v23, %v1624_v30 }
 0x441   : > { %v1631_v42 = vmul.f32 0.2, %v1491_v35  ;;  %v1633_v43 = vmul.f32 0.2, %v1534_v37  ;;  %v1639_v46 = vmax.f32 %v1487_v26, %v1623_v33  ;;  %v1641_v47 = vmax.f32 %v1530_v57, %v1625_v34 }
 0x442   : > { %v1646_v38 = vmax.f32 %v1489_v31, %v1630_v39  ;;  %v1648_v45 = vmax.f32 %v1532_v36, %v1632_v41  ;;  %v1057_v27 = vsub.s32 5, %v3057_v9  ;;  %v1065_v28 = vsub.s32 7, %v3057_v9 }
 0x443   : > { %v1647_v48 = vmax.f32 %v1491_v35, %v1631_v42  ;;  %v1649_v49 = vmax.f32 %v1534_v37, %v1633_v43  ;;  %v1054_v30 = vrot.slane %v3061_v12, %v1053_v24  ;;  %v1062_v31 = vrot.slane %v3061_v12, %v1061_v25 }
 0x444   : > { %v1654_v50 = vmax.f32 %v1638_v44, %v1646_v38  ;;  %v1668_v51 = vmax.f32 %v1640_v40, %v1648_v45  ;;  %v1058_v36 = vrot.slane %v3061_v12, %v1057_v27  ;;  %v1066_v22 = vrot.slane %v3061_v12, %v1065_v28 }
 0x445   : > { %v1661_v52 = vmax.f32 %v1639_v46, %v1647_v48  ;;  %v1675_v53 = vmax.f32 %v1641_v47, %v1649_v49 }
 0x446   : > { %v1655_v54 = vrot.slane %v1654_v50, 4  ;;  %v1669_v55 = vrot.slane %v1668_v51, 4 }
 0x447   : > { %v1662_v56 = vrot.slane %v1661_v52, 4  ;;  %v1676_v58 = vrot.slane %v1675_v53, 4 }
 0x448   : > { %v1656_v59 = vmax.f32 %v1654_v50, %v1655_v54  ;;  %v1670_v60 = vmax.f32 %v1668_v51, %v1669_v55 }
 0x449   : > { %v1663_v61 = vmax.f32 %v1661_v52, %v1662_v56  ;;  %v1677_v0 = vmax.f32 %v1675_v53, %v1676_v58 }
 0x44a   : > { %v1657_v1 = vrot.slane %v1656_v59, 2  ;;  %v1671_v2 = vrot.slane %v1670_v60, 2 }
 0x44b   : > { %v1664_v3 = vrot.slane %v1663_v61, 2  ;;  %v1678_v4 = vrot.slane %v1677_v0, 2 }
 0x44c   : > { %v1658_v5 = vmax.f32 %v1656_v59, %v1657_v1  ;;  %v1672_v6 = vmax.f32 %v1670_v60, %v1671_v2 }
 0x44d   : > { %v1665_v7 = vmax.f32 %v1663_v61, %v1664_v3  ;;  %v1679_v10 = vmax.f32 %v1677_v0, %v1678_v4 }
 0x44e   : > { %v1659_v11 = vrot.slane %v1658_v5, 1  ;;  %v1673_v13 = vrot.slane %v1672_v6, 1 }
 0x44f   : > { %v1666_v14 = vrot.slane %v1665_v7, 1  ;;  %v1680_v15 = vrot.slane %v1679_v10, 1 }
 0x450   : > { %v1660_v16 = vmax.f32 %v1658_v5, %v1659_v11  ;;  %v1674_v17 = vmax.f32 %v1672_v6, %v1673_v13 }
 0x451   : > { %v1667_v18 = vmax.f32 %v1665_v7, %v1666_v14  ;;  %v1681_v20 = vmax.f32 %v1679_v10, %v1680_v15 }
 0x453   : > { %v1722_v21 = vcombine.low %v1660_v16, %v1667_v18  ;;  %v1723_v23 = vcombine.low %v1674_v17, %v1681_v20 }
 0x455   : > { %v3075_v26 = vrot.slane %v1722_v21, %v3070_v19  ;;  %v3078_v57 = vrot.slane %v1723_v23, %v3070_v19 }
 0x457   : > { %v1754_v29 = vcombine.low %v3075_v26, %v3078_v57 }
 0x45b   : > { %v1570_v32 = vpop.f32.mrb[20].mxu0  ;;  %v1613_v33 = vpop.f32.mrb[20].mxu1 }
 0x45c   : > { %v1571_v34 = vadd.f32 %v1570_v32, %v1054_v30  ;;  %v1614_v35 = vadd.f32 %v1613_v33, %v1062_v31  ;;  %v1572_v37 = vpop.f32.mrb[21].mxu0  ;;  %v1615_v39 = vpop.f32.mrb[21].mxu1 }
 0x45d   : > { %v1573_v41 = vadd.f32 %v1572_v37, %v1058_v36  ;;  %v1616_v42 = vadd.f32 %v1615_v39, %v1066_v22  ;;  %v1574_v9 = vpop.f32.mrb[22].mxu0  ;;  %v1617_v43 = vpop.f32.mrb[22].mxu1  ;;  %v1762_v39 = vrot.slane %v1754_v29, %v3070_v19 }
 0x45e   : > { %v1626_v44 = vmul.f32 0.2, %v1571_v34  ;;  %v1628_v40 = vmul.f32 0.2, %v1614_v35  ;;  %v1575_v38 = vadd.f32 %v1574_v9, %v1054_v30  ;;  %v1618_v45 = vadd.f32 %v1617_v43, %v1062_v31  ;;  %v1576_v46 = vpop.f32.mrb[23].mxu0  ;;  %v1619_v47 = vpop.f32.mrb[23].mxu1 }
 0x45f   : > { %v1627_v48 = vmul.f32 0.2, %v1573_v41  ;;  %v1629_v49 = vmul.f32 0.2, %v1616_v42  ;;  %v1577_v50 = vadd.f32 %v1576_v46, %v1058_v36  ;;  %v1620_v12 = vadd.f32 %v1619_v47, %v1066_v22 }
 0x460   : > { %v1634_v51 = vmul.f32 0.2, %v1575_v38  ;;  %v1636_v52 = vmul.f32 0.2, %v1618_v45  ;;  %v1642_v55 = vmax.f32 %v1571_v34, %v1626_v44  ;;  %v1644_v56 = vmax.f32 %v1614_v35, %v1628_v40 }
 0x461   : > { %v1635_v53 = vmul.f32 0.2, %v1577_v50  ;;  %v1637_v54 = vmul.f32 0.2, %v1620_v12  ;;  %v1643_v60 = vmax.f32 %v1573_v41, %v1627_v48  ;;  %v1645_v61 = vmax.f32 %v1616_v42, %v1629_v49 }
 0x462   : > { %v1650_v58 = vmax.f32 %v1575_v38, %v1634_v51  ;;  %v1652_v59 = vmax.f32 %v1618_v45, %v1636_v52 }
 0x463   : > { %v1651_v62 = vmax.f32 %v1577_v50, %v1635_v53  ;;  %v1653_v63 = vmax.f32 %v1620_v12, %v1637_v54 }
 0x464   : > { %v1682_v0 = vmax.f32 %v1642_v55, %v1650_v58  ;;  %v1696_v1 = vmax.f32 %v1644_v56, %v1652_v59 }
 0x465   : > { %v1689_v2 = vmax.f32 %v1643_v60, %v1651_v62  ;;  %v1703_v3 = vmax.f32 %v1645_v61, %v1653_v63 }
 0x466   : > { %v1683_v4 = vrot.slane %v1682_v0, 4  ;;  %v1697_v5 = vrot.slane %v1696_v1, 4 }
 0x467   : > { %v1690_v6 = vrot.slane %v1689_v2, 4  ;;  %v1704_v7 = vrot.slane %v1703_v3, 4 }
 0x468   : > { %v1684_v8 = vmax.f32 %v1682_v0, %v1683_v4  ;;  %v1698_v10 = vmax.f32 %v1696_v1, %v1697_v5 }
 0x469   : > { %v1691_v11 = vmax.f32 %v1689_v2, %v1690_v6  ;;  %v1705_v13 = vmax.f32 %v1703_v3, %v1704_v7 }
 0x46a   : > { %v1685_v14 = vrot.slane %v1684_v8, 2  ;;  %v1699_v15 = vrot.slane %v1698_v10, 2 }
 0x46b   : > { %v1692_v16 = vrot.slane %v1691_v11, 2  ;;  %v1706_v17 = vrot.slane %v1705_v13, 2 }
 0x46c   : > { %v1686_v18 = vmax.f32 %v1684_v8, %v1685_v14  ;;  %v1700_v20 = vmax.f32 %v1698_v10, %v1699_v15 }
 0x46d   : > { %v1693_v21 = vmax.f32 %v1691_v11, %v1692_v16  ;;  %v1707_v23 = vmax.f32 %v1705_v13, %v1706_v17 }
 0x46e   : > { %v1687_v24 = vrot.slane %v1686_v18, 1  ;;  %v1701_v25 = vrot.slane %v1700_v20, 1 }
 0x46f   : > { %v1694_v27 = vrot.slane %v1693_v21, 1  ;;  %v1708_v28 = vrot.slane %v1707_v23, 1 }
 0x470   : > { %v1688_v30 = vmax.f32 %v1686_v18, %v1687_v24  ;;  %v1702_v31 = vmax.f32 %v1700_v20, %v1701_v25 }
 0x471   : > { %v1695_v36 = vmax.f32 %v1693_v21, %v1694_v27  ;;  %v1709_v22 = vmax.f32 %v1707_v23, %v1708_v28 }
 0x473   : > { %v1724_v32 = vcombine.low %v1688_v30, %v1695_v36  ;;  %v1725_v33 = vcombine.low %v1702_v31, %v1709_v22 }
 0x475   : > { %v1746_v34 = vrot.slane %v1724_v32, %v3070_v19  ;;  %v1753_v35 = vrot.slane %v1725_v33, %v3070_v19 }
 0x477   : > { %v1755_v37 = vcombine.low %v1746_v34, %v1753_v35 }
 0x479   : > { %v1769_v41 = vrot.slane %v1755_v37, %v3070_v19 }
 0x47b   : > { %v1770_v42 = vcombine.low %v1762_v39, %v1769_v41 }
 0x47d   : > { %1772 = vst [vmem:[%s387_s9] sm:$0xff] %v1770_v42 }
 0x47e   : > { %2534 = shalt.err (!%p2531_p8)
}
 0x47f   : > { %s2535_s18 = scalar_lea.hbm %s3101_s14, 128  ;;  %s2539_s20 = scalar_lea.hbm %s3182_s22, 256 }
 0x480   : > { %p2536_p9 = scmp.ne.s32.totalorder %s3101_s14, %s2535_s18  ;;  %p2540_p3 = scmp.lt.u32.totalorder %s3101_s14, %s3182_s22 }
 0x481   : > { %p2541_p1 = scmp.lt.u32.totalorder %s2539_s20, %s2535_s18  ;;  %p2543_p11 = scmp.lt.u32.totalorder %s2535_s18, %s3101_s14 }
 0x482   : > { %p2537_p4 = pnand %p2536_p9, %p3183_p0 }
 0x483   : > { %p2542_p12 = por %p2541_p1, %p2540_p3 }
 0x484   : > { %p2538_p6 = pneg %p2537_p4 }
 0x485   : > { %p2544_p5 = por %p2543_p11, %p2542_p12 }
 0x487   : > { %p2545_p7 = pnand %p2544_p5, %p2538_p6 }
 0x489   : > { %2548 = shalt.err (!%p2545_p7)
}
 0x48a   : > { %2215 = dma.vmem_to_hbm [thread:$0]  (%p3183_p0), %s3103_s16, 128, %s3101_s14, %s1839_s27  }
 0x48b PF: > { %s1865_s9 = sand.u32 1, %s2595_s24   ;;  %p3184_p10 = scmp.ne.s32.totalorder %s3178_s15, 0 }
 0x48c   : > { %p3185_p13 = scmp.ge.s32.totalorder %s2615_s29, 2  ;;  %s1866_s23 = scalar_lea.sflag [#allocation4], %s1865_s9 }
 0x48e   : > { %p2241_p2 = pnand %p3185_p13, %p3184_p10 }
 0x490   : > { %2590 = dma.done.wait (!%p2241_p2), %s1866_s23, 128  }
 0x491   : > { %2592 = vsyncadd (!%p2241_p2), %s1866_s23, 4294967168  ;;  %s26_s29 = sadd.s32 1, %s2615_s29   ;;  %s3186_s24 = smov %s2599_s25 }
 0x492   : > { %p23_p8 = scmp.ge.s32.totalorder %s26_s29, 4   ;;  %s3187_s25 = smov %s2603_s26 }
 0x493   : > { %s3188_s26 = smov %s2876_s1  ;;  %s3189_s27 = smov %s2611_s28 }
 0x494   : > { %s3190_s28 = smov %s3192_s12  ;;  %25 = sbr.rel (!%p23_p8) target bundleno = 13 (0xd), region = 125 }
 0x49b   :  { %1871 = vsyncpa [#allocation3], 1 }
 0x49c   :  { %1873 = vsyncpa [#allocation3 + $0x1], 1 }
 0x49d   :  { %1874 = vsyncpa [#allocation6], 1 }
 0x49e   :  { %1875 = vsyncpa [#allocation9], 1 }
 0x49f   :  { %1876 = vsyncpa [#allocation12], 1 }
 0x4a0   :  { %1877 = vsyncpa [#allocation4], 1 }
 0x4a1   :  { %1879 = vsyncpa [#allocation4 + $0x1], 1 }

// kernel: transform_net_forward.3
= control target key start
LH: loop header
LB: loop body
LE: loop exit
PB: predicated region body
PF: predicated region fallthrough
CT: control target
= control target key end

     0   :  { %14 = vsyncpa [#allocation3], 0  ;;  %s2830_s0 = inlined_call_operand.vmem [shape: f32[2,1024], index: 0, kind: input, shape index: {}]   ;;  %s2831_s1 = inlined_call_operand.hbm [shape: f32[1024,512], index: 1, kind: input, shape index: {}]   ;;  %s2832_s2 = inlined_call_operand.hbm [shape: f32[1,512], index: 2, kind: input, shape index: {}]   ;;  %s2833_s3 = inlined_call_operand.hbm [shape: f32[512,256], index: 3, kind: input, shape index: {}]   ;;  %s2834_s4 = inlined_call_operand.hbm [shape: f32[1,256], index: 4, kind: input, shape index: {}]   ;;  %s2835_s5 = inlined_call_operand.hbm [shape: f32[256,128], index: 5, kind: input, shape index: {}]   ;;  %s2836_s6 = inlined_call_operand.hbm [shape: f32[1,128], index: 6, kind: input, shape index: {}]   ;;  %s2837_s7 = inlined_call_operand.hbm [shape: f32[2,256], index: 7, kind: output, shape index: {0}]   ;;  %s2838_s8 = inlined_call_operand.vmem [shape: f32[2,128], index: 8, kind: output, shape index: {1}]  }
   0x1   :  { %15 = vsyncpa [#allocation6], 0 }
   0x2   :  { %16 = vsyncpa [#allocation9], 0 }
   0x3   :  { %17 = vsyncpa [#allocation12], 0 }
   0x4   :  { %18 = vsyncpa [#allocation4], 0  ;;  %s2600_s27 = smov [#allocation5]   ;;  %s2601_s29 = smov [#allocation8]  }
   0x5   :  { %s39_s28 = sshll.u32 %s2600_s27, 4  ;;  %s61_s30 = sshll.u32 %s2601_s29, 4  ;;  %s40_s28 = int_to_ptr.vmem [resolvable:$true] %s39_s28  ;;  %s62_s30 = int_to_ptr.vmem [resolvable:$true] %s61_s30 }
   0x6   :  { %s2436_s11 = scalar_lea.hbm %s2832_s2, 64 }
   0x7   :  { %p2437_p0 = scmp.ne.s32.totalorder %s2832_s2, %s2436_s11  ;;  %p2440_p1 = scmp.lt.u32.totalorder %s2436_s11, %s2832_s2 }
   0x9   :  { %p2442_p2 = pnand %p2440_p1, %p2437_p0 }
   0xb   :  { %2445 = shalt.err (!%p2442_p2)
}
   0xc   :  { %s2446_s16 = scalar_lea.vmem %s40_s28, 64  ;;  %p2451_p4 = scmp.lt.s32.totalorder %s40_s28, %s40_s28 }
   0xd   :  { %p2447_p3 = scmp.ne.s32.totalorder %s40_s28, %s2446_s16  ;;  %p2452_p5 = scmp.lt.s32.totalorder %s2446_s16, %s2446_s16 }
   0xf   :  { %p2453_p6 = por %p2452_p5, %p2451_p4 }
  0x11   :  { %p2454_p7 = pnand %p2453_p6, %p2447_p3 }
  0x13   :  { %2457 = shalt.err (!%p2454_p7)
}
  0x14   :  { %42 = dma.hbm_to_vmem [thread:$0]  %s2832_s2, 64, %s40_s28, [#allocation6]  }
  0x15   :  { %s2458_s21 = scalar_lea.hbm %s2834_s4, 32 }
  0x16   :  { %p2459_p8 = scmp.ne.s32.totalorder %s2834_s4, %s2458_s21  ;;  %p2462_p9 = scmp.lt.u32.totalorder %s2458_s21, %s2834_s4 }
  0x18   :  { %p2464_p10 = pnand %p2462_p9, %p2459_p8 }
  0x1a   :  { %2467 = shalt.err (!%p2464_p10)
}
  0x1b   :  { %s2468_s26 = scalar_lea.vmem %s62_s30, 32  ;;  %p2473_p12 = scmp.lt.s32.totalorder %s62_s30, %s62_s30 }
  0x1c   :  { %p2469_p11 = scmp.ne.s32.totalorder %s62_s30, %s2468_s26  ;;  %p2474_p13 = scmp.lt.s32.totalorder %s2468_s26, %s2468_s26 }
  0x1e   :  { %p2475_p0 = por %p2474_p13, %p2473_p12 }
  0x20   :  { %p2476_p1 = pnand %p2475_p0, %p2469_p11 }
  0x22   :  { %2479 = shalt.err (!%p2476_p1)
}
  0x23   :  { %64 = dma.hbm_to_vmem [thread:$0]  %s2834_s4, 32, %s62_s30, [#allocation9]  }
  0x24   :  { %s2602_s28 = smov [#allocation2]   ;;  %s2480_s11 = scalar_lea.hbm %s2831_s1, 65536 }
  0x25   :  { %s26_s29 = sshll.u32 %s2602_s28, 4  ;;  %p2481_p2 = scmp.ne.s32.totalorder %s2831_s1, %s2480_s11  ;;  %s27_s29 = int_to_ptr.vmem [resolvable:$true] %s26_s29 }
  0x26   :  { %p2484_p3 = scmp.lt.u32.totalorder %s2480_s11, %s2831_s1 }
  0x28   :  { %p2486_p4 = pnand %p2484_p3, %p2481_p2 }
  0x2a   :  { %2489 = shalt.err (!%p2486_p4)
}
  0x2b   :  { %s2490_s16 = scalar_lea.vmem %s27_s29, 65536  ;;  %p2495_p6 = scmp.lt.s32.totalorder %s27_s29, %s27_s29 }
  0x2c   :  { %p2491_p5 = scmp.ne.s32.totalorder %s27_s29, %s2490_s16  ;;  %p2496_p7 = scmp.lt.s32.totalorder %s2490_s16, %s2490_s16 }
  0x2e   :  { %p2497_p8 = por %p2496_p7, %p2495_p6 }
  0x30   :  { %p2498_p9 = pnand %p2497_p8, %p2491_p5 }
  0x32   :  { %2501 = shalt.err (!%p2498_p9)
}
  0x33   :  { %s2603_s4 = smov 512   ;;  %s2604_s30 = smov 32  }
  0x34   :  { %32 = dma.hbm_to_vmem [thread:$0]  %s2831_s1, 65536, %s27_s29, [#allocation3], %s2603_s4, %s2603_s4, %s2604_s30  }
  0x35   :  { %s2605_s19 = smov [#allocation7]   ;;  %s2502_s23 = scalar_lea.hbm %s2833_s3, 16384 }
  0x36   :  { %s48_s20 = sshll.u32 %s2605_s19, 4  ;;  %p2503_p10 = scmp.ne.s32.totalorder %s2833_s3, %s2502_s23  ;;  %s49_s20 = int_to_ptr.vmem [resolvable:$true] %s48_s20 }
  0x37   :  { %p2506_p11 = scmp.lt.u32.totalorder %s2502_s23, %s2833_s3 }
  0x39   :  { %p2508_p12 = pnand %p2506_p11, %p2503_p10 }
  0x3b   :  { %2511 = shalt.err (!%p2508_p12)
}
  0x3c   :  { %s2512_s27 = scalar_lea.vmem %s49_s20, 16384  ;;  %p2517_p0 = scmp.lt.s32.totalorder %s49_s20, %s49_s20 }
  0x3d   :  { %p2513_p13 = scmp.ne.s32.totalorder %s49_s20, %s2512_s27  ;;  %p2518_p1 = scmp.lt.s32.totalorder %s2512_s27, %s2512_s27 }
  0x3f   :  { %p2519_p2 = por %p2518_p1, %p2517_p0 }
  0x41   :  { %p2520_p3 = pnand %p2519_p2, %p2513_p13 }
  0x43   :  { %2523 = shalt.err (!%p2520_p3)
}
  0x44   :  { %s2606_s1 = smov 256   ;;  %s2607_s28 = smov 16  }
  0x45   :  { %54 = dma.hbm_to_vmem [thread:$0]  %s2833_s3, 16384, %s49_s20, [#allocation6], %s2606_s1, %s2606_s1, %s2607_s28  }
  0x46   :  { %s2608_s10 = smov [#allocation10]   ;;  %s2524_s14 = scalar_lea.hbm %s2835_s5, 4096 }
  0x47   :  { %s70_s11 = sshll.u32 %s2608_s10, 4  ;;  %p2525_p4 = scmp.ne.s32.totalorder %s2835_s5, %s2524_s14  ;;  %s71_s11 = int_to_ptr.vmem [resolvable:$true] %s70_s11 }
  0x48   :  { %p2528_p5 = scmp.lt.u32.totalorder %s2524_s14, %s2835_s5 }
  0x4a   :  { %p2530_p6 = pnand %p2528_p5, %p2525_p4 }
  0x4c   :  { %2533 = shalt.err (!%p2530_p6)
}
  0x4d   :  { %s2534_s17 = scalar_lea.vmem %s71_s11, 4096  ;;  %p2539_p8 = scmp.lt.s32.totalorder %s71_s11, %s71_s11 }
  0x4e   :  { %p2535_p7 = scmp.ne.s32.totalorder %s71_s11, %s2534_s17  ;;  %p2540_p9 = scmp.lt.s32.totalorder %s2534_s17, %s2534_s17 }
  0x50   :  { %p2541_p10 = por %p2540_p9, %p2539_p8 }
  0x52   :  { %p2542_p11 = pnand %p2541_p10, %p2535_p7 }
  0x54   :  { %2545 = shalt.err (!%p2542_p11)
}
  0x55   :  { %s2609_s3 = smov 128   ;;  %s2610_s18 = smov 8  }
  0x56   :  { %76 = dma.hbm_to_vmem [thread:$0]  %s2835_s5, 4096, %s71_s11, [#allocation9], %s2609_s3, %s2609_s3, %s2610_s18  }
  0x57   :  { %s2611_s21 = smov [#allocation11]   ;;  %s2546_s25 = scalar_lea.hbm %s2836_s6, 16 }
  0x58   :  { %s83_s22 = sshll.u32 %s2611_s21, 4  ;;  %p2547_p12 = scmp.ne.s32.totalorder %s2836_s6, %s2546_s25  ;;  %s84_s22 = int_to_ptr.vmem [resolvable:$true] %s83_s22 }
  0x59   :  { %p2550_p13 = scmp.lt.u32.totalorder %s2546_s25, %s2836_s6 }
  0x5b   :  { %p2552_p0 = pnand %p2550_p13, %p2547_p12 }
  0x5d   :  { %2555 = shalt.err (!%p2552_p0)
}
  0x5e   :  { %s2556_s28 = scalar_lea.vmem %s84_s22, 16  ;;  %s2560_s5 = scalar_lea.vmem %s84_s22, 32 }
  0x5f   :  { %p2557_p1 = scmp.ne.s32.totalorder %s84_s22, %s2556_s28  ;;  %p2561_p2 = scmp.lt.s32.totalorder %s84_s22, %s84_s22 }
  0x60   :  { %p2562_p3 = scmp.lt.s32.totalorder %s2560_s5, %s2556_s28 }
  0x62   :  { %p2563_p4 = por %p2562_p3, %p2561_p2 }
  0x64   :  { %p2564_p5 = pnand %p2563_p4, %p2557_p1 }
  0x66   :  { %2567 = shalt.err (!%p2564_p5)
}
  0x67   :  { %86 = dma.hbm_to_vmem [thread:$0]  %s2836_s6, 16, %s84_s22, [#allocation12]  }
  0x68   :  { %2590 = dma.done.wait [#allocation3], 65536  }
  0x69   :  { %2591 = vsyncadd [#allocation3], 4294901760 }
  0x6a   :  { %2592 = dma.done.wait [#allocation6], 16448  }
  0x6b   :  { %2593 = vsyncadd [#allocation6], 4294950848 }
  0x6c   :  { %2594 = dma.done.wait [#allocation9], 4128  }
  0x6d   :  { %2595 = vsyncadd [#allocation9], 4294963168 }
  0x6e   :  { %2596 = dma.done.wait [#allocation12], 16  }
  0x6f   :  { %2597 = vsyncadd [#allocation12], 4294967280  ;;  %v108_v0 = vld [vmem:[#allocation2 + $0x8] sm:$0xff]  ;;  %v107_v5 = vld [vmem:[#allocation2] sm:$0xff] }
  0x70   :  { %v112_v1 = vld [vmem:[#allocation2 + $0x28] sm:$0xff]  ;;  %v111_v6 = vld [vmem:[#allocation2 + $0x20] sm:$0xff] }
  0x71   :  { %v236_v2 = vld [vmem:[#allocation2 + $0x408] sm:$0xff]  ;;  %v1728_v3 = vpack.c.bf16 %v112_v1, %v108_v0  ;;  %v1730_v8 = vpack.c.bf16 %v111_v6, %v107_v5  ;;  %v235_v9 = vld [vmem:[#allocation2 + $0x400] sm:$0xff] }
  0x72   :  { %v240_v4 = vld [vmem:[#allocation2 + $0x428] sm:$0xff]  ;;  %v239_v10 = vld [vmem:[#allocation2 + $0x420] sm:$0xff] }
  0x73   :  { %v1792_v7 = vpack.c.bf16 %v240_v4, %v236_v2  ;;  %v116_v11 = vld [vmem:[#allocation2 + $0x48] sm:$0xff]  ;;  %1729 = vmatprep.subr.bf16.mxu1 %v1728_v3  ;;  %v1794_v12 = vpack.c.bf16 %v239_v10, %v235_v9  ;;  %v115_v18 = vld [vmem:[#allocation2 + $0x40] sm:$0xff] }
  0x74   :  { %v120_v13 = vld [vmem:[#allocation2 + $0x68] sm:$0xff]  ;;  %1731 = vmatpush1.bf16.msra.mxu1 %v1730_v8  ;;  %v119_v19 = vld [vmem:[#allocation2 + $0x60] sm:$0xff] }
  0x75   :  { %v244_v14 = vld [vmem:[#allocation2 + $0x448] sm:$0xff]  ;;  %1793 = vmatprep.subr.bf16.mxu0 %v1792_v7  ;;  %v1732_v16 = vpack.c.bf16 %v120_v13, %v116_v11  ;;  %v243_v20 = vld [vmem:[#allocation2 + $0x440] sm:$0xff]  ;;  %v1734_v21 = vpack.c.bf16 %v119_v19, %v115_v18 }
  0x76   :  { %v248_v15 = vld [vmem:[#allocation2 + $0x468] sm:$0xff]  ;;  %1795 = vmatpush1.bf16.msra.mxu0 %v1794_v12  ;;  %v247_v22 = vld [vmem:[#allocation2 + $0x460] sm:$0xff] }
  0x77   :  { %v1796_v17 = vpack.c.bf16 %v248_v15, %v244_v14  ;;  %v124_v23 = vld [vmem:[#allocation2 + $0x88] sm:$0xff]  ;;  %1733 = vmatprep.subr.bf16.mxu1 %v1732_v16  ;;  %v1798_v25 = vpack.c.bf16 %v247_v22, %v243_v20  ;;  %v123_v29 = vld [vmem:[#allocation2 + $0x80] sm:$0xff] }
  0x78   :  { %v128_v24 = vld [vmem:[#allocation2 + $0xa8] sm:$0xff]  ;;  %v127_v31 = vld [vmem:[#allocation2 + $0xa0] sm:$0xff]  ;;  %1735 = vmatpush1.bf16.msra.mxu1 %v1734_v21 }
  0x79   :  { %1797 = vmatprep.subr.bf16.mxu0 %v1796_v17  ;;  %v1736_v26 = vpack.c.bf16 %v128_v24, %v124_v23  ;;  %v252_v27 = vld [vmem:[#allocation2 + $0x488] sm:$0xff]  ;;  %v251_v32 = vld [vmem:[#allocation2 + $0x480] sm:$0xff]  ;;  %v1738_v34 = vpack.c.bf16 %v127_v31, %v123_v29 }
  0x7a   :  { %v256_v28 = vld [vmem:[#allocation2 + $0x4a8] sm:$0xff]  ;;  %v255_v33 = vld [vmem:[#allocation2 + $0x4a0] sm:$0xff]  ;;  %1799 = vmatpush1.bf16.msra.mxu0 %v1798_v25 }
  0x7b   :  { %v1800_v30 = vpack.c.bf16 %v256_v28, %v252_v27  ;;  %v132_v35 = vld [vmem:[#allocation2 + $0xc8] sm:$0xff]  ;;  %1737 = vmatprep.subr.bf16.mxu1 %v1736_v26  ;;  %v1802_v38 = vpack.c.bf16 %v255_v33, %v251_v32  ;;  %v131_v41 = vld [vmem:[#allocation2 + $0xc0] sm:$0xff] }
  0x7c   :  { %v136_v36 = vld [vmem:[#allocation2 + $0xe8] sm:$0xff]  ;;  %v135_v42 = vld [vmem:[#allocation2 + $0xe0] sm:$0xff]  ;;  %1739 = vmatpush1.bf16.msra.mxu1 %v1738_v34 }
  0x7d   :  { %v260_v37 = vld [vmem:[#allocation2 + $0x4c8] sm:$0xff]  ;;  %v1740_v39 = vpack.c.bf16 %v136_v36, %v132_v35  ;;  %1801 = vmatprep.subr.bf16.mxu0 %v1800_v30  ;;  %v259_v44 = vld [vmem:[#allocation2 + $0x4c0] sm:$0xff]  ;;  %v1742_v50 = vpack.c.bf16 %v135_v42, %v131_v41 }
  0x7e   :  { %v264_v40 = vld [vmem:[#allocation2 + $0x4e8] sm:$0xff]  ;;  %v263_v45 = vld [vmem:[#allocation2 + $0x4e0] sm:$0xff]  ;;  %1803 = vmatpush1.bf16.msra.mxu0 %v1802_v38 }
  0x7f   :  { %v1804_v43 = vpack.c.bf16 %v264_v40, %v260_v37  ;;  %v140_v46 = vld [vmem:[#allocation2 + $0x108] sm:$0xff]  ;;  %1741 = vmatprep.subr.bf16.mxu1 %v1740_v39  ;;  %v1806_v51 = vpack.c.bf16 %v263_v45, %v259_v44  ;;  %v139_v53 = vld [vmem:[#allocation2 + $0x100] sm:$0xff] }
  0x80   :  { %v144_v47 = vld [vmem:[#allocation2 + $0x128] sm:$0xff]  ;;  %v143_v54 = vld [vmem:[#allocation2 + $0x120] sm:$0xff]  ;;  %1743 = vmatpush1.bf16.msra.mxu1 %v1742_v50 }
  0x81   :  { %v268_v48 = vld [vmem:[#allocation2 + $0x508] sm:$0xff]  ;;  %v1744_v52 = vpack.c.bf16 %v144_v47, %v140_v46  ;;  %v267_v55 = vld [vmem:[#allocation2 + $0x500] sm:$0xff]  ;;  %1805 = vmatprep.subr.bf16.mxu0 %v1804_v43  ;;  %v1746_v62 = vpack.c.bf16 %v143_v54, %v139_v53  ;;  %v621_v46 = vlaneseq  ;;  %v2612_v47 = vmov 1983009808  }
  0x82   :  { %v272_v49 = vld [vmem:[#allocation2 + $0x528] sm:$0xff]  ;;  %v271_v57 = vld [vmem:[#allocation2 + $0x520] sm:$0xff]  ;;  %1807 = vmatpush1.bf16.msra.mxu0 %v1806_v51 }
  0x83   :  { %v1808_v56 = vpack.c.bf16 %v272_v49, %v268_v48  ;;  %v148_v58 = vld [vmem:[#allocation2 + $0x148] sm:$0xff]  ;;  %1745 = vmatprep.subr.bf16.mxu1 %v1744_v52  ;;  %v1810_v63 = vpack.c.bf16 %v271_v57, %v267_v55  ;;  %v147_v1 = vld [vmem:[#allocation2 + $0x140] sm:$0xff]  ;;  %v645_v48 = vunpack.c.l.s4 %v2612_v47 }
  0x84   :  { %v152_v59 = vld [vmem:[#allocation2 + $0x168] sm:$0xff]  ;;  %v151_v2 = vld [vmem:[#allocation2 + $0x160] sm:$0xff]  ;;  %1747 = vmatpush1.bf16.msra.mxu1 %v1746_v62 }
  0x85   :  { %v276_v60 = vld [vmem:[#allocation2 + $0x548] sm:$0xff]  ;;  %v1748_v0 = vpack.c.bf16 %v152_v59, %v148_v58  ;;  %v275_v3 = vld [vmem:[#allocation2 + $0x540] sm:$0xff]  ;;  %1809 = vmatprep.subr.bf16.mxu0 %v1808_v56  ;;  %v1750_v10 = vpack.c.bf16 %v151_v2, %v147_v1  ;;  %v646_v62 = vunpack.c.0.s8 %v645_v48 }
  0x86   :  { %v280_v61 = vld [vmem:[#allocation2 + $0x568] sm:$0xff]  ;;  %v279_v5 = vld [vmem:[#allocation2 + $0x560] sm:$0xff]  ;;  %1811 = vmatpush1.bf16.msra.mxu0 %v1810_v63 }
  0x87   :  { %v1812_v4 = vpack.c.bf16 %v280_v61, %v276_v60  ;;  %v156_v6 = vld [vmem:[#allocation2 + $0x188] sm:$0xff]  ;;  %1749 = vmatprep.subr.bf16.mxu1 %v1748_v0  ;;  %v1814_v11 = vpack.c.bf16 %v279_v5, %v275_v3  ;;  %v155_v13 = vld [vmem:[#allocation2 + $0x180] sm:$0xff]  ;;  %v2731_v61 = vshrl.u32 %v621_v46, 7 }
  0x88   :  { %v160_v7 = vld [vmem:[#allocation2 + $0x1a8] sm:$0xff]  ;;  %v159_v14 = vld [vmem:[#allocation2 + $0x1a0] sm:$0xff]  ;;  %1751 = vmatpush1.bf16.msra.mxu1 %v1750_v10 }
  0x89   :  { %v284_v8 = vld [vmem:[#allocation2 + $0x588] sm:$0xff]  ;;  %v1752_v12 = vpack.c.bf16 %v160_v7, %v156_v6  ;;  %v283_v15 = vld [vmem:[#allocation2 + $0x580] sm:$0xff]  ;;  %1813 = vmatprep.subr.bf16.mxu0 %v1812_v4  ;;  %v1754_v22 = vpack.c.bf16 %v159_v14, %v155_v13 }
  0x8a   :  { %v288_v9 = vld [vmem:[#allocation2 + $0x5a8] sm:$0xff]  ;;  %v287_v17 = vld [vmem:[#allocation2 + $0x5a0] sm:$0xff]  ;;  %1815 = vmatpush1.bf16.msra.mxu0 %v1814_v11  ;;  %v2734_v11 = vsub.s32 %v646_v62, %v2731_v61 }
  0x8b   :  { %v1816_v16 = vpack.c.bf16 %v288_v9, %v284_v8  ;;  %v164_v18 = vld [vmem:[#allocation2 + $0x1c8] sm:$0xff]  ;;  %1753 = vmatprep.subr.bf16.mxu1 %v1752_v12  ;;  %v1818_v23 = vpack.c.bf16 %v287_v17, %v283_v15  ;;  %v163_v25 = vld [vmem:[#allocation2 + $0x1c0] sm:$0xff] }
  0x8c   :  { %v168_v19 = vld [vmem:[#allocation2 + $0x1e8] sm:$0xff]  ;;  %v167_v26 = vld [vmem:[#allocation2 + $0x1e0] sm:$0xff]  ;;  %1755 = vmatpush1.bf16.msra.mxu1 %v1754_v22 }
  0x8d   :  { %v292_v20 = vld [vmem:[#allocation2 + $0x5c8] sm:$0xff]  ;;  %v1756_v24 = vpack.c.bf16 %v168_v19, %v164_v18  ;;  %v291_v27 = vld [vmem:[#allocation2 + $0x5c0] sm:$0xff]  ;;  %1817 = vmatprep.subr.bf16.mxu0 %v1816_v16  ;;  %v1758_v34 = vpack.c.bf16 %v167_v26, %v163_v25 }
  0x8e   :  { %v296_v21 = vld [vmem:[#allocation2 + $0x5e8] sm:$0xff]  ;;  %v295_v29 = vld [vmem:[#allocation2 + $0x5e0] sm:$0xff]  ;;  %1819 = vmatpush1.bf16.msra.mxu0 %v1818_v23 }
  0x8f   :  { %v1820_v28 = vpack.c.bf16 %v296_v21, %v292_v20  ;;  %v172_v30 = vld [vmem:[#allocation2 + $0x208] sm:$0xff]  ;;  %1757 = vmatprep.subr.bf16.mxu1 %v1756_v24  ;;  %v1822_v35 = vpack.c.bf16 %v295_v29, %v291_v27  ;;  %v171_v37 = vld [vmem:[#allocation2 + $0x200] sm:$0xff] }
  0x90   :  { %v176_v31 = vld [vmem:[#allocation2 + $0x228] sm:$0xff]  ;;  %v175_v38 = vld [vmem:[#allocation2 + $0x220] sm:$0xff]  ;;  %1759 = vmatpush1.bf16.msra.mxu1 %v1758_v34 }
  0x91   :  { %v300_v32 = vld [vmem:[#allocation2 + $0x608] sm:$0xff]  ;;  %v1760_v36 = vpack.c.bf16 %v176_v31, %v172_v30  ;;  %v299_v39 = vld [vmem:[#allocation2 + $0x600] sm:$0xff]  ;;  %1821 = vmatprep.subr.bf16.mxu0 %v1820_v28  ;;  %v1762_v49 = vpack.c.bf16 %v175_v38, %v171_v37 }
  0x92   :  { %v304_v33 = vld [vmem:[#allocation2 + $0x628] sm:$0xff]  ;;  %v303_v41 = vld [vmem:[#allocation2 + $0x620] sm:$0xff]  ;;  %1823 = vmatpush1.bf16.msra.mxu0 %v1822_v35 }
  0x93   :  { %v1824_v40 = vpack.c.bf16 %v304_v33, %v300_v32  ;;  %v180_v42 = vld [vmem:[#allocation2 + $0x248] sm:$0xff]  ;;  %1761 = vmatprep.subr.bf16.mxu1 %v1760_v36  ;;  %v1826_v50 = vpack.c.bf16 %v303_v41, %v299_v39  ;;  %v179_v52 = vld [vmem:[#allocation2 + $0x240] sm:$0xff] }
  0x94   :  { %v184_v43 = vld [vmem:[#allocation2 + $0x268] sm:$0xff]  ;;  %v183_v53 = vld [vmem:[#allocation2 + $0x260] sm:$0xff]  ;;  %1763 = vmatpush1.bf16.msra.mxu1 %v1762_v49 }
  0x95   :  { %v308_v44 = vld [vmem:[#allocation2 + $0x648] sm:$0xff]  ;;  %v1764_v51 = vpack.c.bf16 %v184_v43, %v180_v42  ;;  %v307_v54 = vld [vmem:[#allocation2 + $0x640] sm:$0xff]  ;;  %1825 = vmatprep.subr.bf16.mxu0 %v1824_v40  ;;  %v1766_v63 = vpack.c.bf16 %v183_v53, %v179_v52 }
  0x96   :  { %v312_v45 = vld [vmem:[#allocation2 + $0x668] sm:$0xff]  ;;  %v311_v56 = vld [vmem:[#allocation2 + $0x660] sm:$0xff]  ;;  %1827 = vmatpush1.bf16.msra.mxu0 %v1826_v50 }
  0x97   :  { %v1828_v55 = vpack.c.bf16 %v312_v45, %v308_v44  ;;  %v188_v57 = vld [vmem:[#allocation2 + $0x288] sm:$0xff]  ;;  %1765 = vmatprep.subr.bf16.mxu1 %v1764_v51  ;;  %v1830_v0 = vpack.c.bf16 %v311_v56, %v307_v54  ;;  %v187_v2 = vld [vmem:[#allocation2 + $0x280] sm:$0xff] }
  0x98   :  { %v192_v58 = vld [vmem:[#allocation2 + $0x2a8] sm:$0xff]  ;;  %v191_v3 = vld [vmem:[#allocation2 + $0x2a0] sm:$0xff]  ;;  %1767 = vmatpush1.bf16.msra.mxu1 %v1766_v63 }
  0x99   :  { %v316_v59 = vld [vmem:[#allocation2 + $0x688] sm:$0xff]  ;;  %v1768_v1 = vpack.c.bf16 %v192_v58, %v188_v57  ;;  %v315_v4 = vld [vmem:[#allocation2 + $0x680] sm:$0xff]  ;;  %1829 = vmatprep.subr.bf16.mxu0 %v1828_v55  ;;  %v1770_v12 = vpack.c.bf16 %v191_v3, %v187_v2 }
  0x9a   :  { %v320_v60 = vld [vmem:[#allocation2 + $0x6a8] sm:$0xff]  ;;  %v319_v6 = vld [vmem:[#allocation2 + $0x6a0] sm:$0xff]  ;;  %1831 = vmatpush1.bf16.msra.mxu0 %v1830_v0 }
  0x9b   :  { %v1832_v5 = vpack.c.bf16 %v320_v60, %v316_v59  ;;  %v196_v7 = vld [vmem:[#allocation2 + $0x2c8] sm:$0xff]  ;;  %v195_v13 = vld [vmem:[#allocation2 + $0x2c0] sm:$0xff]  ;;  %1769 = vmatprep.subr.bf16.mxu1 %v1768_v1  ;;  %v1834_v14 = vpack.c.bf16 %v319_v6, %v315_v4 }
  0x9c   :  { %v200_v8 = vld [vmem:[#allocation2 + $0x2e8] sm:$0xff]  ;;  %v199_v16 = vld [vmem:[#allocation2 + $0x2e0] sm:$0xff]  ;;  %1771 = vmatpush1.bf16.msra.mxu1 %v1770_v12  ;;  %v110_v12 = vld [vmem:[#allocation2 + $0x18] sm:$0xff] }
  0x9d   :  { %v324_v9 = vld [vmem:[#allocation2 + $0x6c8] sm:$0xff]  ;;  %v1772_v15 = vpack.c.bf16 %v200_v8, %v196_v7  ;;  %v323_v17 = vld [vmem:[#allocation2 + $0x6c0] sm:$0xff]  ;;  %1833 = vmatprep.subr.bf16.mxu0 %v1832_v5  ;;  %v1774_v27 = vpack.c.bf16 %v199_v16, %v195_v13  ;;  %v114_v13 = vld [vmem:[#allocation2 + $0x38] sm:$0xff] }
  0x9e   :  { %v328_v10 = vld [vmem:[#allocation2 + $0x6e8] sm:$0xff]  ;;  %v327_v18 = vld [vmem:[#allocation2 + $0x6e0] sm:$0xff]  ;;  %1835 = vmatpush1.bf16.msra.mxu0 %v1834_v14 }
  0x9f   :  { %v1836_v19 = vpack.c.bf16 %v328_v10, %v324_v9  ;;  %v204_v20 = vld [vmem:[#allocation2 + $0x308] sm:$0xff]  ;;  %v105_v22 = vld [vmem:[%s2830_s0] sm:$0xff]  ;;  %v1838_v28 = vpack.c.bf16 %v327_v18, %v323_v17  ;;  %1773 = vmatprep.subr.bf16.mxu1 %v1772_v15  ;;  %v1984_v18 = vpack.c.bf16 %v114_v13, %v110_v12  ;;  %v150_v13 = vld [vmem:[#allocation2 + $0x158] sm:$0xff] }
  0xa0   :  { %v208_v21 = vld [vmem:[#allocation2 + $0x328] sm:$0xff]  ;;  %v2740_v25 = vrot.slane %v105_v22, %v2734_v11  ;;  %v643_v26 = vcombine.high %v105_v22, %v105_v22  ;;  %v203_v30 = vld [vmem:[#allocation2 + $0x300] sm:$0xff]  ;;  %1775 = vmatpush1.bf16.msra.mxu1 %v1774_v27 }
  0xa1   :  { %v332_v23 = vld [vmem:[#allocation2 + $0x708] sm:$0xff]  ;;  %v1776_v29 = vpack.c.bf16 %v208_v21, %v204_v20  ;;  %v207_v31 = vld [vmem:[#allocation2 + $0x320] sm:$0xff]  ;;  %1837 = vmatprep.subr.bf16.mxu0 %v1836_v19  ;;  %v109_v20 = vld [vmem:[#allocation2 + $0x10] sm:$0xff] }
  0xa2   :  { %v336_v24 = vld [vmem:[#allocation2 + $0x728] sm:$0xff]  ;;  %v331_v32 = vld [vmem:[#allocation2 + $0x700] sm:$0xff]  ;;  %v2744_v33 = vcombine.high %v2740_v25, %v2740_v25  ;;  %v2747_v34 = vrot.slane %v643_v26, %v2734_v11  ;;  %v1778_v42 = vpack.c.bf16 %v207_v31, %v203_v30  ;;  %1839 = vmatpush1.bf16.msra.mxu0 %v1838_v28  ;;  %v113_v21 = vld [vmem:[#allocation2 + $0x30] sm:$0xff] }
  0xa3   :  { %v1840_v35 = vpack.c.bf16 %v336_v24, %v332_v23  ;;  %v335_v36 = vld [vmem:[#allocation2 + $0x720] sm:$0xff]  ;;  %v212_v37 = vld [vmem:[#allocation2 + $0x348] sm:$0xff]  ;;  %1777 = vmatprep.subr.bf16.mxu1 %v1776_v29  ;;  %v118_v24 = vld [vmem:[#allocation2 + $0x58] sm:$0xff]  ;;  %v1986_v29 = vpack.c.bf16 %v113_v21, %v109_v20 }
  0xa4   :  { %v216_v38 = vld [vmem:[#allocation2 + $0x368] sm:$0xff]  ;;  %749 = vmatprep.mubr.f32.mxu1 %v2744_v33  ;;  %v2752_v41 = vcombine.high %v2747_v34, %v2747_v34  ;;  %v1842_v43 = vpack.c.bf16 %v335_v36, %v331_v32  ;;  %v211_v45 = vld [vmem:[#allocation2 + $0x340] sm:$0xff]  ;;  %1779 = vmatpush1.bf16.msra.mxu1 %v1778_v42  ;;  %v122_v26 = vld [vmem:[#allocation2 + $0x78] sm:$0xff] }
  0xa5   :  { %v340_v39 = vld [vmem:[#allocation2 + $0x748] sm:$0xff]  ;;  %v1780_v44 = vpack.c.bf16 %v216_v38, %v212_v37  ;;  %v215_v46 = vld [vmem:[#allocation2 + $0x360] sm:$0xff]  ;;  %1841 = vmatprep.subr.bf16.mxu0 %v1840_v35  ;;  %v1988_v31 = vpack.c.bf16 %v122_v26, %v118_v24  ;;  %v117_v35 = vld [vmem:[#allocation2 + $0x50] sm:$0xff] }
  0xa6   :  { %v344_v40 = vld [vmem:[#allocation2 + $0x768] sm:$0xff]  ;;  %v339_v47 = vld [vmem:[#allocation2 + $0x740] sm:$0xff]  ;;  %820 = vmatprep.mubr.f32.mxu0 %v2752_v41  ;;  %v1782_v54 = vpack.c.bf16 %v215_v46, %v211_v45  ;;  %1843 = vmatpush1.bf16.msra.mxu0 %v1842_v43  ;;  %v121_v36 = vld [vmem:[#allocation2 + $0x70] sm:$0xff] }
  0xa7   :  { %v1844_v48 = vpack.c.bf16 %v344_v40, %v340_v39  ;;  %v343_v49 = vld [vmem:[#allocation2 + $0x760] sm:$0xff]  ;;  %v220_v50 = vld [vmem:[#allocation2 + $0x388] sm:$0xff]  ;;  %1781 = vmatprep.subr.bf16.mxu1 %v1780_v44  ;;  %v126_v39 = vld [vmem:[#allocation2 + $0x98] sm:$0xff]  ;;  %v1990_v44 = vpack.c.bf16 %v121_v36, %v117_v35 }
  0xa8   :  { %v224_v51 = vld [vmem:[#allocation2 + $0x3a8] sm:$0xff]  ;;  %v1846_v55 = vpack.c.bf16 %v343_v49, %v339_v47  ;;  %v219_v57 = vld [vmem:[#allocation2 + $0x380] sm:$0xff]  ;;  %1783 = vmatpush1.bf16.msra.mxu1 %v1782_v54  ;;  %v130_v40 = vld [vmem:[#allocation2 + $0xb8] sm:$0xff] }
  0xa9   :  { %v348_v52 = vld [vmem:[#allocation2 + $0x788] sm:$0xff]  ;;  %v1784_v56 = vpack.c.bf16 %v224_v51, %v220_v50  ;;  %v223_v58 = vld [vmem:[#allocation2 + $0x3a0] sm:$0xff]  ;;  %1845 = vmatprep.subr.bf16.mxu0 %v1844_v48  ;;  %v1992_v46 = vpack.c.bf16 %v130_v40, %v126_v39  ;;  %v125_v48 = vld [vmem:[#allocation2 + $0x90] sm:$0xff] }
  0xaa   :  { %v352_v53 = vld [vmem:[#allocation2 + $0x7a8] sm:$0xff]  ;;  %v347_v59 = vld [vmem:[#allocation2 + $0x780] sm:$0xff]  ;;  %v1786_v3 = vpack.c.bf16 %v223_v58, %v219_v57  ;;  %1847 = vmatpush1.bf16.msra.mxu0 %v1846_v55  ;;  %v129_v49 = vld [vmem:[#allocation2 + $0xb0] sm:$0xff] }
  0xab   :  { %v1848_v60 = vpack.c.bf16 %v352_v53, %v348_v52  ;;  %v351_v62 = vld [vmem:[#allocation2 + $0x7a0] sm:$0xff]  ;;  %v228_v63 = vld [vmem:[#allocation2 + $0x3c8] sm:$0xff]  ;;  %1785 = vmatprep.subr.bf16.mxu1 %v1784_v56  ;;  %v134_v52 = vld [vmem:[#allocation2 + $0xd8] sm:$0xff]  ;;  %v1994_v56 = vpack.c.bf16 %v129_v49, %v125_v48 }
  0xac   :  { %v232_v0 = vld [vmem:[#allocation2 + $0x3e8] sm:$0xff]  ;;  %v1850_v4 = vpack.c.bf16 %v351_v62, %v347_v59  ;;  %v227_v6 = vld [vmem:[#allocation2 + $0x3c0] sm:$0xff]  ;;  %1787 = vmatpush1.bf16.msra.mxu1 %v1786_v3  ;;  %v138_v53 = vld [vmem:[#allocation2 + $0xf8] sm:$0xff] }
  0xad   :  { %v356_v1 = vld [vmem:[#allocation2 + $0x7c8] sm:$0xff]  ;;  %v1788_v5 = vpack.c.bf16 %v232_v0, %v228_v63  ;;  %v231_v7 = vld [vmem:[#allocation2 + $0x3e0] sm:$0xff]  ;;  %1849 = vmatprep.subr.bf16.mxu0 %v1848_v60  ;;  %v1996_v58 = vpack.c.bf16 %v138_v53, %v134_v52  ;;  %v133_v60 = vld [vmem:[#allocation2 + $0xd0] sm:$0xff] }
  0xae   :  { %v360_v2 = vld [vmem:[#allocation2 + $0x7e8] sm:$0xff]  ;;  %v355_v8 = vld [vmem:[#allocation2 + $0x7c0] sm:$0xff]  ;;  %v1790_v16 = vpack.c.bf16 %v231_v7, %v227_v6  ;;  %1851 = vmatpush1.bf16.msra.mxu0 %v1850_v4  ;;  %v137_v62 = vld [vmem:[#allocation2 + $0xf0] sm:$0xff] }
  0xaf   :  { %v1852_v9 = vpack.c.bf16 %v360_v2, %v356_v1  ;;  %v359_v10 = vld [vmem:[#allocation2 + $0x7e0] sm:$0xff]  ;;  %v364_v14 = vld [vmem:[#allocation2 + $0x808] sm:$0xff]  ;;  %1789 = vmatprep.subr.bf16.mxu1 %v1788_v5  ;;  %v142_v1 = vld [vmem:[#allocation2 + $0x118] sm:$0xff] }
  0xb0   :  { %v368_v15 = vld [vmem:[#allocation2 + $0x828] sm:$0xff]  ;;  %v1854_v17 = vpack.c.bf16 %v359_v10, %v355_v8  ;;  %v363_v19 = vld [vmem:[#allocation2 + $0x800] sm:$0xff]  ;;  %1791 = vmatpush1.bf16.msra.mxu1 %v1790_v16  ;;  %v146_v2 = vld [vmem:[#allocation2 + $0x138] sm:$0xff] }
  0xb1   :  { %1853 = vmatprep.subr.bf16.mxu0 %v1852_v9  ;;  %v1856_v22 = vpack.c.bf16 %v368_v15, %v364_v14  ;;  %v367_v23 = vld [vmem:[#allocation2 + $0x820] sm:$0xff]  ;;  %v372_v27 = vld [vmem:[#allocation2 + $0x848] sm:$0xff]  ;;  %1985 = vmatprep.subr.bf16.mxu1 %v1984_v18  ;;  %v2000_v6 = vpack.c.bf16 %v146_v2, %v142_v1  ;;  %v141_v8 = vld [vmem:[#allocation2 + $0x110] sm:$0xff] }
  0xb2   :  { %v376_v28 = vld [vmem:[#allocation2 + $0x868] sm:$0xff]  ;;  %1855 = vmatpush1.bf16.msra.mxu0 %v1854_v17  ;;  %v1858_v30 = vpack.c.bf16 %v367_v23, %v363_v19  ;;  %v371_v32 = vld [vmem:[#allocation2 + $0x840] sm:$0xff]  ;;  %v145_v9 = vld [vmem:[#allocation2 + $0x130] sm:$0xff] }
  0xb3   :  { %1857 = vmatprep.subr.bf16.mxu0 %v1856_v22  ;;  %v1860_v37 = vpack.c.bf16 %v376_v28, %v372_v27  ;;  %v375_v38 = vld [vmem:[#allocation2 + $0x860] sm:$0xff]  ;;  %750 = vmatmul.mubr.f32.vlgmr.msra.gmra.mrb[0].mxu1 %v2740_v25  ;;  %v380_v42 = vld [vmem:[#allocation2 + $0x888] sm:$0xff]  ;;  %v154_v14 = vld [vmem:[#allocation2 + $0x178] sm:$0xff]  ;;  %v2002_v17 = vpack.c.bf16 %v145_v9, %v141_v8 }
  0xb4   :  { %v384_v43 = vld [vmem:[#allocation2 + $0x8a8] sm:$0xff]  ;;  %1987 = vmatpush1.bf16.msra.mxu1 %v1986_v29  ;;  %v1862_v45 = vpack.c.bf16 %v375_v38, %v371_v32  ;;  %v379_v47 = vld [vmem:[#allocation2 + $0x880] sm:$0xff]  ;;  %1033 = vmatprep.mubr.f32.mxu1 %v2744_v33  ;;  %v1998_v33 = vpack.c.bf16 %v137_v62, %v133_v60  ;;  %v2004_v19 = vpack.c.bf16 %v154_v14, %v150_v13  ;;  %v149_v21 = vld [vmem:[#allocation2 + $0x150] sm:$0xff] }
  0xb5   :  { %821 = vmatmul.mubr.f32.vlgmr.msra.gmra.mrb[0].mxu0 %v2747_v34  ;;  %1989 = vmatprep.subr.bf16.mxu1 %v1988_v31  ;;  %v1864_v50 = vpack.c.bf16 %v384_v43, %v380_v42  ;;  %v383_v51 = vld [vmem:[#allocation2 + $0x8a0] sm:$0xff]  ;;  %v388_v54 = vld [vmem:[#allocation2 + $0x8c8] sm:$0xff]  ;;  %v153_v22 = vld [vmem:[#allocation2 + $0x170] sm:$0xff] }
  0xb6   :  { %1859 = vmatpush1.bf16.msra.mxu0 %v1858_v30  ;;  %v392_v55 = vld [vmem:[#allocation2 + $0x8e8] sm:$0xff]  ;;  %v1866_v57 = vpack.c.bf16 %v383_v51, %v379_v47  ;;  %v387_v59 = vld [vmem:[#allocation2 + $0x8c0] sm:$0xff]  ;;  %v158_v26 = vld [vmem:[#allocation2 + $0x198] sm:$0xff]  ;;  %v2006_v30 = vpack.c.bf16 %v153_v22, %v149_v21 }
  0xb7   :  { %1861 = vmatprep.subr.bf16.mxu0 %v1860_v37  ;;  %v1868_v63 = vpack.c.bf16 %v392_v55, %v388_v54  ;;  %v391_v0 = vld [vmem:[#allocation2 + $0x8e0] sm:$0xff]  ;;  %v396_v3 = vld [vmem:[#allocation2 + $0x908] sm:$0xff]  ;;  %v162_v27 = vld [vmem:[#allocation2 + $0x1b8] sm:$0xff] }
  0xb8   :  { %1991 = vmatpush1.bf16.msra.mxu1 %v1990_v44  ;;  %v400_v4 = vld [vmem:[#allocation2 + $0x928] sm:$0xff]  ;;  %v1870_v5 = vpack.c.bf16 %v391_v0, %v387_v59  ;;  %v395_v7 = vld [vmem:[#allocation2 + $0x900] sm:$0xff]  ;;  %v2008_v35 = vpack.c.bf16 %v162_v27, %v158_v26  ;;  %v157_v36 = vld [vmem:[#allocation2 + $0x190] sm:$0xff] }
  0xb9   :  { %1993 = vmatprep.subr.bf16.mxu1 %v1992_v46  ;;  %v1872_v10 = vpack.c.bf16 %v400_v4, %v396_v3  ;;  %v399_v12 = vld [vmem:[#allocation2 + $0x920] sm:$0xff]  ;;  %v404_v15 = vld [vmem:[#allocation2 + $0x948] sm:$0xff]  ;;  %v161_v37 = vld [vmem:[#allocation2 + $0x1b0] sm:$0xff] }
  0xba   :  { %1863 = vmatpush1.bf16.msra.mxu0 %v1862_v45  ;;  %v408_v16 = vld [vmem:[#allocation2 + $0x968] sm:$0xff]  ;;  %v1874_v18 = vpack.c.bf16 %v399_v12, %v395_v7  ;;  %v403_v20 = vld [vmem:[#allocation2 + $0x940] sm:$0xff]  ;;  %v166_v42 = vld [vmem:[#allocation2 + $0x1d8] sm:$0xff]  ;;  %v2010_v47 = vpack.c.bf16 %v161_v37, %v157_v36 }
  0xbb   :  { %1865 = vmatprep.subr.bf16.mxu0 %v1864_v50  ;;  %v1876_v23 = vpack.c.bf16 %v408_v16, %v404_v15  ;;  %v407_v24 = vld [vmem:[#allocation2 + $0x960] sm:$0xff]  ;;  %v412_v28 = vld [vmem:[#allocation2 + $0x988] sm:$0xff]  ;;  %v170_v43 = vld [vmem:[#allocation2 + $0x1f8] sm:$0xff] }
  0xbc   :  { %1995 = vmatpush1.bf16.msra.mxu1 %v1994_v56  ;;  %v416_v29 = vld [vmem:[#allocation2 + $0x9a8] sm:$0xff]  ;;  %v411_v31 = vld [vmem:[#allocation2 + $0x980] sm:$0xff]  ;;  %v1878_v32 = vpack.c.bf16 %v407_v24, %v403_v20  ;;  %v2012_v50 = vpack.c.bf16 %v170_v43, %v166_v42  ;;  %v165_v52 = vld [vmem:[#allocation2 + $0x1d0] sm:$0xff] }
  0xbd   :  { %1997 = vmatprep.subr.bf16.mxu1 %v1996_v58  ;;  %v2761_v38 = vld [vmem:[%s2830_s0 + $0x8] sm:$0xff]  ;;  %v1880_v39 = vpack.c.bf16 %v416_v29, %v412_v28  ;;  %v415_v40 = vld [vmem:[#allocation2 + $0x9a0] sm:$0xff]  ;;  %v169_v53 = vld [vmem:[#allocation2 + $0x1f0] sm:$0xff]  ;;  %s2613_s0 = smov [#allocation13]  }
  0xbe   :  { %1867 = vmatpush1.bf16.msra.mxu0 %v1866_v57  ;;  %v2765_v44 = vrot.slane %v2761_v38, %v2734_v11  ;;  %v420_v45 = vld [vmem:[#allocation2 + $0x9c8] sm:$0xff]  ;;  %v1882_v49 = vpack.c.bf16 %v415_v40, %v411_v31  ;;  %v419_v51 = vld [vmem:[#allocation2 + $0x9c0] sm:$0xff]  ;;  %v174_v56 = vld [vmem:[#allocation2 + $0x218] sm:$0xff]  ;;  %v2014_v60 = vpack.c.bf16 %v169_v53, %v165_v52  ;;  %s1675_s13 = sshll.u32 %s2613_s0, 4  ;;  %s1676_s13 = int_to_ptr.vmem [resolvable:$true] %s1675_s13 }
  0xbf   :  { %1869 = vmatprep.subr.bf16.mxu0 %v1868_v63  ;;  %v424_v46 = vld [vmem:[#allocation2 + $0x9e8] sm:$0xff]  ;;  %v423_v55 = vld [vmem:[#allocation2 + $0x9e0] sm:$0xff]  ;;  %v178_v57 = vld [vmem:[#allocation2 + $0x238] sm:$0xff]  ;;  %s2568_s14 = scalar_lea.vmem %s1676_s13, 64  ;;  %p2573_p7 = scmp.lt.s32.totalorder %s1676_s13, %s1676_s13 }
  0xc0   :  { %1999 = vmatpush1.bf16.msra.mxu1 %v1998_v33  ;;  %v2769_v48 = vcombine.high %v2765_v44, %v2765_v44  ;;  %v1884_v54 = vpack.c.bf16 %v424_v46, %v420_v45  ;;  %v428_v58 = vld [vmem:[#allocation2 + $0xa08] sm:$0xff]  ;;  %v1886_v62 = vpack.c.bf16 %v423_v55, %v419_v51  ;;  %v2016_v63 = vpack.c.bf16 %v178_v57, %v174_v56  ;;  %v427_v0 = vld [vmem:[#allocation2 + $0xa00] sm:$0xff]  ;;  %v173_v1 = vld [vmem:[#allocation2 + $0x210] sm:$0xff]  ;;  %p2569_p6 = scmp.ne.s32.totalorder %s1676_s13, %s2568_s14  ;;  %p2574_p8 = scmp.lt.s32.totalorder %s2568_s14, %s2568_s14 }
  0xc1   :  { %2001 = vmatprep.subr.bf16.mxu1 %v2000_v6  ;;  %v432_v59 = vld [vmem:[#allocation2 + $0xa28] sm:$0xff]  ;;  %v177_v2 = vld [vmem:[#allocation2 + $0x230] sm:$0xff]  ;;  %v431_v4 = vld [vmem:[#allocation2 + $0xa20] sm:$0xff] }
  0xc2   :  { %1871 = vmatpush1.bf16.msra.mxu0 %v1870_v5  ;;  %891 = vmatprep.mubr.f32.mxu0 %v2769_v48  ;;  %v1888_v3 = vpack.c.bf16 %v432_v59, %v428_v58  ;;  %v182_v33 = vld [vmem:[#allocation2 + $0x258] sm:$0xff]  ;;  %v436_v6 = vld [vmem:[#allocation2 + $0xa48] sm:$0xff]  ;;  %v2018_v8 = vpack.c.bf16 %v177_v2, %v173_v1  ;;  %v1890_v9 = vpack.c.bf16 %v431_v4, %v427_v0  ;;  %v435_v12 = vld [vmem:[#allocation2 + $0xa40] sm:$0xff]  ;;  %p2575_p9 = por %p2574_p8, %p2573_p7 }
  0xc3   :  { %1873 = vmatprep.subr.bf16.mxu0 %v1872_v10  ;;  %v186_v5 = vld [vmem:[#allocation2 + $0x278] sm:$0xff]  ;;  %v440_v7 = vld [vmem:[#allocation2 + $0xa68] sm:$0xff]  ;;  %v181_v13 = vld [vmem:[#allocation2 + $0x250] sm:$0xff] }
  0xc4   :  { %2003 = vmatpush1.bf16.msra.mxu1 %v2002_v17  ;;  %v2020_v10 = vpack.c.bf16 %v186_v5, %v182_v33  ;;  %v185_v14 = vld [vmem:[#allocation2 + $0x270] sm:$0xff]  ;;  %v1892_v15 = vpack.c.bf16 %v440_v7, %v436_v6  ;;  %v439_v16 = vld [vmem:[#allocation2 + $0xa60] sm:$0xff]  ;;  %v190_v17 = vld [vmem:[#allocation2 + $0x298] sm:$0xff]  ;;  %p2576_p10 = pnand %p2575_p9, %p2569_p6 }
  0xc5   :  { %2005 = vmatprep.subr.bf16.mxu1 %v2004_v19  ;;  %v444_v19 = vld [vmem:[#allocation2 + $0xa88] sm:$0xff]  ;;  %v2022_v21 = vpack.c.bf16 %v185_v14, %v181_v13  ;;  %v1894_v22 = vpack.c.bf16 %v439_v16, %v435_v12  ;;  %v443_v24 = vld [vmem:[#allocation2 + $0xa80] sm:$0xff]  ;;  %v189_v26 = vld [vmem:[#allocation2 + $0x290] sm:$0xff] }
  0xc6   :  { %1875 = vmatpush1.bf16.msra.mxu0 %v1874_v18  ;;  %v194_v18 = vld [vmem:[#allocation2 + $0x2b8] sm:$0xff]  ;;  %v448_v20 = vld [vmem:[#allocation2 + $0xaa8] sm:$0xff]  ;;  %v193_v27 = vld [vmem:[#allocation2 + $0x2b0] sm:$0xff] }
  0xc7   :  { %1877 = vmatprep.subr.bf16.mxu0 %v1876_v23  ;;  %v2024_v23 = vpack.c.bf16 %v194_v18, %v190_v17  ;;  %v1896_v28 = vpack.c.bf16 %v448_v20, %v444_v19  ;;  %v447_v29 = vld [vmem:[#allocation2 + $0xaa0] sm:$0xff]  ;;  %v202_v31 = vld [vmem:[#allocation2 + $0x2f8] sm:$0xff]  ;;  %v2026_v36 = vpack.c.bf16 %v193_v27, %v189_v26  ;;  %v197_v42 = vld [vmem:[#allocation2 + $0x2d0] sm:$0xff] }
  0xc8   :  { %2007 = vmatpush1.bf16.msra.mxu1 %v2006_v30  ;;  %v198_v30 = vld [vmem:[#allocation2 + $0x2d8] sm:$0xff]  ;;  %v1898_v37 = vpack.c.bf16 %v447_v29, %v443_v24  ;;  %v451_v40 = vld [vmem:[#allocation2 + $0xac0] sm:$0xff]  ;;  %v201_v43 = vld [vmem:[#allocation2 + $0x2f0] sm:$0xff] }
  0xc9   :  { %2009 = vmatprep.subr.bf16.mxu1 %v2008_v35  ;;  %v456_v35 = vld [vmem:[#allocation2 + $0xae8] sm:$0xff]  ;;  %v455_v46 = vld [vmem:[#allocation2 + $0xae0] sm:$0xff]  ;;  %v2030_v52 = vpack.c.bf16 %v201_v43, %v197_v42  ;;  %v205_v56 = vld [vmem:[#allocation2 + $0x310] sm:$0xff] }
  0xca   :  { %1879 = vmatpush1.bf16.msra.mxu0 %v1878_v32  ;;  %v452_v32 = vld [vmem:[#allocation2 + $0xac8] sm:$0xff]  ;;  %v1902_v53 = vpack.c.bf16 %v455_v46, %v451_v40  ;;  %v459_v55 = vld [vmem:[#allocation2 + $0xb00] sm:$0xff]  ;;  %v209_v57 = vld [vmem:[#allocation2 + $0x330] sm:$0xff] }
  0xcb   :  { %1881 = vmatprep.subr.bf16.mxu0 %v1880_v39  ;;  %v2028_v39 = vpack.c.bf16 %v202_v31, %v198_v30  ;;  %v1900_v45 = vpack.c.bf16 %v456_v35, %v452_v32  ;;  %v464_v51 = vld [vmem:[#allocation2 + $0xb28] sm:$0xff]  ;;  %v463_v59 = vld [vmem:[#allocation2 + $0xb20] sm:$0xff]  ;;  %v2034_v1 = vpack.c.bf16 %v209_v57, %v205_v56  ;;  %v213_v33 = vld [vmem:[#allocation2 + $0x350] sm:$0xff] }
  0xcc   :  { %2011 = vmatpush1.bf16.msra.mxu1 %v2010_v47  ;;  %v206_v47 = vld [vmem:[#allocation2 + $0x318] sm:$0xff]  ;;  %v472_v0 = vld [vmem:[#allocation2 + $0xb68] sm:$0xff]  ;;  %v1906_v2 = vpack.c.bf16 %v463_v59, %v459_v55  ;;  %v467_v4 = vld [vmem:[#allocation2 + $0xb40] sm:$0xff] }
  0xcd   :  { %2013 = vmatprep.subr.bf16.mxu1 %v2012_v50  ;;  %v460_v50 = vld [vmem:[#allocation2 + $0xb08] sm:$0xff]  ;;  %v217_v5 = vld [vmem:[#allocation2 + $0x370] sm:$0xff]  ;;  %v471_v7 = vld [vmem:[#allocation2 + $0xb60] sm:$0xff] }
  0xce   :  { %1883 = vmatpush1.bf16.msra.mxu0 %v1882_v49  ;;  %v210_v49 = vld [vmem:[#allocation2 + $0x338] sm:$0xff]  ;;  %v1904_v58 = vpack.c.bf16 %v464_v51, %v460_v50  ;;  %v480_v12 = vld [vmem:[#allocation2 + $0xba8] sm:$0xff]  ;;  %v2038_v13 = vpack.c.bf16 %v217_v5, %v213_v33  ;;  %v1910_v14 = vpack.c.bf16 %v471_v7, %v467_v4  ;;  %v475_v16 = vld [vmem:[#allocation2 + $0xb80] sm:$0xff] }
  0xcf   :  { %1885 = vmatprep.subr.bf16.mxu0 %v1884_v54  ;;  %v2032_v54 = vpack.c.bf16 %v210_v49, %v206_v47  ;;  %v221_v17 = vld [vmem:[#allocation2 + $0x390] sm:$0xff]  ;;  %v479_v20 = vld [vmem:[#allocation2 + $0xba0] sm:$0xff]  ;;  %v488_v24 = vld [vmem:[#allocation2 + $0xbe8] sm:$0xff] }
  0xd0   :  { %2015 = vmatpush1.bf16.msra.mxu1 %v2014_v60  ;;  %v214_v60 = vld [vmem:[#allocation2 + $0x358] sm:$0xff]  ;;  %v225_v18 = vld [vmem:[#allocation2 + $0x3b0] sm:$0xff]  ;;  %v1914_v27 = vpack.c.bf16 %v479_v20, %v475_v16  ;;  %v483_v29 = vld [vmem:[#allocation2 + $0xbc0] sm:$0xff] }
  0xd1   :  { %2017 = vmatprep.subr.bf16.mxu1 %v2016_v63  ;;  %v468_v63 = vld [vmem:[#allocation2 + $0xb48] sm:$0xff]  ;;  %v2042_v26 = vpack.c.bf16 %v225_v18, %v221_v17  ;;  %v229_v30 = vld [vmem:[#allocation2 + $0x3d0] sm:$0xff]  ;;  %v487_v35 = vld [vmem:[#allocation2 + $0xbe0] sm:$0xff] }
  0xd2   :  { %1887 = vmatpush1.bf16.msra.mxu0 %v1886_v62  ;;  %v218_v62 = vld [vmem:[#allocation2 + $0x378] sm:$0xff]  ;;  %v1908_v6 = vpack.c.bf16 %v472_v0, %v468_v63  ;;  %v233_v31 = vld [vmem:[#allocation2 + $0x3f0] sm:$0xff]  ;;  %v492_v40 = vld [vmem:[#allocation2 + $0xc08] sm:$0xff] }
  0xd3   :  { %1889 = vmatprep.subr.bf16.mxu0 %v1888_v3  ;;  %v2036_v3 = vpack.c.bf16 %v218_v62, %v214_v60  ;;  %v496_v42 = vld [vmem:[#allocation2 + $0xc28] sm:$0xff]  ;;  %v2046_v43 = vpack.c.bf16 %v233_v31, %v229_v30  ;;  %v491_v47 = vld [vmem:[#allocation2 + $0xc00] sm:$0xff]  ;;  %v237_v49 = vld [vmem:[#allocation2 + $0x410] sm:$0xff] }
  0xd4   :  { %2019 = vmatpush1.bf16.msra.mxu1 %v2018_v8  ;;  %v222_v8 = vld [vmem:[#allocation2 + $0x398] sm:$0xff]  ;;  %v241_v50 = vld [vmem:[#allocation2 + $0x430] sm:$0xff]  ;;  %v1920_v51 = vpack.c.bf16 %v496_v42, %v492_v40  ;;  %v504_v56 = vld [vmem:[#allocation2 + $0xc68] sm:$0xff] }
  0xd5   :  { %2021 = vmatprep.subr.bf16.mxu1 %v2020_v10  ;;  %v476_v10 = vld [vmem:[#allocation2 + $0xb88] sm:$0xff]  ;;  %v2050_v57 = vpack.c.bf16 %v241_v50, %v237_v49  ;;  %v499_v60 = vld [vmem:[#allocation2 + $0xc40] sm:$0xff]  ;;  %v245_v62 = vld [vmem:[#allocation2 + $0x450] sm:$0xff] }
  0xd6   :  { %1891 = vmatpush1.bf16.msra.mxu0 %v1890_v9  ;;  %v226_v9 = vld [vmem:[#allocation2 + $0x3b8] sm:$0xff]  ;;  %v1912_v19 = vpack.c.bf16 %v480_v12, %v476_v10  ;;  %v249_v63 = vld [vmem:[#allocation2 + $0x470] sm:$0xff]  ;;  %v508_v4 = vld [vmem:[#allocation2 + $0xc88] sm:$0xff] }
  0xd7   :  { %1893 = vmatprep.subr.bf16.mxu0 %v1892_v15  ;;  %v2040_v15 = vpack.c.bf16 %v226_v9, %v222_v8  ;;  %v512_v33 = vld [vmem:[#allocation2 + $0xca8] sm:$0xff]  ;;  %v2054_v5 = vpack.c.bf16 %v249_v63, %v245_v62  ;;  %v507_v8 = vld [vmem:[#allocation2 + $0xc80] sm:$0xff]  ;;  %v253_v9 = vld [vmem:[#allocation2 + $0x490] sm:$0xff] }
  0xd8   :  { %2023 = vmatpush1.bf16.msra.mxu1 %v2022_v21  ;;  %v230_v21 = vld [vmem:[#allocation2 + $0x3d8] sm:$0xff]  ;;  %v257_v10 = vld [vmem:[#allocation2 + $0x4b0] sm:$0xff]  ;;  %v1928_v12 = vpack.c.bf16 %v512_v33, %v508_v4  ;;  %v520_v16 = vld [vmem:[#allocation2 + $0xce8] sm:$0xff] }
  0xd9   :  { %2025 = vmatprep.subr.bf16.mxu1 %v2024_v23  ;;  %v484_v23 = vld [vmem:[#allocation2 + $0xbc8] sm:$0xff]  ;;  %v2058_v17 = vpack.c.bf16 %v257_v10, %v253_v9  ;;  %v515_v20 = vld [vmem:[#allocation2 + $0xcc0] sm:$0xff]  ;;  %v278_v40 = vld [vmem:[#allocation2 + $0x558] sm:$0xff] }
  0xda   :  { %1895 = vmatpush1.bf16.msra.mxu0 %v1894_v22  ;;  %v234_v22 = vld [vmem:[#allocation2 + $0x3f8] sm:$0xff]  ;;  %v1916_v32 = vpack.c.bf16 %v488_v24, %v484_v23  ;;  %v519_v24 = vld [vmem:[#allocation2 + $0xce0] sm:$0xff] }
  0xdb   :  { %1897 = vmatprep.subr.bf16.mxu0 %v1896_v28  ;;  %v2044_v28 = vpack.c.bf16 %v234_v22, %v230_v21  ;;  %v261_v21 = vld [vmem:[#allocation2 + $0x4d0] sm:$0xff]  ;;  %v282_v42 = vld [vmem:[#allocation2 + $0x578] sm:$0xff]  ;;  %v531_v50 = vld [vmem:[#allocation2 + $0xd40] sm:$0xff] }
  0xdc   :  { %2027 = vmatpush1.bf16.msra.mxu1 %v2026_v36  ;;  %v238_v36 = vld [vmem:[#allocation2 + $0x418] sm:$0xff]  ;;  %v265_v22 = vld [vmem:[#allocation2 + $0x4f0] sm:$0xff]  ;;  %v2068_v49 = vpack.c.bf16 %v282_v42, %v278_v40  ;;  %v539_v63 = vld [vmem:[#allocation2 + $0xd80] sm:$0xff] }
  0xdd   :  { %2029 = vmatprep.subr.bf16.mxu1 %v2028_v39  ;;  %v660_v39 = vcombine.high %v2761_v38, %v2761_v38  ;;  %v500_v38 = vld [vmem:[#allocation2 + $0xc48] sm:$0xff]  ;;  %v2062_v30 = vpack.c.bf16 %v265_v22, %v261_v21  ;;  %v294_v4 = vld [vmem:[#allocation2 + $0x5d8] sm:$0xff]  ;;  %v547_v10 = vld [vmem:[#allocation2 + $0xdc0] sm:$0xff] }
  0xde   :  { %1899 = vmatpush1.bf16.msra.mxu0 %v1898_v37  ;;  %v242_v37 = vld [vmem:[#allocation2 + $0x438] sm:$0xff]  ;;  %v1924_v0 = vpack.c.bf16 %v504_v56, %v500_v38  ;;  %v555_v22 = vld [vmem:[#allocation2 + $0xe00] sm:$0xff] }
  0xdf   :  { %1901 = vmatprep.subr.bf16.mxu0 %v1900_v45  ;;  %v1918_v45 = vpack.c.bf16 %v487_v35, %v483_v29  ;;  %v2048_v46 = vpack.c.bf16 %v242_v37, %v238_v36  ;;  %v2775_v55 = vrot.slane %v660_v39, %v2734_v11  ;;  %v528_v29 = vld [vmem:[#allocation2 + $0xd28] sm:$0xff]  ;;  %v269_v35 = vld [vmem:[#allocation2 + $0x510] sm:$0xff]  ;;  %v527_v39 = vld [vmem:[#allocation2 + $0xd20] sm:$0xff] }
  0xe0   :  { %2031 = vmatpush1.bf16.msra.mxu1 %v2030_v52  ;;  %v495_v52 = vld [vmem:[#allocation2 + $0xc20] sm:$0xff]  ;;  %v273_v36 = vld [vmem:[#allocation2 + $0x530] sm:$0xff]  ;;  %v286_v38 = vld [vmem:[#allocation2 + $0x598] sm:$0xff] }
  0xe1   :  { %2033 = vmatprep.subr.bf16.mxu1 %v2032_v54  ;;  %v250_v54 = vld [vmem:[#allocation2 + $0x478] sm:$0xff]  ;;  %v2779_v11 = vcombine.high %v2775_v55, %v2775_v55  ;;  %v567_v42 = vld [vmem:[#allocation2 + $0xe60] sm:$0xff] }
  0xe2   :  { %1903 = vmatpush1.bf16.msra.mxu0 %v1902_v53  ;;  %v246_v53 = vld [vmem:[#allocation2 + $0x458] sm:$0xff] }
  0xe3   :  { %1905 = vmatprep.subr.bf16.mxu0 %v1904_v58  ;;  %v1922_v58 = vpack.c.bf16 %v495_v52, %v491_v47  ;;  %v2052_v59 = vpack.c.bf16 %v250_v54, %v246_v53  ;;  %v281_v52 = vld [vmem:[#allocation2 + $0x570] sm:$0xff]  ;;  %v535_v54 = vld [vmem:[#allocation2 + $0xd60] sm:$0xff]  ;;  %v290_v56 = vld [vmem:[#allocation2 + $0x5b8] sm:$0xff] }
  0xe4   :  { %2035 = vmatpush1.bf16.msra.mxu1 %v2034_v1  ;;  %v503_v1 = vld [vmem:[#allocation2 + $0xc60] sm:$0xff]  ;;  %v2072_v62 = vpack.c.bf16 %v290_v56, %v286_v38  ;;  %v298_v33 = vld [vmem:[#allocation2 + $0x5f8] sm:$0xff] }
  0xe5   :  { %2037 = vmatprep.subr.bf16.mxu1 %v2036_v3  ;;  %v258_v3 = vld [vmem:[#allocation2 + $0x4b8] sm:$0xff]  ;;  %v2076_v9 = vpack.c.bf16 %v298_v33, %v294_v4  ;;  %v575_v56 = vld [vmem:[#allocation2 + $0xea0] sm:$0xff] }
  0xe6   :  { %1907 = vmatpush1.bf16.msra.mxu0 %v1906_v2  ;;  %v254_v2 = vld [vmem:[#allocation2 + $0x498] sm:$0xff]  ;;  %v583_v33 = vld [vmem:[#allocation2 + $0xee0] sm:$0xff] }
  0xe7   :  { %1909 = vmatprep.subr.bf16.mxu0 %v1908_v6  ;;  %v1926_v6 = vpack.c.bf16 %v503_v1, %v499_v60  ;;  %v2056_v7 = vpack.c.bf16 %v258_v3, %v254_v2  ;;  %v1942_v60 = vpack.c.bf16 %v535_v54, %v531_v50  ;;  %v289_v1 = vld [vmem:[#allocation2 + $0x5b0] sm:$0xff]  ;;  %v543_v3 = vld [vmem:[#allocation2 + $0xda0] sm:$0xff] }
  0xe8   :  { %2039 = vmatpush1.bf16.msra.mxu1 %v2038_v13  ;;  %v511_v13 = vld [vmem:[#allocation2 + $0xca0] sm:$0xff]  ;;  %v321_v54 = vld [vmem:[#allocation2 + $0x6b0] sm:$0xff] }
  0xe9   :  { %2041 = vmatprep.subr.bf16.mxu1 %v2040_v15  ;;  %v266_v15 = vld [vmem:[#allocation2 + $0x4f8] sm:$0xff]  ;;  %v1930_v18 = vpack.c.bf16 %v511_v13, %v507_v8  ;;  %v1946_v8 = vpack.c.bf16 %v543_v3, %v539_v63  ;;  %v297_v13 = vld [vmem:[#allocation2 + $0x5f0] sm:$0xff] }
  0xea   :  { %1911 = vmatpush1.bf16.msra.mxu0 %v1910_v14  ;;  %v262_v14 = vld [vmem:[#allocation2 + $0x4d8] sm:$0xff]  ;;  %v329_v3 = vld [vmem:[#allocation2 + $0x6f0] sm:$0xff] }
  0xeb   :  { %1913 = vmatprep.subr.bf16.mxu0 %v1912_v19  ;;  %v2060_v19 = vpack.c.bf16 %v266_v15, %v262_v14  ;;  %v551_v15 = vld [vmem:[#allocation2 + $0xde0] sm:$0xff] }
  0xec   :  { %2043 = vmatpush1.bf16.msra.mxu1 %v2042_v26  ;;  %v270_v26 = vld [vmem:[#allocation2 + $0x518] sm:$0xff] }
  0xed   :  { %2045 = vmatprep.subr.bf16.mxu1 %v2044_v28  ;;  %v524_v28 = vld [vmem:[#allocation2 + $0xd08] sm:$0xff] }
  0xee   :  { %1915 = vmatpush1.bf16.msra.mxu0 %v1914_v27  ;;  %v274_v27 = vld [vmem:[#allocation2 + $0x538] sm:$0xff]  ;;  %v1936_v37 = vpack.c.bf16 %v528_v29, %v524_v28 }
  0xef   :  { %1917 = vmatprep.subr.bf16.mxu0 %v1916_v32  ;;  %v2064_v31 = vpack.c.bf16 %v274_v27, %v270_v26  ;;  %v523_v32 = vld [vmem:[#allocation2 + $0xd00] sm:$0xff]  ;;  %v310_v28 = vld [vmem:[#allocation2 + $0x658] sm:$0xff] }
  0xf0   :  { %2047 = vmatpush1.bf16.msra.mxu1 %v2046_v43  ;;  %v532_v43 = vld [vmem:[#allocation2 + $0xd48] sm:$0xff]  ;;  %v1938_v47 = vpack.c.bf16 %v527_v39, %v523_v32  ;;  %v559_v27 = vld [vmem:[#allocation2 + $0xe20] sm:$0xff]  ;;  %v314_v29 = vld [vmem:[#allocation2 + $0x678] sm:$0xff] }
  0xf1   :  { %2049 = vmatprep.subr.bf16.mxu1 %v2048_v46  ;;  %v2066_v46 = vpack.c.bf16 %v273_v36, %v269_v35  ;;  %v1954_v32 = vpack.c.bf16 %v559_v27, %v555_v22  ;;  %v2084_v35 = vpack.c.bf16 %v314_v29, %v310_v28  ;;  %v563_v36 = vld [vmem:[#allocation2 + $0xe40] sm:$0xff]  ;;  %v313_v39 = vld [vmem:[#allocation2 + $0x670] sm:$0xff] }
  0xf2   :  { %1919 = vmatpush1.bf16.msra.mxu0 %v1918_v45  ;;  %v536_v45 = vld [vmem:[#allocation2 + $0xd68] sm:$0xff]  ;;  %v1958_v50 = vpack.c.bf16 %v567_v42, %v563_v36  ;;  %v345_v27 = vld [vmem:[#allocation2 + $0x770] sm:$0xff]  ;;  %v599_v29 = vld [vmem:[#allocation2 + $0xf60] sm:$0xff] }
  0xf3   :  { %1921 = vmatprep.subr.bf16.mxu0 %v1920_v51  ;;  %1034 = vmatmul.mubr.f32.vlgmr.msra.gmra.mrb[2].mxu1 %v2740_v25  ;;  %v516_v25 = vld [vmem:[#allocation2 + $0xcc8] sm:$0xff]  ;;  %v277_v51 = vld [vmem:[#allocation2 + $0x550] sm:$0xff]  ;;  %v1940_v53 = vpack.c.bf16 %v536_v45, %v532_v43  ;;  %v318_v43 = vld [vmem:[#allocation2 + $0x698] sm:$0xff] }
  0xf4   :  { %2051 = vmatpush1.bf16.msra.mxu1 %v2050_v57  ;;  %1104 = vmatprep.mubr.f32.mxu1 %v2752_v41  ;;  %v1932_v23 = vpack.c.bf16 %v520_v16, %v516_v25  ;;  %v1934_v41 = vpack.c.bf16 %v519_v24, %v515_v20  ;;  %v540_v57 = vld [vmem:[#allocation2 + $0xd88] sm:$0xff]  ;;  %v302_v25 = vld [vmem:[#allocation2 + $0x618] sm:$0xff]  ;;  %v1950_v20 = vpack.c.bf16 %v551_v15, %v547_v10  ;;  %v305_v24 = vld [vmem:[#allocation2 + $0x630] sm:$0xff] }
  0xf5   :  { %892 = vmatmul.mubr.f32.vlgmr.msra.gmra.mrb[0].mxu0 %v2765_v44  ;;  %2053 = vmatprep.subr.bf16.mxu1 %v2052_v59  ;;  %v2070_v59 = vpack.c.bf16 %v281_v52, %v277_v51  ;;  %v306_v16 = vld [vmem:[#allocation2 + $0x638] sm:$0xff]  ;;  %v571_v52 = vld [vmem:[#allocation2 + $0xe80] sm:$0xff]  ;;  %v337_v15 = vld [vmem:[#allocation2 + $0x730] sm:$0xff] }
  0xf6   :  { %1923 = vmatpush1.bf16.msra.mxu0 %v1922_v58  ;;  %962 = vmatprep.mubr.f32.mxu0 %v2779_v11  ;;  %v544_v58 = vld [vmem:[#allocation2 + $0xda8] sm:$0xff]  ;;  %v2080_v21 = vpack.c.bf16 %v306_v16, %v302_v25  ;;  %v322_v45 = vld [vmem:[#allocation2 + $0x6b8] sm:$0xff]  ;;  %v1962_v63 = vpack.c.bf16 %v575_v56, %v571_v52  ;;  %v591_v16 = vld [vmem:[#allocation2 + $0xf20] sm:$0xff] }
  0xf7   :  { %1925 = vmatprep.subr.bf16.mxu0 %v1924_v0  ;;  %v285_v0 = vld [vmem:[#allocation2 + $0x590] sm:$0xff]  ;;  %v1944_v2 = vpack.c.bf16 %v544_v58, %v540_v57  ;;  %v2088_v51 = vpack.c.bf16 %v322_v45, %v318_v43  ;;  %v326_v57 = vld [vmem:[#allocation2 + $0x6d8] sm:$0xff]  ;;  %v607_v45 = vld [vmem:[#allocation2 + $0xfa0] sm:$0xff] }
  0xf8   :  { %2055 = vmatpush1.bf16.msra.mxu1 %v2054_v5  ;;  %v548_v5 = vld [vmem:[#allocation2 + $0xdc8] sm:$0xff]  ;;  %v330_v58 = vld [vmem:[#allocation2 + $0x6f8] sm:$0xff]  ;;  %v353_v42 = vld [vmem:[#allocation2 + $0x7b0] sm:$0xff] }
  0xf9   :  { %2057 = vmatprep.subr.bf16.mxu1 %v2056_v7  ;;  %v2074_v7 = vpack.c.bf16 %v289_v1, %v285_v0  ;;  %v2092_v0 = vpack.c.bf16 %v330_v58, %v326_v57  ;;  %v579_v1 = vld [vmem:[#allocation2 + $0xec0] sm:$0xff]  ;;  %v361_v56 = vld [vmem:[#allocation2 + $0x7f0] sm:$0xff] }
  0xfa   :  { %1927 = vmatpush1.bf16.msra.mxu0 %v1926_v6  ;;  %v552_v6 = vld [vmem:[#allocation2 + $0xde8] sm:$0xff]  ;;  %v1966_v10 = vpack.c.bf16 %v583_v33, %v579_v1  ;;  %v615_v58 = vld [vmem:[#allocation2 + $0xfe0] sm:$0xff]  ;;  %v365_v1 = vld [vmem:[#allocation2 + $0x810] sm:$0xff] }
  0xfb   :  { %1929 = vmatprep.subr.bf16.mxu0 %v1928_v12  ;;  %v293_v12 = vld [vmem:[#allocation2 + $0x5d0] sm:$0xff]  ;;  %v1948_v14 = vpack.c.bf16 %v552_v6, %v548_v5  ;;  %v334_v5 = vld [vmem:[#allocation2 + $0x718] sm:$0xff] }
  0xfc   :  { %2059 = vmatpush1.bf16.msra.mxu1 %v2058_v17  ;;  %v556_v17 = vld [vmem:[#allocation2 + $0xe08] sm:$0xff]  ;;  %v338_v6 = vld [vmem:[#allocation2 + $0x738] sm:$0xff] }
  0xfd   :  { %2061 = vmatprep.subr.bf16.mxu1 %v2060_v19  ;;  %v2078_v19 = vpack.c.bf16 %v297_v13, %v293_v12  ;;  %v2096_v12 = vpack.c.bf16 %v338_v6, %v334_v5  ;;  %v587_v13 = vld [vmem:[#allocation2 + $0xf00] sm:$0xff]  ;;  %v373_v6 = vld [vmem:[#allocation2 + $0x850] sm:$0xff] }
  0xfe   :  { %1931 = vmatpush1.bf16.msra.mxu0 %v1930_v18  ;;  %v560_v18 = vld [vmem:[#allocation2 + $0xe28] sm:$0xff]  ;;  %v1970_v22 = vpack.c.bf16 %v591_v16, %v587_v13 }
  0xff   :  { %1933 = vmatprep.subr.bf16.mxu0 %v1932_v23  ;;  %v301_v23 = vld [vmem:[#allocation2 + $0x610] sm:$0xff]  ;;  %v1952_v26 = vpack.c.bf16 %v560_v18, %v556_v17  ;;  %v342_v17 = vld [vmem:[#allocation2 + $0x758] sm:$0xff] }
 0x100   :  { %2063 = vmatpush1.bf16.msra.mxu1 %v2062_v30  ;;  %v564_v30 = vld [vmem:[#allocation2 + $0xe48] sm:$0xff]  ;;  %v346_v18 = vld [vmem:[#allocation2 + $0x778] sm:$0xff] }
 0x101   :  { %2065 = vmatprep.subr.bf16.mxu1 %v2064_v31  ;;  %v2082_v31 = vpack.c.bf16 %v305_v24, %v301_v23  ;;  %v2100_v23 = vpack.c.bf16 %v346_v18, %v342_v17  ;;  %v595_v24 = vld [vmem:[#allocation2 + $0xf40] sm:$0xff]  ;;  %v1262_v13 = vld [vmem:[#allocation7 + $0x8] sm:$0xff]  ;;  %v1263_v17 = vld [vmem:[#allocation7 + $0x10] sm:$0xff] }
 0x102   :  { %1935 = vmatpush1.bf16.msra.mxu0 %v1934_v41  ;;  %v568_v41 = vld [vmem:[#allocation2 + $0xe68] sm:$0xff]  ;;  %v1974_v36 = vpack.c.bf16 %v599_v29, %v595_v24 }
 0x103   :  { %1937 = vmatprep.subr.bf16.mxu0 %v1936_v37  ;;  %v309_v37 = vld [vmem:[#allocation2 + $0x650] sm:$0xff]  ;;  %v1956_v40 = vpack.c.bf16 %v568_v41, %v564_v30  ;;  %v350_v30 = vld [vmem:[#allocation2 + $0x798] sm:$0xff] }
 0x104   :  { %2067 = vmatpush1.bf16.msra.mxu1 %v2066_v46  ;;  %v572_v46 = vld [vmem:[#allocation2 + $0xe88] sm:$0xff]  ;;  %v354_v41 = vld [vmem:[#allocation2 + $0x7b8] sm:$0xff] }
 0x105   :  { %2069 = vmatprep.subr.bf16.mxu1 %v2068_v49  ;;  %v2086_v49 = vpack.c.bf16 %v313_v39, %v309_v37  ;;  %v2104_v37 = vpack.c.bf16 %v354_v41, %v350_v30  ;;  %v603_v39 = vld [vmem:[#allocation2 + $0xf80] sm:$0xff]  ;;  %v1266_v18 = vld [vmem:[#allocation7 + $0x28] sm:$0xff] }
 0x106   :  { %1939 = vmatpush1.bf16.msra.mxu0 %v1938_v47  ;;  %v576_v47 = vld [vmem:[#allocation2 + $0xea8] sm:$0xff]  ;;  %v1978_v52 = vpack.c.bf16 %v607_v45, %v603_v39  ;;  %v389_v41 = vld [vmem:[#allocation2 + $0x8d0] sm:$0xff]  ;;  %v1276_v39 = vld [vmem:[#allocation7 + $0x78] sm:$0xff] }
 0x107   :  { %1941 = vmatprep.subr.bf16.mxu0 %v1940_v53  ;;  %v317_v53 = vld [vmem:[#allocation2 + $0x690] sm:$0xff]  ;;  %v1960_v38 = vpack.c.bf16 %v576_v47, %v572_v46  ;;  %v358_v46 = vld [vmem:[#allocation2 + $0x7d8] sm:$0xff] }
 0x108   :  { %2071 = vmatpush1.bf16.msra.mxu1 %v2070_v59  ;;  %v580_v59 = vld [vmem:[#allocation2 + $0xec8] sm:$0xff]  ;;  %v362_v47 = vld [vmem:[#allocation2 + $0x7f8] sm:$0xff] }
 0x109   :  { %2073 = vmatprep.subr.bf16.mxu1 %v2072_v62  ;;  %v2090_v62 = vpack.c.bf16 %v321_v54, %v317_v53  ;;  %v2108_v53 = vpack.c.bf16 %v362_v47, %v358_v46  ;;  %v611_v54 = vld [vmem:[#allocation2 + $0xfc0] sm:$0xff]  ;;  %v1270_v24 = vld [vmem:[#allocation7 + $0x48] sm:$0xff] }
 0x10a   :  { %1943 = vmatpush1.bf16.msra.mxu0 %v1942_v60  ;;  %v584_v60 = vld [vmem:[#allocation2 + $0xee8] sm:$0xff]  ;;  %v397_v46 = vld [vmem:[#allocation2 + $0x910] sm:$0xff] }
 0x10b   :  { %1945 = vmatprep.subr.bf16.mxu0 %v1944_v2  ;;  %v325_v2 = vld [vmem:[#allocation2 + $0x6d0] sm:$0xff]  ;;  %v1964_v4 = vpack.c.bf16 %v584_v60, %v580_v59  ;;  %v366_v59 = vld [vmem:[#allocation2 + $0x818] sm:$0xff] }
 0x10c   :  { %2075 = vmatpush1.bf16.msra.mxu1 %v2074_v7  ;;  %v588_v7 = vld [vmem:[#allocation2 + $0xf08] sm:$0xff]  ;;  %v370_v60 = vld [vmem:[#allocation2 + $0x838] sm:$0xff] }
 0x10d   :  { %2077 = vmatprep.subr.bf16.mxu1 %v2076_v9  ;;  %v2094_v9 = vpack.c.bf16 %v329_v3, %v325_v2  ;;  %v369_v2 = vld [vmem:[#allocation2 + $0x830] sm:$0xff]  ;;  %v374_v3 = vld [vmem:[#allocation2 + $0x858] sm:$0xff] }
 0x10e   :  { %1947 = vmatpush1.bf16.msra.mxu0 %v1946_v8  ;;  %v592_v8 = vld [vmem:[#allocation2 + $0xf28] sm:$0xff]  ;;  %v2114_v33 = vpack.c.bf16 %v369_v2, %v365_v1  ;;  %v409_v1 = vld [vmem:[#allocation2 + $0x970] sm:$0xff] }
 0x10f   :  { %1949 = vmatprep.subr.bf16.mxu0 %v1948_v14  ;;  %v333_v14 = vld [vmem:[#allocation2 + $0x710] sm:$0xff]  ;;  %v1968_v25 = vpack.c.bf16 %v592_v8, %v588_v7  ;;  %v382_v8 = vld [vmem:[#allocation2 + $0x898] sm:$0xff] }
 0x110   :  { %2079 = vmatpush1.bf16.msra.mxu1 %v2078_v19  ;;  %v596_v19 = vld [vmem:[#allocation2 + $0xf48] sm:$0xff]  ;;  %v377_v7 = vld [vmem:[#allocation2 + $0x870] sm:$0xff] }
 0x111   :  { %2081 = vmatprep.subr.bf16.mxu1 %v2080_v21  ;;  %v2098_v21 = vpack.c.bf16 %v337_v15, %v333_v14  ;;  %v1264_v14 = vld [vmem:[#allocation7 + $0x18] sm:$0xff]  ;;  %v1261_v15 = vld [vmem:[#allocation7] sm:$0xff]  ;;  %v1282_v2 = vld [vmem:[#allocation7 + $0xa8] sm:$0xff] }
 0x112   :  { %1951 = vmatpush1.bf16.msra.mxu0 %v1950_v20  ;;  %v600_v20 = vld [vmem:[#allocation2 + $0xf68] sm:$0xff]  ;;  %v2240_v16 = vpack.c.bf16 %v1264_v14, %v1262_v13  ;;  %v417_v13 = vld [vmem:[#allocation2 + $0x9b0] sm:$0xff] }
 0x113   :  { %1953 = vmatprep.subr.bf16.mxu0 %v1952_v26  ;;  %v341_v26 = vld [vmem:[#allocation2 + $0x750] sm:$0xff]  ;;  %v1972_v28 = vpack.c.bf16 %v600_v20, %v596_v19  ;;  %v1268_v19 = vld [vmem:[#allocation7 + $0x38] sm:$0xff] }
 0x114   :  { %2083 = vmatpush1.bf16.msra.mxu1 %v2082_v31  ;;  %v604_v31 = vld [vmem:[#allocation2 + $0xf88] sm:$0xff] }
 0x115   :  { %2085 = vmatprep.subr.bf16.mxu1 %v2084_v35  ;;  %v2102_v35 = vpack.c.bf16 %v345_v27, %v341_v26  ;;  %v390_v26 = vld [vmem:[#allocation2 + $0x8d8] sm:$0xff]  ;;  %v1286_v14 = vld [vmem:[#allocation7 + $0xc8] sm:$0xff] }
 0x116   :  { %1955 = vmatpush1.bf16.msra.mxu0 %v1954_v32  ;;  %v608_v32 = vld [vmem:[#allocation2 + $0xfa8] sm:$0xff]  ;;  %v394_v27 = vld [vmem:[#allocation2 + $0x8f8] sm:$0xff] }
 0x117   :  { %1957 = vmatprep.subr.bf16.mxu0 %v1956_v40  ;;  %v349_v40 = vld [vmem:[#allocation2 + $0x790] sm:$0xff]  ;;  %v1976_v43 = vpack.c.bf16 %v608_v32, %v604_v31  ;;  %v1269_v32 = vld [vmem:[#allocation7 + $0x40] sm:$0xff] }
 0x118   :  { %2087 = vmatpush1.bf16.msra.mxu1 %v2086_v49  ;;  %v612_v49 = vld [vmem:[#allocation2 + $0xfc8] sm:$0xff] }
 0x119   :  { %2089 = vmatprep.subr.bf16.mxu1 %v2088_v51  ;;  %v2106_v51 = vpack.c.bf16 %v353_v42, %v349_v40  ;;  %v398_v40 = vld [vmem:[#allocation2 + $0x918] sm:$0xff] }
 0x11a   :  { %1959 = vmatpush1.bf16.msra.mxu0 %v1958_v50  ;;  %v616_v50 = vld [vmem:[#allocation2 + $0xfe8] sm:$0xff]  ;;  %v402_v42 = vld [vmem:[#allocation2 + $0x938] sm:$0xff] }
 0x11b   :  { %1961 = vmatprep.subr.bf16.mxu0 %v1960_v38  ;;  %v357_v38 = vld [vmem:[#allocation2 + $0x7d0] sm:$0xff]  ;;  %v1980_v57 = vpack.c.bf16 %v616_v50, %v612_v49  ;;  %v1273_v49 = vld [vmem:[#allocation7 + $0x60] sm:$0xff] }
 0x11c   :  { %2091 = vmatpush1.bf16.msra.mxu1 %v2090_v62  ;;  %v2110_v62 = vpack.c.bf16 %v361_v56, %v357_v38  ;;  %v1275_v50 = vld [vmem:[#allocation7 + $0x70] sm:$0xff] }
 0x11d   :  { %2093 = vmatprep.subr.bf16.mxu1 %v2092_v0  ;;  %v2112_v0 = vpack.c.bf16 %v370_v60, %v366_v59  ;;  %v406_v38 = vld [vmem:[#allocation2 + $0x958] sm:$0xff]  ;;  %v405_v59 = vld [vmem:[#allocation2 + $0x950] sm:$0xff] }
 0x11e   :  { %1963 = vmatpush1.bf16.msra.mxu0 %v1962_v63  ;;  %v1982_v63 = vpack.c.bf16 %v615_v58, %v611_v54  ;;  %v1280_v54 = vld [vmem:[#allocation7 + $0x98] sm:$0xff] }
 0x11f   :  { %1965 = vmatprep.subr.bf16.mxu0 %v1964_v4  ;;  %v378_v4 = vld [vmem:[#allocation2 + $0x878] sm:$0xff] }
 0x120   :  { %2095 = vmatpush1.bf16.msra.mxu1 %v2094_v9  ;;  %v2116_v5 = vpack.c.bf16 %v378_v4, %v374_v3  ;;  %v386_v9 = vld [vmem:[#allocation2 + $0x8b8] sm:$0xff] }
 0x121   :  { %2097 = vmatprep.subr.bf16.mxu1 %v2096_v12  ;;  %v385_v12 = vld [vmem:[#allocation2 + $0x8b0] sm:$0xff]  ;;  %v2120_v20 = vpack.c.bf16 %v386_v9, %v382_v8  ;;  %v410_v56 = vld [vmem:[#allocation2 + $0x978] sm:$0xff]  ;;  %v1281_v9 = vld [vmem:[#allocation7 + $0xa0] sm:$0xff] }
 0x122   :  { %1967 = vmatpush1.bf16.msra.mxu0 %v1966_v10  ;;  %v381_v10 = vld [vmem:[#allocation2 + $0x890] sm:$0xff]  ;;  %v1284_v3 = vld [vmem:[#allocation7 + $0xb8] sm:$0xff] }
 0x123   :  { %1969 = vmatprep.subr.bf16.mxu0 %v1968_v25  ;;  %v2118_v25 = vpack.c.bf16 %v377_v7, %v373_v6  ;;  %v2122_v30 = vpack.c.bf16 %v385_v12, %v381_v10  ;;  %v414_v4 = vld [vmem:[#allocation2 + $0x998] sm:$0xff]  ;;  %v2134_v6 = vpack.c.bf16 %v409_v1, %v405_v59  ;;  %v413_v7 = vld [vmem:[#allocation2 + $0x990] sm:$0xff]  ;;  %v2260_v8 = vpack.c.bf16 %v1284_v3, %v1282_v2 }
 0x124   :  { %2099 = vmatpush1.bf16.msra.mxu1 %v2098_v21  ;;  %v2242_v21 = vpack.c.bf16 %v1263_v17, %v1261_v15  ;;  %v1283_v10 = vld [vmem:[#allocation7 + $0xb0] sm:$0xff]  ;;  %v1288_v15 = vld [vmem:[#allocation7 + $0xd8] sm:$0xff]  ;;  %v1302_v2 = vld [vmem:[#allocation7 + $0x148] sm:$0xff] }
 0x125   :  { %2101 = vmatprep.subr.bf16.mxu1 %v2100_v23  ;;  %v1267_v23 = vld [vmem:[#allocation7 + $0x30] sm:$0xff]  ;;  %v2262_v17 = vpack.c.bf16 %v1283_v10, %v1281_v9  ;;  %v1304_v3 = vld [vmem:[#allocation7 + $0x158] sm:$0xff]  ;;  %v1301_v9 = vld [vmem:[#allocation7 + $0x140] sm:$0xff] }
 0x126   :  { %1971 = vmatpush1.bf16.msra.mxu0 %v1970_v22  ;;  %v2244_v22 = vpack.c.bf16 %v1268_v19, %v1266_v18  ;;  %v2138_v18 = vpack.c.bf16 %v417_v13, %v413_v7  ;;  %v421_v19 = vld [vmem:[#allocation2 + $0x9d0] sm:$0xff] }
 0x127   :  { %1973 = vmatprep.subr.bf16.mxu0 %v1972_v28  ;;  %v1272_v28 = vld [vmem:[#allocation7 + $0x58] sm:$0xff]  ;;  %v445_v59 = vld [vmem:[#allocation2 + $0xa90] sm:$0xff] }
 0x128   :  { %2103 = vmatpush1.bf16.msra.mxu1 %v2102_v35  ;;  %v2248_v31 = vpack.c.bf16 %v1272_v28, %v1270_v24  ;;  %v1271_v35 = vld [vmem:[#allocation7 + $0x50] sm:$0xff]  ;;  %v1290_v24 = vld [vmem:[#allocation7 + $0xe8] sm:$0xff] }
 0x129   :  { %2105 = vmatprep.subr.bf16.mxu1 %v2104_v37  ;;  %v1274_v37 = vld [vmem:[#allocation7 + $0x68] sm:$0xff]  ;;  %v434_v28 = vld [vmem:[#allocation2 + $0xa38] sm:$0xff] }
 0x12a   :  { %1975 = vmatpush1.bf16.msra.mxu0 %v1974_v36  ;;  %v393_v36 = vld [vmem:[#allocation2 + $0x8f0] sm:$0xff]  ;;  %v2252_v47 = vpack.c.bf16 %v1276_v39, %v1274_v37  ;;  %v1296_v39 = vld [vmem:[#allocation7 + $0x118] sm:$0xff] }
 0x12b   :  { %1977 = vmatprep.subr.bf16.mxu0 %v1976_v43  ;;  %v2250_v43 = vpack.c.bf16 %v1271_v35, %v1269_v32  ;;  %v2126_v45 = vpack.c.bf16 %v393_v36, %v389_v41  ;;  %v429_v41 = vld [vmem:[#allocation2 + $0xa10] sm:$0xff]  ;;  %v1289_v32 = vld [vmem:[#allocation7 + $0xe0] sm:$0xff] }
 0x12c   :  { %2107 = vmatpush1.bf16.msra.mxu1 %v2106_v51  ;;  %v2128_v51 = vpack.c.bf16 %v402_v42, %v398_v40  ;;  %v1291_v35 = vld [vmem:[#allocation7 + $0xf0] sm:$0xff]  ;;  %v1294_v37 = vld [vmem:[#allocation7 + $0x108] sm:$0xff] }
 0x12d   :  { %2109 = vmatprep.subr.bf16.mxu1 %v2108_v53  ;;  %v1278_v53 = vld [vmem:[#allocation7 + $0x88] sm:$0xff]  ;;  %v438_v40 = vld [vmem:[#allocation2 + $0xa58] sm:$0xff] }
 0x12e   :  { %1979 = vmatpush1.bf16.msra.mxu0 %v1978_v52  ;;  %v401_v52 = vld [vmem:[#allocation2 + $0x930] sm:$0xff]  ;;  %v2256_v60 = vpack.c.bf16 %v1280_v54, %v1278_v53  ;;  %v442_v42 = vld [vmem:[#allocation2 + $0xa78] sm:$0xff] }
 0x12f   :  { %1981 = vmatprep.subr.bf16.mxu0 %v1980_v57  ;;  %v2254_v57 = vpack.c.bf16 %v1275_v50, %v1273_v49  ;;  %v2130_v58 = vpack.c.bf16 %v401_v52, %v397_v46  ;;  %v433_v36 = vld [vmem:[#allocation2 + $0xa30] sm:$0xff]  ;;  %v1293_v49 = vld [vmem:[#allocation7 + $0x100] sm:$0xff]  ;;  %v1300_v54 = vld [vmem:[#allocation7 + $0x138] sm:$0xff] }
 0x130   :  { %2111 = vmatpush1.bf16.msra.mxu1 %v2110_v62  ;;  %v1277_v62 = vld [vmem:[#allocation7 + $0x80] sm:$0xff]  ;;  %v437_v46 = vld [vmem:[#allocation2 + $0xa50] sm:$0xff] }
 0x131   :  { %2113 = vmatprep.subr.bf16.mxu1 %v2112_v0  ;;  %v2132_v0 = vpack.c.bf16 %v410_v56, %v406_v38  ;;  %v1295_v50 = vld [vmem:[#allocation7 + $0x110] sm:$0xff]  ;;  %v1298_v53 = vld [vmem:[#allocation7 + $0x128] sm:$0xff] }
 0x132   :  { %1983 = vmatpush1.bf16.msra.mxu0 %v1982_v63  ;;  %v1279_v63 = vld [vmem:[#allocation7 + $0x90] sm:$0xff] }
 0x133   :  { %1105 = vmatmul.mubr.f32.vlgmr.msra.gmra.mrb[2].mxu1 %v2747_v34  ;;  %v1265_v34 = vld [vmem:[#allocation7 + $0x20] sm:$0xff]  ;;  %2241 = vmatprep.subr.bf16.mxu0 %v2240_v16  ;;  %v426_v16 = vld [vmem:[#allocation2 + $0x9f8] sm:$0xff]  ;;  %v441_v52 = vld [vmem:[#allocation2 + $0xa70] sm:$0xff] }
 0x134   :  { %2115 = vmatpush1.bf16.msra.mxu1 %v2114_v33  ;;  %1175 = vmatprep.mubr.f32.mxu1 %v2769_v48  ;;  %v2246_v29 = vpack.c.bf16 %v1267_v23, %v1265_v34  ;;  %v2124_v48 = vpack.c.bf16 %v394_v27, %v390_v26  ;;  %v418_v33 = vld [vmem:[#allocation2 + $0x9b8] sm:$0xff]  ;;  %v425_v23 = vld [vmem:[#allocation2 + $0x9f0] sm:$0xff] }
 0x135   :  { %963 = vmatmul.mubr.f32.vlgmr.msra.gmra.mrb[0].mxu0 %v2775_v55  ;;  %2117 = vmatprep.subr.bf16.mxu1 %v2116_v5  ;;  %v2258_v5 = vpack.c.bf16 %v1279_v63, %v1277_v62  ;;  %v2136_v12 = vpack.c.bf16 %v418_v33, %v414_v4  ;;  %v1292_v26 = vld [vmem:[#allocation7 + $0xf8] sm:$0xff]  ;;  %v1297_v62 = vld [vmem:[#allocation7 + $0x120] sm:$0xff]  ;;  %v1299_v63 = vld [vmem:[#allocation7 + $0x130] sm:$0xff] }
 0x136   :  { %2243 = vmatpush1.bf16.msra.mxu0 %v2242_v21  ;;  %v1285_v21 = vld [vmem:[#allocation7 + $0xc0] sm:$0xff]  ;;  %v430_v27 = vld [vmem:[#allocation2 + $0xa18] sm:$0xff]  ;;  %v449_v1 = vld [vmem:[#allocation2 + $0xab0] sm:$0xff] }
 0x137   :  { %2245 = vmatprep.subr.bf16.mxu0 %v2244_v22  ;;  %v1287_v22 = vld [vmem:[#allocation7 + $0xd0] sm:$0xff] }
 0x138   :  { %2119 = vmatpush1.bf16.msra.mxu1 %v2118_v25  ;;  %v422_v25 = vld [vmem:[#allocation2 + $0x9d8] sm:$0xff]  ;;  %v453_v7 = vld [vmem:[#allocation2 + $0xad0] sm:$0xff] }
 0x139   :  { %2121 = vmatprep.subr.bf16.mxu1 %v2120_v20  ;;  %v2264_v20 = vpack.c.bf16 %v1288_v15, %v1286_v14  ;;  %v2140_v34 = vpack.c.bf16 %v426_v16, %v422_v25  ;;  %v446_v38 = vld [vmem:[#allocation2 + $0xa98] sm:$0xff]  ;;  %v457_v13 = vld [vmem:[#allocation2 + $0xaf0] sm:$0xff] }
 0x13a   :  { %2247 = vmatpush1.bf16.msra.mxu0 %v2246_v29  ;;  %v2266_v29 = vpack.c.bf16 %v1287_v22, %v1285_v21  ;;  %v450_v56 = vld [vmem:[#allocation2 + $0xab8] sm:$0xff]  ;;  %v1306_v14 = vld [vmem:[#allocation7 + $0x168] sm:$0xff]  ;;  %v1305_v21 = vld [vmem:[#allocation7 + $0x160] sm:$0xff] }
 0x13b   :  { %2249 = vmatprep.subr.bf16.mxu0 %v2248_v31  ;;  %v2268_v31 = vpack.c.bf16 %v1292_v26, %v1290_v24  ;;  %v454_v4 = vld [vmem:[#allocation2 + $0xad8] sm:$0xff]  ;;  %v1310_v24 = vld [vmem:[#allocation7 + $0x188] sm:$0xff] }
 0x13c   :  { %2123 = vmatpush1.bf16.msra.mxu1 %v2122_v30  ;;  %v2142_v30 = vpack.c.bf16 %v425_v23, %v421_v19  ;;  %v458_v33 = vld [vmem:[#allocation2 + $0xaf8] sm:$0xff]  ;;  %v461_v19 = vld [vmem:[#allocation2 + $0xb10] sm:$0xff] }
 0x13d   :  { %2125 = vmatprep.subr.bf16.mxu1 %v2124_v48  ;;  %v2144_v48 = vpack.c.bf16 %v434_v28, %v430_v27  ;;  %v1303_v10 = vld [vmem:[#allocation7 + $0x150] sm:$0xff]  ;;  %v1308_v15 = vld [vmem:[#allocation7 + $0x178] sm:$0xff] }
 0x13e   :  { %2251 = vmatpush1.bf16.msra.mxu0 %v2250_v43  ;;  %v2270_v43 = vpack.c.bf16 %v1291_v35, %v1289_v32  ;;  %v462_v25 = vld [vmem:[#allocation2 + $0xb18] sm:$0xff]  ;;  %v465_v23 = vld [vmem:[#allocation2 + $0xb30] sm:$0xff]  ;;  %v1309_v32 = vld [vmem:[#allocation7 + $0x180] sm:$0xff] }
 0x13f   :  { %2253 = vmatprep.subr.bf16.mxu0 %v2252_v47  ;;  %v2272_v47 = vpack.c.bf16 %v1296_v39, %v1294_v37  ;;  %v466_v16 = vld [vmem:[#allocation2 + $0xb38] sm:$0xff]  ;;  %v1314_v37 = vld [vmem:[#allocation7 + $0x1a8] sm:$0xff] }
 0x140   :  { %2127 = vmatpush1.bf16.msra.mxu1 %v2126_v45  ;;  %v2146_v45 = vpack.c.bf16 %v433_v36, %v429_v41  ;;  %v1307_v22 = vld [vmem:[#allocation7 + $0x170] sm:$0xff]  ;;  %v1312_v26 = vld [vmem:[#allocation7 + $0x198] sm:$0xff] }
 0x141   :  { %2129 = vmatprep.subr.bf16.mxu1 %v2128_v51  ;;  %v2148_v51 = vpack.c.bf16 %v442_v42, %v438_v40  ;;  %v470_v27 = vld [vmem:[#allocation2 + $0xb58] sm:$0xff]  ;;  %v469_v41 = vld [vmem:[#allocation2 + $0xb50] sm:$0xff] }
 0x142   :  { %2255 = vmatpush1.bf16.msra.mxu0 %v2254_v57  ;;  %v2274_v57 = vpack.c.bf16 %v1295_v50, %v1293_v49  ;;  %v474_v28 = vld [vmem:[#allocation2 + $0xb78] sm:$0xff]  ;;  %v473_v36 = vld [vmem:[#allocation2 + $0xb70] sm:$0xff] }
 0x143   :  { %2257 = vmatprep.subr.bf16.mxu0 %v2256_v60  ;;  %v2276_v60 = vpack.c.bf16 %v1300_v54, %v1298_v53  ;;  %v1311_v35 = vld [vmem:[#allocation7 + $0x190] sm:$0xff]  ;;  %v1316_v39 = vld [vmem:[#allocation7 + $0x1b8] sm:$0xff] }
 0x144   :  { %2131 = vmatpush1.bf16.msra.mxu1 %v2130_v58  ;;  %v2150_v58 = vpack.c.bf16 %v441_v52, %v437_v46  ;;  %v478_v40 = vld [vmem:[#allocation2 + $0xb98] sm:$0xff]  ;;  %v2292_v46 = vpack.c.bf16 %v1316_v39, %v1314_v37  ;;  %v481_v52 = vld [vmem:[#allocation2 + $0xbb0] sm:$0xff] }
 0x145   :  { %2133 = vmatprep.subr.bf16.mxu1 %v2132_v0  ;;  %v2152_v0 = vpack.c.bf16 %v450_v56, %v446_v38  ;;  %v482_v42 = vld [vmem:[#allocation2 + $0xbb8] sm:$0xff]  ;;  %v1318_v37 = vld [vmem:[#allocation7 + $0x1c8] sm:$0xff] }
 0x146   :  { %2259 = vmatpush1.bf16.msra.mxu0 %v2258_v5  ;;  %v2278_v5 = vpack.c.bf16 %v1299_v63, %v1297_v62  ;;  %v1315_v49 = vld [vmem:[#allocation7 + $0x1b0] sm:$0xff]  ;;  %v2168_v50 = vpack.c.bf16 %v482_v42, %v478_v40  ;;  %v1320_v39 = vld [vmem:[#allocation7 + $0x1d8] sm:$0xff] }
 0x147   :  { %2261 = vmatprep.subr.bf16.mxu0 %v2260_v8  ;;  %v2280_v8 = vpack.c.bf16 %v1304_v3, %v1302_v2  ;;  %v486_v53 = vld [vmem:[#allocation2 + $0xbd8] sm:$0xff]  ;;  %v497_v2 = vld [vmem:[#allocation2 + $0xc30] sm:$0xff] }
 0x148   :  { %2135 = vmatpush1.bf16.msra.mxu1 %v2134_v6  ;;  %v2154_v6 = vpack.c.bf16 %v449_v1, %v445_v59  ;;  %v490_v54 = vld [vmem:[#allocation2 + $0xbf8] sm:$0xff]  ;;  %v489_v59 = vld [vmem:[#allocation2 + $0xbf0] sm:$0xff] }
 0x149   :  { %2137 = vmatprep.subr.bf16.mxu1 %v2136_v12  ;;  %v2156_v12 = vpack.c.bf16 %v458_v33, %v454_v4  ;;  %v498_v62 = vld [vmem:[#allocation2 + $0xc38] sm:$0xff]  ;;  %v493_v1 = vld [vmem:[#allocation2 + $0xc10] sm:$0xff] }
 0x14a   :  { %2263 = vmatpush1.bf16.msra.mxu0 %v2262_v17  ;;  %v2282_v17 = vpack.c.bf16 %v1303_v10, %v1301_v9  ;;  %v502_v3 = vld [vmem:[#allocation2 + $0xc58] sm:$0xff]  ;;  %v2178_v33 = vpack.c.bf16 %v497_v2, %v493_v1  ;;  %v557_v1 = vld [vmem:[#allocation2 + $0xe10] sm:$0xff] }
 0x14b   :  { %2265 = vmatprep.subr.bf16.mxu0 %v2264_v20  ;;  %v2284_v20 = vpack.c.bf16 %v1308_v15, %v1306_v14  ;;  %v506_v4 = vld [vmem:[#allocation2 + $0xc78] sm:$0xff]  ;;  %v513_v14 = vld [vmem:[#allocation2 + $0xcb0] sm:$0xff] }
 0x14c   :  { %2139 = vmatpush1.bf16.msra.mxu1 %v2138_v18  ;;  %v2158_v18 = vpack.c.bf16 %v457_v13, %v453_v7  ;;  %v505_v7 = vld [vmem:[#allocation2 + $0xc70] sm:$0xff]  ;;  %v514_v9 = vld [vmem:[#allocation2 + $0xcb8] sm:$0xff] }
 0x14d   :  { %2141 = vmatprep.subr.bf16.mxu1 %v2140_v34  ;;  %v2160_v34 = vpack.c.bf16 %v466_v16, %v462_v25  ;;  %v509_v13 = vld [vmem:[#allocation2 + $0xc90] sm:$0xff]  ;;  %v518_v15 = vld [vmem:[#allocation2 + $0xcd8] sm:$0xff] }
 0x14e   :  { %2267 = vmatpush1.bf16.msra.mxu0 %v2266_v29  ;;  %v2286_v29 = vpack.c.bf16 %v1307_v22, %v1305_v21  ;;  %v522_v25 = vld [vmem:[#allocation2 + $0xcf8] sm:$0xff]  ;;  %v2186_v16 = vpack.c.bf16 %v513_v14, %v509_v13  ;;  %v561_v2 = vld [vmem:[#allocation2 + $0xe30] sm:$0xff] }
 0x14f   :  { %2269 = vmatprep.subr.bf16.mxu0 %v2268_v31  ;;  %v2288_v31 = vpack.c.bf16 %v1312_v26, %v1310_v24  ;;  %v530_v21 = vld [vmem:[#allocation2 + $0xd38] sm:$0xff] }
 0x150   :  { %2143 = vmatpush1.bf16.msra.mxu1 %v2142_v30  ;;  %v2162_v30 = vpack.c.bf16 %v465_v23, %v461_v19  ;;  %v521_v19 = vld [vmem:[#allocation2 + $0xcf0] sm:$0xff]  ;;  %v534_v23 = vld [vmem:[#allocation2 + $0xd58] sm:$0xff] }
 0x151   :  { %2145 = vmatprep.subr.bf16.mxu1 %v2144_v48  ;;  %v2164_v48 = vpack.c.bf16 %v474_v28, %v470_v27  ;;  %v538_v24 = vld [vmem:[#allocation2 + $0xd78] sm:$0xff]  ;;  %v533_v28 = vld [vmem:[#allocation2 + $0xd50] sm:$0xff] }
 0x152   :  { %2271 = vmatpush1.bf16.msra.mxu0 %v2270_v43  ;;  %v2290_v43 = vpack.c.bf16 %v1311_v35, %v1309_v32  ;;  %v2196_v27 = vpack.c.bf16 %v538_v24, %v534_v23  ;;  %v541_v32 = vld [vmem:[#allocation2 + $0xd90] sm:$0xff]  ;;  %v554_v42 = vld [vmem:[#allocation2 + $0xdf8] sm:$0xff] }
 0x153   :  { %2273 = vmatprep.subr.bf16.mxu0 %v2272_v47  ;;  %v1313_v47 = vld [vmem:[#allocation7 + $0x1a0] sm:$0xff]  ;;  %v545_v35 = vld [vmem:[#allocation2 + $0xdb0] sm:$0xff]  ;;  %v578_v13 = vld [vmem:[#allocation2 + $0xeb8] sm:$0xff] }
 0x154   :  { %2147 = vmatpush1.bf16.msra.mxu1 %v2146_v45  ;;  %v2166_v45 = vpack.c.bf16 %v473_v36, %v469_v41  ;;  %v2294_v38 = vpack.c.bf16 %v1315_v49, %v1313_v47  ;;  %v546_v41 = vld [vmem:[#allocation2 + $0xdb8] sm:$0xff]  ;;  %v589_v24 = vld [vmem:[#allocation2 + $0xf10] sm:$0xff] }
 0x155   :  { %2149 = vmatprep.subr.bf16.mxu1 %v2148_v51  ;;  %v477_v51 = vld [vmem:[#allocation2 + $0xb90] sm:$0xff]  ;;  %v550_v36 = vld [vmem:[#allocation2 + $0xdd8] sm:$0xff] }
 0x156   :  { %2275 = vmatpush1.bf16.msra.mxu0 %v2274_v57  ;;  %v2170_v56 = vpack.c.bf16 %v481_v52, %v477_v51  ;;  %v2172_v57 = vpack.c.bf16 %v490_v54, %v486_v53  ;;  %v549_v51 = vld [vmem:[#allocation2 + $0xdd0] sm:$0xff]  ;;  %v2204_v53 = vpack.c.bf16 %v554_v42, %v550_v36  ;;  %v558_v54 = vld [vmem:[#allocation2 + $0xe18] sm:$0xff] }
 0x157   :  { %2277 = vmatprep.subr.bf16.mxu0 %v2276_v60  ;;  %v494_v60 = vld [vmem:[#allocation2 + $0xc18] sm:$0xff]  ;;  %v553_v52 = vld [vmem:[#allocation2 + $0xdf0] sm:$0xff] }
 0x158   :  { %2151 = vmatpush1.bf16.msra.mxu1 %v2150_v58  ;;  %v485_v58 = vld [vmem:[#allocation2 + $0xbd0] sm:$0xff]  ;;  %v614_v42 = vld [vmem:[#allocation2 + $0xfd8] sm:$0xff] }
 0x159   :  { %2153 = vmatprep.subr.bf16.mxu1 %v2152_v0  ;;  %v2174_v63 = vpack.c.bf16 %v489_v59, %v485_v58  ;;  %v2176_v0 = vpack.c.bf16 %v498_v62, %v494_v60  ;;  %v1321_v59 = vld [vmem:[#allocation7 + $0x1e0] sm:$0xff]  ;;  %v1323_v60 = vld [vmem:[#allocation7 + $0x1f0] sm:$0xff] }
 0x15a   :  { %2279 = vmatpush1.bf16.msra.mxu0 %v2278_v5  ;;  %v2180_v5 = vpack.c.bf16 %v506_v4, %v502_v3  ;;  %v2302_v62 = vpack.c.bf16 %v1323_v60, %v1321_v59  ;;  %v566_v3 = vld [vmem:[#allocation2 + $0xe58] sm:$0xff] }
 0x15b   :  { %2281 = vmatprep.subr.bf16.mxu0 %v2280_v8  ;;  %v510_v8 = vld [vmem:[#allocation2 + $0xc98] sm:$0xff] }
 0x15c   :  { %2155 = vmatpush1.bf16.msra.mxu1 %v2154_v6  ;;  %v501_v6 = vld [vmem:[#allocation2 + $0xc50] sm:$0xff]  ;;  %v570_v4 = vld [vmem:[#allocation2 + $0xe78] sm:$0xff] }
 0x15d   :  { %2157 = vmatprep.subr.bf16.mxu1 %v2156_v12  ;;  %v2182_v10 = vpack.c.bf16 %v505_v7, %v501_v6  ;;  %v2184_v12 = vpack.c.bf16 %v514_v9, %v510_v8  ;;  %v1328_v6 = vld [vmem:[#allocation7 + $0x218] sm:$0xff]  ;;  %v2212_v7 = vpack.c.bf16 %v570_v4, %v566_v3  ;;  %v565_v8 = vld [vmem:[#allocation2 + $0xe50] sm:$0xff] }
 0x15e   :  { %2283 = vmatpush1.bf16.msra.mxu0 %v2282_v17  ;;  %v2188_v17 = vpack.c.bf16 %v522_v25, %v518_v15  ;;  %v569_v9 = vld [vmem:[#allocation2 + $0xe70] sm:$0xff]  ;;  %v1332_v4 = vld [vmem:[#allocation7 + $0x238] sm:$0xff] }
 0x15f   :  { %2285 = vmatprep.subr.bf16.mxu0 %v2284_v20  ;;  %v526_v20 = vld [vmem:[#allocation2 + $0xd18] sm:$0xff]  ;;  %v2214_v14 = vpack.c.bf16 %v569_v9, %v565_v8  ;;  %v573_v25 = vld [vmem:[#allocation2 + $0xe90] sm:$0xff] }
 0x160   :  { %2159 = vmatpush1.bf16.msra.mxu1 %v2158_v18  ;;  %v517_v18 = vld [vmem:[#allocation2 + $0xcd0] sm:$0xff]  ;;  %v2192_v22 = vpack.c.bf16 %v530_v21, %v526_v20 }
 0x161   :  { %2161 = vmatprep.subr.bf16.mxu1 %v2160_v34  ;;  %v525_v34 = vld [vmem:[#allocation2 + $0xd10] sm:$0xff] }
 0x162   :  { %2287 = vmatpush1.bf16.msra.mxu0 %v2286_v29  ;;  %v537_v29 = vld [vmem:[#allocation2 + $0xd70] sm:$0xff] }
 0x163   :  { %2289 = vmatprep.subr.bf16.mxu0 %v2288_v31  ;;  %v2198_v31 = vpack.c.bf16 %v537_v29, %v533_v28  ;;  %v581_v21 = vld [vmem:[#allocation2 + $0xed0] sm:$0xff]  ;;  %v602_v28 = vld [vmem:[#allocation2 + $0xf78] sm:$0xff] }
 0x164   :  { %2163 = vmatpush1.bf16.msra.mxu1 %v2162_v30  ;;  %v542_v30 = vld [vmem:[#allocation2 + $0xd98] sm:$0xff]  ;;  %v1330_v3 = vld [vmem:[#allocation7 + $0x228] sm:$0xff] }
 0x165   :  { %2165 = vmatprep.subr.bf16.mxu1 %v2164_v48  ;;  %v2200_v48 = vpack.c.bf16 %v546_v41, %v542_v30  ;;  %v597_v41 = vld [vmem:[#allocation2 + $0xf50] sm:$0xff]  ;;  %v2308_v8 = vpack.c.bf16 %v1332_v4, %v1330_v3  ;;  %v1345_v4 = vld [vmem:[#allocation7 + $0x2a0] sm:$0xff] }
 0x166   :  { %2291 = vmatpush1.bf16.msra.mxu0 %v2290_v43  ;;  %v2296_v43 = vpack.c.bf16 %v1320_v39, %v1318_v37  ;;  %v605_v37 = vld [vmem:[#allocation2 + $0xf90] sm:$0xff] }
 0x167   :  { %2293 = vmatprep.subr.bf16.mxu0 %v2292_v46  ;;  %v1319_v46 = vld [vmem:[#allocation7 + $0x1d0] sm:$0xff] }
 0x168   :  { %2167 = vmatpush1.bf16.msra.mxu1 %v2166_v45  ;;  %v1317_v45 = vld [vmem:[#allocation7 + $0x1c0] sm:$0xff]  ;;  %v609_v39 = vld [vmem:[#allocation2 + $0xfb0] sm:$0xff] }
 0x169   :  { %2169 = vmatprep.subr.bf16.mxu1 %v2168_v50  ;;  %v2298_v49 = vpack.c.bf16 %v1319_v46, %v1317_v45  ;;  %v2202_v50 = vpack.c.bf16 %v545_v35, %v541_v32  ;;  %v606_v32 = vld [vmem:[#allocation2 + $0xf98] sm:$0xff]  ;;  %v2234_v45 = vpack.c.bf16 %v609_v39, %v605_v37  ;;  %v1342_v37 = vld [vmem:[#allocation7 + $0x288] sm:$0xff] }
 0x16a   :  { %2295 = vmatpush1.bf16.msra.mxu0 %v2294_v38  ;;  %v1322_v38 = vld [vmem:[#allocation7 + $0x1e8] sm:$0xff]  ;;  %v610_v35 = vld [vmem:[#allocation2 + $0xfb8] sm:$0xff] }
 0x16b   :  { %2297 = vmatprep.subr.bf16.mxu0 %v2296_v43  ;;  %v2232_v36 = vpack.c.bf16 %v610_v35, %v606_v32  ;;  %v618_v43 = vld [vmem:[#allocation2 + $0xff8] sm:$0xff] }
 0x16c   :  { %2171 = vmatpush1.bf16.msra.mxu1 %v2170_v56  ;;  %v1324_v56 = vld [vmem:[#allocation7 + $0x1f8] sm:$0xff]  ;;  %v2236_v46 = vpack.c.bf16 %v618_v43, %v614_v42  ;;  %v1331_v9 = vld [vmem:[#allocation7 + $0x230] sm:$0xff] }
 0x16d   :  { %2173 = vmatprep.subr.bf16.mxu1 %v2172_v57  ;;  %v562_v57 = vld [vmem:[#allocation2 + $0xe38] sm:$0xff]  ;;  %v2300_v58 = vpack.c.bf16 %v1324_v56, %v1322_v38 }
 0x16e   :  { %2299 = vmatpush1.bf16.msra.mxu0 %v2298_v49  ;;  %v613_v49 = vld [vmem:[#allocation2 + $0xfd0] sm:$0xff]  ;;  %v1582_v32 = vld [vmem:[#allocation10 + $0xb8] sm:$0xff] }
 0x16f   :  { %2301 = vmatprep.subr.bf16.mxu0 %v2300_v58  ;;  %v1344_v39 = vld [vmem:[#allocation7 + $0x298] sm:$0xff] }
 0x170   :  { %2175 = vmatpush1.bf16.msra.mxu1 %v2174_v63  ;;  %v2206_v63 = vpack.c.bf16 %v553_v52, %v549_v51  ;;  %v623_v52 = vsub.s32 0, %v2731_v61 }
 0x171   :  { %2177 = vmatprep.subr.bf16.mxu1 %v2176_v0  ;;  %v2208_v0 = vpack.c.bf16 %v562_v57, %v558_v54  ;;  %v627_v54 = vsub.s32 1, %v2731_v61 }
 0x172   :  { %2303 = vmatpush1.bf16.msra.mxu0 %v2302_v62 }
 0x173   :  { %1176 = vmatmul.mubr.f32.vlgmr.msra.gmra.mrb[2].mxu1 %v2765_v44  ;;  %v2190_v44 = vpack.c.bf16 %v521_v19, %v517_v18  ;;  %v586_v18 = vld [vmem:[#allocation2 + $0xef8] sm:$0xff] }
 0x174   :  { %2179 = vmatpush1.bf16.msra.mxu1 %v2178_v33  ;;  %1246 = vmatprep.mubr.f32.mxu1 %v2779_v11  ;;  %v529_v11 = vld [vmem:[#allocation2 + $0xd30] sm:$0xff]  ;;  %v2210_v33 = vpack.c.bf16 %v561_v2, %v557_v1 }
 0x175   :  { %2181 = vmatprep.subr.bf16.mxu1 %v2180_v5  ;;  %v2194_v26 = vpack.c.bf16 %v529_v11, %v525_v34  ;;  %v1326_v5 = vld [vmem:[#allocation7 + $0x208] sm:$0xff]  ;;  %v594_v34 = vld [vmem:[#allocation2 + $0xf38] sm:$0xff] }
 0x176   :  { %v1327_v1 = vld [vmem:[#allocation7 + $0x210] sm:$0xff] }
 0x178   :  { %2183 = vmatpush1.bf16.msra.mxu1 %v2182_v10  ;;  %v2304_v10 = vpack.c.bf16 %v1328_v6, %v1326_v5  ;;  %v1329_v6 = vld [vmem:[#allocation7 + $0x220] sm:$0xff] }
 0x179   :  { %2185 = vmatprep.subr.bf16.mxu1 %v2184_v12  ;;  %v574_v12 = vld [vmem:[#allocation2 + $0xe98] sm:$0xff] }
 0x17a   :  { %2305 = vmatprep.subr.bf16.mxu0 %v2304_v10  ;;  %v2216_v15 = vpack.c.bf16 %v578_v13, %v574_v12  ;;  %v1334_v10 = vld [vmem:[#allocation7 + $0x248] sm:$0xff] }
 0x17b   :  { %v1576_v12 = vld [vmem:[#allocation10 + $0x88] sm:$0xff]  ;;  %v1559_v13 = vld [vmem:[#allocation10] sm:$0xff] }
 0x17c   :  { %2187 = vmatpush1.bf16.msra.mxu1 %v2186_v16  ;;  %v577_v16 = vld [vmem:[#allocation2 + $0xeb0] sm:$0xff] }
 0x17d   :  { %2189 = vmatprep.subr.bf16.mxu1 %v2188_v17  ;;  %v582_v17 = vld [vmem:[#allocation2 + $0xed8] sm:$0xff]  ;;  %v2218_v19 = vpack.c.bf16 %v577_v16, %v573_v25 }
 0x17e   :  { %v2220_v20 = vpack.c.bf16 %v586_v18, %v582_v17  ;;  %v1577_v25 = vld [vmem:[#allocation10 + $0x90] sm:$0xff]  ;;  %v1578_v16 = vld [vmem:[#allocation10 + $0x98] sm:$0xff]  ;;  %v2310_v17 = vpack.c.bf16 %v1331_v9, %v1329_v6 }
 0x17f   :  { %v1352_v6 = vld [vmem:[#allocation7 + $0x2d8] sm:$0xff] }
 0x180   :  { %2191 = vmatpush1.bf16.msra.mxu1 %v2190_v44  ;;  %v585_v44 = vld [vmem:[#allocation2 + $0xef0] sm:$0xff] }
 0x181   :  { %2193 = vmatprep.subr.bf16.mxu1 %v2192_v22  ;;  %v590_v22 = vld [vmem:[#allocation2 + $0xf18] sm:$0xff]  ;;  %v2222_v11 = vpack.c.bf16 %v585_v44, %v581_v21  ;;  %v1579_v44 = vld [vmem:[#allocation10 + $0xa0] sm:$0xff] }
 0x182   :  { %v2224_v23 = vpack.c.bf16 %v594_v34, %v590_v22  ;;  %v1562_v21 = vld [vmem:[#allocation10 + $0x18] sm:$0xff]  ;;  %v1569_v9 = vld [vmem:[#allocation10 + $0x50] sm:$0xff] }
 0x183   :  { %v1333_v34 = vld [vmem:[#allocation7 + $0x240] sm:$0xff] }
 0x184   :  { %2195 = vmatpush1.bf16.msra.mxu1 %v2194_v26  ;;  %v593_v26 = vld [vmem:[#allocation2 + $0xf30] sm:$0xff] }
 0x185   :  { %2197 = vmatprep.subr.bf16.mxu1 %v2196_v27  ;;  %v598_v27 = vld [vmem:[#allocation2 + $0xf58] sm:$0xff]  ;;  %v2226_v29 = vpack.c.bf16 %v593_v26, %v589_v24  ;;  %v1338_v24 = vld [vmem:[#allocation7 + $0x268] sm:$0xff] }
 0x186   :  { %v2790_v40 = vpop.f32.mrb[0].mxu1  ;;  %v2228_v30 = vpack.c.bf16 %v602_v28, %v598_v27  ;;  %v1340_v26 = vld [vmem:[#allocation7 + $0x278] sm:$0xff] }
 0x187   :  { %v2792_v47 = vpop.f32.mrb[1].mxu1  ;;  %v2316_v35 = vpack.c.bf16 %v1340_v26, %v1338_v24  ;;  %v1364_v24 = vld [vmem:[#allocation7 + $0x338] sm:$0xff] }
 0x188   :  { %2199 = vmatpush1.bf16.msra.mxu1 %v2198_v31  ;;  %v601_v31 = vld [vmem:[#allocation2 + $0xf70] sm:$0xff] }
 0x189   :  { %2201 = vmatprep.subr.bf16.mxu1 %v2200_v48  ;;  %v2230_v48 = vpack.c.bf16 %v601_v31, %v597_v41  ;;  %v1581_v31 = vld [vmem:[#allocation10 + $0xb0] sm:$0xff] }
 0x18a   :  { %v2380_v43 = vpack.c.bf16 %v1582_v32, %v1581_v31 }
 0x18c   :  { %2203 = vmatpush1.bf16.msra.mxu1 %v2202_v50  ;;  %v617_v50 = vld [vmem:[#allocation2 + $0xff0] sm:$0xff] }
 0x18d   :  { %2205 = vmatprep.subr.bf16.mxu1 %v2204_v53  ;;  %v2238_v51 = vpack.c.bf16 %v617_v50, %v613_v49  ;;  %v2796_v53 = vld [vmem:[#allocation5] sm:$0xf]  ;;  %v1583_v50 = vld [vmem:[#allocation10 + $0xc0] sm:$0xff] }
 0x18e   :  { %v624_v38 = vrot.slane %v2796_v53, %v623_v52  ;;  %v628_v56 = vrot.slane %v2796_v53, %v627_v54 }
 0x190   :  { %2207 = vmatpush1.bf16.msra.mxu1 %v2206_v63  ;;  %v752_v57 = vadd.f32 %v2790_v40, %v624_v38  ;;  %v754_v58 = vadd.f32 %v2792_v47, %v628_v56  ;;  %v1336_v40 = vld [vmem:[#allocation7 + $0x258] sm:$0xff]  ;;  %v1575_v47 = vld [vmem:[#allocation10 + $0x80] sm:$0xff]  ;;  %v2320_v38 = vpack.c.bf16 %v1344_v39, %v1342_v37 }
 0x191   :  { %2209 = vmatprep.subr.bf16.mxu1 %v2208_v0  ;;  %v1325_v0 = vld [vmem:[#allocation7 + $0x200] sm:$0xff]  ;;  %v2312_v22 = vpack.c.bf16 %v1336_v40, %v1334_v10  ;;  %v1372_v37 = vld [vmem:[#allocation7 + $0x378] sm:$0xff] }
 0x192   :  { %v2306_v5 = vpack.c.bf16 %v1327_v1, %v1325_v0  ;;  %v1341_v56 = vld [vmem:[#allocation7 + $0x280] sm:$0xff]  ;;  %v1585_v1 = vld [vmem:[#allocation10 + $0xd0] sm:$0xff] }
 0x193   :  { %v1570_v10 = vld [vmem:[#allocation10 + $0x58] sm:$0xff] }
 0x194   :  { %2211 = vmatpush1.bf16.msra.mxu1 %v2210_v33 }
 0x195   :  { %2213 = vmatprep.subr.bf16.mxu1 %v2212_v7 }
 0x198   :  { %2215 = vmatpush1.bf16.msra.mxu1 %v2214_v14  ;;  %v2368_v14 = vpack.c.bf16 %v1576_v12, %v1575_v47  ;;  %v1349_v12 = vld [vmem:[#allocation7 + $0x2c0] sm:$0xff] }
 0x199   :  { %2217 = vmatprep.subr.bf16.mxu1 %v2216_v15  ;;  %v1560_v15 = vld [vmem:[#allocation10 + $0x8] sm:$0xff] }
 0x19a   :  { %v2370_v18 = vpack.c.bf16 %v1560_v15, %v1559_v13  ;;  %v1351_v13 = vld [vmem:[#allocation7 + $0x2d0] sm:$0xff]  ;;  %v1356_v15 = vld [vmem:[#allocation7 + $0x2f8] sm:$0xff] }
 0x19c   :  { %2219 = vmatpush1.bf16.msra.mxu1 %v2218_v19  ;;  %v2372_v19 = vpack.c.bf16 %v1578_v16, %v1577_v25  ;;  %v2390_v25 = vpack.c.bf16 %v1570_v10, %v1569_v9  ;;  %v2330_v16 = vpack.c.bf16 %v1351_v13, %v1349_v12  ;;  %v1387_v9 = vld [vmem:[#allocation7 + $0x3f0] sm:$0xff] }
 0x19d   :  { %2221 = vmatprep.subr.bf16.mxu1 %v2220_v20  ;;  %v1561_v20 = vld [vmem:[#allocation10 + $0x10] sm:$0xff] }
 0x19e   :  { %v2374_v27 = vpack.c.bf16 %v1562_v21, %v1561_v20  ;;  %v1358_v20 = vld [vmem:[#allocation7 + $0x308] sm:$0xff]  ;;  %v1360_v21 = vld [vmem:[#allocation7 + $0x318] sm:$0xff] }
 0x1a0   :  { %2223 = vmatpush1.bf16.msra.mxu1 %v2222_v11  ;;  %v1335_v11 = vld [vmem:[#allocation7 + $0x250] sm:$0xff] }
 0x1a1   :  { %2225 = vmatprep.subr.bf16.mxu1 %v2224_v23  ;;  %v1580_v23 = vld [vmem:[#allocation10 + $0xa8] sm:$0xff]  ;;  %v2314_v41 = vpack.c.bf16 %v1335_v11, %v1333_v34  ;;  %v1357_v34 = vld [vmem:[#allocation7 + $0x300] sm:$0xff] }
 0x1a2   :  { %v2376_v28 = vpack.c.bf16 %v1580_v23, %v1579_v44  ;;  %v1359_v11 = vld [vmem:[#allocation7 + $0x310] sm:$0xff]  ;;  %v1362_v23 = vld [vmem:[#allocation7 + $0x328] sm:$0xff] }
 0x1a3   :  { %v2338_v26 = vpack.c.bf16 %v1359_v11, %v1357_v34  ;;  %v1571_v34 = vld [vmem:[#allocation10 + $0x60] sm:$0xff]  ;;  %v1572_v11 = vld [vmem:[#allocation10 + $0x68] sm:$0xff] }
 0x1a4   :  { %2227 = vmatpush1.bf16.msra.mxu1 %v2226_v29  ;;  %v1563_v29 = vld [vmem:[#allocation10 + $0x20] sm:$0xff] }
 0x1a5   :  { %2229 = vmatprep.subr.bf16.mxu1 %v2228_v30  ;;  %v1564_v30 = vld [vmem:[#allocation10 + $0x28] sm:$0xff] }
 0x1a6   :  { %v2378_v42 = vpack.c.bf16 %v1564_v30, %v1563_v29  ;;  %v1363_v29 = vld [vmem:[#allocation7 + $0x330] sm:$0xff]  ;;  %v1366_v30 = vld [vmem:[#allocation7 + $0x348] sm:$0xff] }
 0x1a8   :  { %2231 = vmatpush1.bf16.msra.mxu1 %v2230_v48  ;;  %v1337_v48 = vld [vmem:[#allocation7 + $0x260] sm:$0xff] }
 0x1a9   :  { %2233 = vmatprep.subr.bf16.mxu1 %v2232_v36  ;;  %v1339_v36 = vld [vmem:[#allocation7 + $0x270] sm:$0xff] }
 0x1aa   :  { %v2318_v49 = vpack.c.bf16 %v1339_v36, %v1337_v48  ;;  %v1367_v48 = vld [vmem:[#allocation7 + $0x350] sm:$0xff]  ;;  %v1370_v36 = vld [vmem:[#allocation7 + $0x368] sm:$0xff] }
 0x1ac   :  { %2235 = vmatpush1.bf16.msra.mxu1 %v2234_v45  ;;  %v1565_v45 = vld [vmem:[#allocation10 + $0x30] sm:$0xff] }
 0x1ad   :  { %2237 = vmatprep.subr.bf16.mxu1 %v2236_v46  ;;  %v1566_v46 = vld [vmem:[#allocation10 + $0x38] sm:$0xff] }
 0x1b0   :  { %2239 = vmatpush1.bf16.msra.mxu1 %v2238_v51  ;;  %v1584_v51 = vld [vmem:[#allocation10 + $0xc8] sm:$0xff] }
 0x1b1   :  { %2369 = vmatprep.subr.bf16.mxu1 %v2368_v14  ;;  %v1354_v14 = vld [vmem:[#allocation7 + $0x2e8] sm:$0xff] }
 0x1b3   :  { %1247 = vmatmul.mubr.f32.vlgmr.msra.gmra.mrb[2].mxu1 %v2775_v55 }
 0x1b4   :  { %2371 = vmatpush3.bf16.msra.mxu1 %v2370_v18  ;;  %v1353_v18 = vld [vmem:[#allocation7 + $0x2e0] sm:$0xff] }
 0x1b5   :  { %2373 = vmatprep.subr.bf16.mxu1 %v2372_v19  ;;  %v1355_v19 = vld [vmem:[#allocation7 + $0x2f0] sm:$0xff] }
 0x1b6   :  { %v2334_v44 = vpack.c.bf16 %v1355_v19, %v1353_v18 }
 0x1b8   :  { %2375 = vmatpush3.bf16.msra.mxu1 %v2374_v27  ;;  %v2340_v27 = vpack.c.bf16 %v1364_v24, %v1362_v23  ;;  %v2394_v23 = vpack.c.bf16 %v1572_v11, %v1571_v34  ;;  %v1589_v24 = vld [vmem:[#allocation10 + $0xf0] sm:$0xff] }
 0x1b9   :  { %2377 = vmatprep.subr.bf16.mxu1 %v2376_v28  ;;  %v1361_v28 = vld [vmem:[#allocation7 + $0x320] sm:$0xff] }
 0x1ba   :  { %v2342_v31 = vpack.c.bf16 %v1363_v29, %v1361_v28  ;;  %v1574_v28 = vld [vmem:[#allocation10 + $0x78] sm:$0xff] }
 0x1bc   :  { %2379 = vmatpush3.bf16.msra.mxu1 %v2378_v42  ;;  %v2348_v42 = vpack.c.bf16 %v1372_v37, %v1370_v36 }
 0x1bd   :  { %2381 = vmatprep.subr.bf16.mxu1 %v2380_v43  ;;  %v1369_v43 = vld [vmem:[#allocation7 + $0x360] sm:$0xff] }
 0x208   :  { %v964_v59 = vpop.f32.mrb[0].mxu0 }
 0x209   :  { %v2401_v55 = vadd.f32 %v964_v59, %v752_v57  ;;  %v966_v60 = vpop.f32.mrb[1].mxu0  ;;  %v1343_v57 = vld [vmem:[#allocation7 + $0x290] sm:$0xff]  ;;  %v1348_v59 = vld [vmem:[#allocation7 + $0x2b8] sm:$0xff] }
 0x20a   :  { %v2403_v62 = vadd.f32 %v966_v60, %v754_v58  ;;  %v1346_v58 = vld [vmem:[#allocation7 + $0x2a8] sm:$0xff]  ;;  %v2384_v60 = vpack.c.bf16 %v1584_v51, %v1583_v50  ;;  %v2322_v0 = vpack.c.bf16 %v1343_v57, %v1341_v56  ;;  %v1375_v56 = vld [vmem:[#allocation7 + $0x390] sm:$0xff] }
 0x20b   :  { %v1253_v63 = vmul.f32 0.2, %v2401_v55  ;;  %v2324_v3 = vpack.c.bf16 %v1348_v59, %v1346_v58  ;;  %v1378_v57 = vld [vmem:[#allocation7 + $0x3a8] sm:$0xff]  ;;  %v1380_v58 = vld [vmem:[#allocation7 + $0x3b8] sm:$0xff] }
 0x20c   :  { %v1254_v2 = vmul.f32 0.2, %v2403_v62 }
 0x20d   :  { %v1257_v7 = vmax.f32 %v2401_v55, %v1253_v63  ;;  %v2382_v55 = vpack.c.bf16 %v1566_v46, %v1565_v45  ;;  %v1568_v63 = vld [vmem:[#allocation10 + $0x48] sm:$0xff] }
 0x20e   :  { %v1258_v33 = vmax.f32 %v2403_v62, %v1254_v2  ;;  %v1567_v62 = vld [vmem:[#allocation10 + $0x40] sm:$0xff]  ;;  %v1586_v2 = vld [vmem:[#allocation10 + $0xd8] sm:$0xff]  ;;  %v1371_v45 = vld [vmem:[#allocation7 + $0x370] sm:$0xff] }
 0x20f   :  { %2383 = vmatpush3.bf16.msra.mxu1 %v2382_v55  ;;  %v1374_v46 = vld [vmem:[#allocation7 + $0x388] sm:$0xff]  ;;  %v2350_v50 = vpack.c.bf16 %v1371_v45, %v1369_v43  ;;  %v2356_v55 = vpack.c.bf16 %v1380_v58, %v1378_v57 }
 0x210   :  { %1465 = vmatprep.mubr.f32.mxu0 %v1258_v33  ;;  %v1347_v33 = vld [vmem:[#allocation7 + $0x2b0] sm:$0xff]  ;;  %2385 = vmatprep.subr.bf16.mxu1 %v2384_v60  ;;  %v1377_v60 = vld [vmem:[#allocation7 + $0x3a0] sm:$0xff] }
 0x211   :  { %1466 = vmatmul.mubr.f32.vlgmr.msra.gmra.mrb[2].mxu0 %v1257_v7  ;;  %v2386_v7 = vpack.c.bf16 %v1568_v63, %v1567_v62  ;;  %v2326_v40 = vpack.c.bf16 %v1347_v33, %v1345_v4  ;;  %v1379_v62 = vld [vmem:[#allocation7 + $0x3b0] sm:$0xff]  ;;  %v1382_v63 = vld [vmem:[#allocation7 + $0x3c8] sm:$0xff] }
 0x212   :  { %2307 = vmatpush1.bf16.msra.mxu0 %v2306_v5  ;;  %v1350_v5 = vld [vmem:[#allocation7 + $0x2c8] sm:$0xff]  ;;  %v1383_v4 = vld [vmem:[#allocation7 + $0x3d0] sm:$0xff] }
 0x213   :  { %2309 = vmatprep.subr.bf16.mxu0 %v2308_v8  ;;  %v2388_v8 = vpack.c.bf16 %v1586_v2, %v1585_v1  ;;  %v2328_v47 = vpack.c.bf16 %v1352_v6, %v1350_v5  ;;  %2387 = vmatpush3.bf16.msra.mxu1 %v2386_v7  ;;  %v2358_v1 = vpack.c.bf16 %v1379_v62, %v1377_v60  ;;  %v1386_v33 = vld [vmem:[#allocation7 + $0x3e8] sm:$0xff]  ;;  %v1388_v5 = vld [vmem:[#allocation7 + $0x3f8] sm:$0xff] }
 0x214   :  { %v2364_v7 = vpack.c.bf16 %v1388_v5, %v1386_v33 }
 0x215   :  { %2389 = vmatprep.subr.bf16.mxu1 %v2388_v8  ;;  %v1385_v8 = vld [vmem:[#allocation7 + $0x3e0] sm:$0xff] }
 0x216   :  { %2311 = vmatpush1.bf16.msra.mxu0 %v2310_v17  ;;  %v2332_v17 = vpack.c.bf16 %v1356_v15, %v1354_v14  ;;  %v2366_v10 = vpack.c.bf16 %v1387_v9, %v1385_v8 }
 0x217   :  { %2313 = vmatprep.subr.bf16.mxu0 %v2312_v22  ;;  %2391 = vmatpush3.bf16.msra.mxu1 %v2390_v25  ;;  %v2336_v22 = vpack.c.bf16 %v1360_v21, %v1358_v20  ;;  %v1587_v21 = vld [vmem:[#allocation10 + $0xe0] sm:$0xff] }
 0x21a   :  { %2315 = vmatpush1.bf16.msra.mxu0 %v2314_v41  ;;  %v1368_v41 = vld [vmem:[#allocation7 + $0x358] sm:$0xff] }
 0x21b   :  { %2317 = vmatprep.subr.bf16.mxu0 %v2316_v35  ;;  %v2344_v32 = vpack.c.bf16 %v1368_v41, %v1366_v30  ;;  %v1365_v35 = vld [vmem:[#allocation7 + $0x340] sm:$0xff] }
 0x21c   :  { %v2346_v39 = vpack.c.bf16 %v1367_v48, %v1365_v35  ;;  %v1389_v30 = vld [vmem:[#allocation8] sm:$0x3] }
 0x21d   :  { %v1394_v41 = vrot.slane %v1389_v30, %v623_v52 }
 0x21e   :  { %2319 = vmatpush1.bf16.msra.mxu0 %v2318_v49  ;;  %v1376_v49 = vld [vmem:[#allocation7 + $0x398] sm:$0xff] }
 0x21f   :  { %2321 = vmatprep.subr.bf16.mxu0 %v2320_v38  ;;  %v2352_v51 = vpack.c.bf16 %v1376_v49, %v1374_v46  ;;  %v1373_v38 = vld [vmem:[#allocation7 + $0x380] sm:$0xff] }
 0x220   :  { %v2354_v59 = vpack.c.bf16 %v1375_v56, %v1373_v38 }
 0x222   :  { %2323 = vmatpush1.bf16.msra.mxu0 %v2322_v0  ;;  %v1384_v0 = vld [vmem:[#allocation7 + $0x3d8] sm:$0xff] }
 0x223   :  { %2325 = vmatprep.subr.bf16.mxu0 %v2324_v3  ;;  %v2360_v2 = vpack.c.bf16 %v1384_v0, %v1382_v63  ;;  %v1381_v3 = vld [vmem:[#allocation7 + $0x3c0] sm:$0xff] }
 0x224   :  { %v2362_v6 = vpack.c.bf16 %v1383_v4, %v1381_v3 }
 0x226   :  { %2327 = vmatpush1.bf16.msra.mxu0 %v2326_v40  ;;  %v631_v40 = vsub.s32 2, %v2731_v61 }
 0x227   :  { %2329 = vmatprep.subr.bf16.mxu0 %v2328_v47  ;;  %v635_v47 = vsub.s32 3, %v2731_v61 }
 0x228   :  { %v632_v12 = vrot.slane %v2796_v53, %v631_v40 }
 0x229   :  { %v636_v13 = vrot.slane %v2796_v53, %v635_v47  ;;  %v1590_v53 = vld [vmem:[#allocation10 + $0xf8] sm:$0xff] }
 0x22a   :  { %2331 = vmatpush1.bf16.msra.mxu0 %v2330_v16 }
 0x22b   :  { %2333 = vmatprep.subr.bf16.mxu0 %v2332_v17 }
 0x22e   :  { %2335 = vmatpush1.bf16.msra.mxu0 %v2334_v44  ;;  %v1588_v44 = vld [vmem:[#allocation10 + $0xe8] sm:$0xff] }
 0x22f   :  { %2337 = vmatprep.subr.bf16.mxu0 %v2336_v22  ;;  %v2392_v22 = vpack.c.bf16 %v1588_v44, %v1587_v21 }
 0x231   :  { %2393 = vmatprep.subr.bf16.mxu1 %v2392_v22 }
 0x232   :  { %2339 = vmatpush1.bf16.msra.mxu0 %v2338_v26  ;;  %2395 = vmatpush3.bf16.msra.mxu1 %v2394_v23  ;;  %v2396_v26 = vpack.c.bf16 %v1590_v53, %v1589_v24 }
 0x233   :  { %2341 = vmatprep.subr.bf16.mxu0 %v2340_v27  ;;  %v1573_v27 = vld [vmem:[#allocation10 + $0x70] sm:$0xff] }
 0x234   :  { %v2398_v29 = vpack.c.bf16 %v1574_v28, %v1573_v27  ;;  %2397 = vmatprep.subr.bf16.mxu1 %v2396_v26 }
 0x236   :  { %2343 = vmatpush1.bf16.msra.mxu0 %v2342_v31  ;;  %2399 = vmatpush3.bf16.msra.mxu1 %v2398_v29  ;;  %v1398_v31 = vrot.slane %v1389_v30, %v627_v54 }
 0x237   :  { %2345 = vmatprep.subr.bf16.mxu0 %v2344_v32 }
 0x23a   :  { %2347 = vmatpush1.bf16.msra.mxu0 %v2346_v39 }
 0x23b   :  { %2349 = vmatprep.subr.bf16.mxu0 %v2348_v42 }
 0x23e   :  { %2351 = vmatpush1.bf16.msra.mxu0 %v2350_v50 }
 0x23f   :  { %2353 = vmatprep.subr.bf16.mxu0 %v2352_v51 }
 0x242   :  { %2355 = vmatpush1.bf16.msra.mxu0 %v2354_v59 }
 0x243   :  { %2357 = vmatprep.subr.bf16.mxu0 %v2356_v55 }
 0x246   :  { %2359 = vmatpush1.bf16.msra.mxu0 %v2358_v1 }
 0x247   :  { %2361 = vmatprep.subr.bf16.mxu0 %v2360_v2 }
 0x24a   :  { %2363 = vmatpush1.bf16.msra.mxu0 %v2362_v6 }
 0x24b   :  { %2365 = vmatprep.subr.bf16.mxu0 %v2364_v7 }
 0x24e   :  { %2367 = vmatpush1.bf16.msra.mxu0 %v2366_v10 }
 0x286   :  { %v1248_v14 = vpop.f32.mrb[2].mxu1 }
 0x287   :  { %v2404_v15 = vadd.f32 %v1248_v14, %v632_v12  ;;  %v1250_v25 = vpop.f32.mrb[3].mxu1 }
 0x288   :  { %v2405_v16 = vadd.f32 %v1250_v25, %v636_v13 }
 0x289   :  { %v1255_v17 = vmul.f32 0.2, %v2404_v15 }
 0x28a   :  { %v1256_v18 = vmul.f32 0.2, %v2405_v16 }
 0x28b   :  { %v1259_v20 = vmax.f32 %v2404_v15, %v1255_v17 }
 0x28c   :  { %v1260_v19 = vmax.f32 %v2405_v16, %v1256_v18 }
 0x28e   :  { %1536 = vmatprep.mubr.f32.mxu0 %v1260_v19 }
 0x28f   :  { %1537 = vmatmul.mubr.f32.vlgmr.msra.gmra.mrb[2].mxu0 %v1259_v20 }
 0x362   :  { %v1538_v32 = vpop.f32.mrb[2].mxu0 }
 0x363   :  { %v2406_v35 = vadd.f32 %v1538_v32, %v1394_v41  ;;  %v1540_v48 = vpop.f32.mrb[3].mxu0 }
 0x364   :  { %v2407_v36 = vadd.f32 %v1540_v48, %v1398_v31 }
 0x365   :  { %v1543_v37 = vmul.f32 0.2, %v2406_v35 }
 0x366   :  { %v1544_v39 = vmul.f32 0.2, %v2407_v36 }
 0x367   :  { %v1545_v42 = vmax.f32 %v2406_v35, %v1543_v37 }
 0x368   :  { %v1546_v43 = vmax.f32 %v2407_v36, %v1544_v39 }
 0x36a   :  { %1662 = vmatprep.mubr.f32.mxu1 %v1546_v43  ;;  %v1549_v45 = vcombine.low %v1545_v42, %v1546_v43 }
 0x36b   :  { %1663 = vmatmul.mubr.f32.vlgmr.msra.gmra.mrb[4].mxu1 %v1545_v42 }
 0x36c   :  { %1691 = vst.sshfl [vmem:[#allocation13] sm:$0x33 pattern:$0x76325410] %v1549_v45 }
 0x36d   :  { %2579 = shalt.err (!%p2576_p10)
}
 0x36e   :  { %s2580_s4 = scalar_lea.hbm %s2837_s7, 64 }
 0x36f   :  { %p2581_p11 = scmp.ne.s32.totalorder %s2837_s7, %s2580_s4  ;;  %p2584_p12 = scmp.lt.u32.totalorder %s2580_s4, %s2837_s7 }
 0x371   :  { %p2586_p13 = pnand %p2584_p12, %p2581_p11 }
 0x373   :  { %2589 = shalt.err (!%p2586_p13)
}
 0x374   :  { %1678 = dma.vmem_to_hbm [thread:$0]  %s1676_s13, 64, %s2837_s7, [#allocation4]   ;;  %v1692_v52 = vld [vmem:[#allocation11] ss:$0 sm:$0xff] }
 0x43e   :  { %v1725_v61 = vpop.f32.mrb[4].mxu1 }
 0x43f   :  { %v1726_v54 = vpop.f32.mrb[5].mxu1 }
 0x440   :  { %v1727_v46 = vadd.f32 %v1726_v54, %v1725_v61 }
 0x442   :  { %v1665_v49 = vadd.f32 %v1727_v46, %v1692_v52 }
 0x444   :  { %1668 = vst [vmem:[%s2838_s8] sm:$0x3] %v1665_v49 }
 0x445   :  { %2598 = dma.done.wait [#allocation4], 64  }
 0x446   :  { %2599 = vsyncadd [#allocation4], 4294967232 }
 0x447   :  { %1686 = vsyncpa [#allocation3], 1 }
 0x448   :  { %1687 = vsyncpa [#allocation6], 1 }
 0x449   :  { %1688 = vsyncpa [#allocation9], 1 }
 0x44a   :  { %1689 = vsyncpa [#allocation12], 1 }
 0x44b   :  { %1690 = vsyncpa [#allocation4], 1 }

</bundles_post_ra>
